<compile_context>
chip_gen: v7x
topology: tpu7x:2x2x1
jax: 0.10.0
libtpu: 0.0.40
codegen_flags: <defaults>
</compile_context>

<pallas_src>
import functools

import numpy as np
import jax
import jax.numpy as jnp
from jax.experimental import pallas as pl
from jax.experimental.pallas import tpu as pltpu

# ----------------------------------------------------------------------------
# Module geometry (small 48x48 depth image consistent with image_size=[H, W, 1]).
# ----------------------------------------------------------------------------
PROPRIO_SIZE = 48
EXTRA_SCAN = 187                       # observations[:, 48:48+187] sliced out, unused
IMAGE_H, IMAGE_W = 48, 48
IMG_OFF = PROPRIO_SIZE + EXTRA_SCAN    # image start inside obs[:, :-1]
OBS_DIM = PROPRIO_SIZE + EXTRA_SCAN + IMAGE_H * IMAGE_W + 1   # + mask column = 2540
CNN_OUT = 32
RNN_HIDDEN = 64
RNN_OUT = 32
RNN_LAYERS = 2

# SimpleCNN: Conv(1->32,k8,s4) ReLU, Conv(32->64,k4,s2) ReLU, Conv(64->32,k3,s1),
#            Flatten, Linear(flat->CNN_OUT), ReLU
K1, S1, C1 = 8, 4, 32
K2, S2, C2 = 4, 2, 64
K3, S3, C3 = 3, 1, 32
H1 = (IMAGE_H - K1) // S1 + 1          # 11
H2 = (H1 - K2) // S2 + 1               # 4
H3 = (H2 - K3) // S3 + 1               # 2
FLAT = C3 * H3 * H3                    # 128
MLP_IN = CNN_OUT + PROPRIO_SIZE        # 80


# ----------------------------------------------------------------------------
# The single fused kernel.
# ----------------------------------------------------------------------------
def _fused_kernel(obs_ref,
                  m1_ref, b1_ref, m2_ref, b2_ref, m3_ref, b3_ref,
                  fcw_ref, fcb_ref, mw1_ref, mb1_ref, mw2_ref, mb2_ref,
                  hw_ref, hb_ref, out_ref, *, tb, cdt):
    f32 = jnp.float32

    # ---- conv1: one GEMM over all output rows --------------------------------
    # Slab rows ordered (out_row, env); lanes (kh, w) = one contiguous image slice,
    # so the im2col is just static lane slices of the obs block (no HBM im2col).
    slab1 = jnp.concatenate(
        [obs_ref[:, IMG_OFF + S1 * ho * IMAGE_W: IMG_OFF + (S1 * ho + K1) * IMAGE_W]
         for ho in range(H1)], axis=0)                                  # (H1*tb, K1*48)
    a1 = jnp.dot(slab1.astype(cdt), m1_ref[...], preferred_element_type=f32)
    a1 = jnp.maximum(a1 + b1_ref[...], 0.0)                             # (H1*tb, H1*C1)

    # ---- conv2 ---------------------------------------------------------------
    slab2 = jnp.concatenate(
        [jnp.concatenate(
            [a1[(S2 * ho + i) * tb:(S2 * ho + i + 1) * tb, :] for i in range(K2)],
            axis=1)
         for ho in range(H2)], axis=0)                                  # (H2*tb, K2*H1*C1)
    a2 = jnp.dot(slab2.astype(cdt), m2_ref[...], preferred_element_type=f32)
    a2 = jnp.maximum(a2 + b2_ref[...], 0.0)                             # (H2*tb, H2*C2)

    # ---- conv3 (no ReLU before Flatten/Linear, as in SimpleCNN) ---------------
    slab3 = jnp.concatenate(
        [jnp.concatenate(
            [a2[(S3 * ho + i) * tb:(S3 * ho + i + 1) * tb, :] for i in range(K3)],
            axis=1)
         for ho in range(H3)], axis=0)                                  # (H3*tb, K3*H2*C2)
    a3 = jnp.dot(slab3.astype(cdt), m3_ref[...], preferred_element_type=f32) + b3_ref[...]

    # ---- CNN FC (torch NCHW-flatten permutation folded into fcw at pack time) -
    flat = jnp.concatenate([a3[h * tb:(h + 1) * tb, :] for h in range(H3)], axis=1)  # (tb, FLAT)
    enc = jnp.dot(flat.astype(cdt), fcw_ref[...], preferred_element_type=f32)
    enc = jnp.maximum(enc + fcb_ref[...], 0.0)                          # (tb, CNN_OUT)

    # ---- MLP trunk (no_rnn branch) + rnn_linear head --------------------------
    x = jnp.concatenate([enc, obs_ref[:, 0:PROPRIO_SIZE]], axis=1)      # (tb, 80)
    h = jnp.dot(x.astype(cdt), mw1_ref[...], preferred_element_type=f32)
    h = jnp.maximum(h + mb1_ref[...], 0.0)
    h = jnp.dot(h.astype(cdt), mw2_ref[...], preferred_element_type=f32)
    h = jnp.maximum(h + mb2_ref[...], 0.0)
    y = jnp.dot(h.astype(cdt), hw_ref[...], preferred_element_type=f32) + hb_ref[...]
    out_ref[...] = y.astype(out_ref.dtype)


# ----------------------------------------------------------------------------
# Parameter packing: fold convs into row-slab GEMM matrices (done once, host side).
# ----------------------------------------------------------------------------
def _conv_row_matrix(w_oihw, in_w, stride):
    """(KH*in_w*Cin, out_w*Cout) matrix mapping a row-slab (kh, w, cin) to (w_out, c_out)."""
    w = np.asarray(w_oihw, np.float32)
    co, ci, kh, kw = w.shape
    out_w = (in_w - kw) // stride + 1
    m = np.zeros((kh * in_w * ci, out_w * co), np.float32)
    for wo in range(out_w):
        for i in range(kh):
            for j in range(kw):
                r0 = (i * in_w + stride * wo + j) * ci
                m[r0:r0 + ci, wo * co:(wo + 1) * co] = w[:, :, i, j].T
    return m


def pack_params(params, compute_dtype=jnp.bfloat16):
    """Build kernel operands: structured conv GEMM matrices, tiled conv biases,
    flatten-permuted FC weight; matmul weights cast to the MXU compute dtype."""
    def wdt(x):
        return jnp.asarray(np.asarray(x, np.float32), compute_dtype)

    def bias(x, tile=1):
        return jnp.asarray(np.tile(np.asarray(x, np.float32), tile)[None, :], jnp.float32)

    m1 = _conv_row_matrix(params["c1_w"], IMAGE_W, S1)     # (384, 352)
    m2 = _conv_row_matrix(params["c2_w"], H1, S2)          # (1408, 256)
    m3 = _conv_row_matrix(params["c3_w"], H2, S3)          # (768, 64)

    # Our flatten order is (h, w, c); torch's nn.Flatten on NCHW is (c, h, w).
    hh, ww, cc = np.meshgrid(np.arange(H3), np.arange(H3), np.arange(C3), indexing="ij")
    perm = (cc * (H3 * H3) + hh * H3 + ww).reshape(-1)
    fcw = np.asarray(params["cnn_fc_w"], np.float32)[perm, :]

    return (
        wdt(m1), bias(params["c1_b"], H1),
        wdt(m2), bias(params["c2_b"], H2),
        wdt(m3), bias(params["c3_b"], H3),
        wdt(fcw), bias(params["cnn_fc_b"]),
        wdt(params["mlp1_w"]), bias(params["mlp1_b"]),
        wdt(params["mlp2_w"]), bias(params["mlp2_b"]),
        wdt(params["rnn_lin_w"]), bias(params["rnn_lin_b"]),
    )


# ----------------------------------------------------------------------------
# Forward wrapper: one pallas_call, grid over batch tiles.
# ----------------------------------------------------------------------------
def _round_up(x, m):
    return (x + m - 1) // m * m


def vision_encoder_forward(packed, obs, *, block_b=None):
    """Fused VisionEncoder.forward.  obs: (B, 2540) float32 -> (B, 32) float32."""
    b, d = obs.shape
    assert d == OBS_DIM, (d, OBS_DIM)
    # masks = obs[:, -1].bool() is only consumed by the (unimplemented) LSTM branch.
    cdt = packed[0].dtype

    if block_b is None:
        block_b = min(64, _round_up(b, 8))          # sized for <=32 MiB VMEM on all gens
    block_b = _round_up(block_b, 8)
    b_pad = _round_up(b, block_b)
    obs = obs.astype(jnp.float32)
    if b_pad != b:
        obs = jnp.pad(obs, ((0, b_pad - b), (0, 0)))

    # Weights: full-array blocks with a constant index_map -> loaded once, VMEM-resident.
    weight_specs = [pl.BlockSpec(w.shape, lambda i: (0, 0)) for w in packed]

    flops_env = 2 * (H1 * (K1 * IMAGE_W) * (H1 * C1)
                     + H2 * (K2 * H1 * C1) * (H2 * C2)
                     + H3 * (K3 * H2 * C2) * (H3 * C3)
                     + FLAT * CNN_OUT + MLP_IN * RNN_HIDDEN
                     + RNN_HIDDEN * RNN_HIDDEN + RNN_HIDDEN * RNN_OUT)
    bytes_accessed = int(b_pad * (OBS_DIM + RNN_OUT) * 4
                         + sum(int(np.prod(w.shape)) * w.dtype.itemsize for w in packed))

    out = pl.pallas_call(
        functools.partial(_fused_kernel, tb=block_b, cdt=cdt),
        out_shape=jax.ShapeDtypeStruct((b_pad, RNN_OUT), jnp.float32),
        grid=(b_pad // block_b,),
        in_specs=[pl.BlockSpec((block_b, OBS_DIM), lambda i: (i, 0))] + weight_specs,
        out_specs=pl.BlockSpec((block_b, RNN_OUT), lambda i: (i, 0)),
        compiler_params=pltpu.CompilerParams(
            dimension_semantics=("parallel",),          # shards batch tiles across TCs on v7x
            vmem_limit_bytes=32 * 1024 * 1024),
        cost_estimate=pl.CostEstimate(flops=int(b_pad * flops_env),
                                      transcendentals=0,
                                      bytes_accessed=bytes_accessed),
    )(obs, *packed)
    return out[:b]


# ----------------------------------------------------------------------------
# Deterministic parameter init (PyTorch-default-like uniform(-1/sqrt(fan_in), ..)).
# ----------------------------------------------------------------------------
def _uinit(key, shape, fan_in):
    bound = 1.0 / float(fan_in) ** 0.5
    return jax.random.uniform(key, shape, jnp.float32, -bound, bound)


def init_params(key):
    ks = jax.random.split(key, 16)
    p = {}
    p["c1_w"] = _uinit(ks[0], (C1, 1, K1, K1), 1 * K1 * K1)
    p["c1_b"] = _uinit(ks[1], (C1,), 1 * K1 * K1)
    p["c2_w"] = _uinit(ks[2], (C2, C1, K2, K2), C1 * K2 * K2)
    p["c2_b"] = _uinit(ks[3], (C2,), C1 * K2 * K2)
    p["c3_w"] = _uinit(ks[4], (C3, C2, K3, K3), C2 * K3 * K3)
    p["c3_b"] = _uinit(ks[5], (C3,), C2 * K3 * K3)
    p["cnn_fc_w"] = _uinit(ks[6], (FLAT, CNN_OUT), FLAT)
    p["cnn_fc_b"] = _uinit(ks[7], (CNN_OUT,), FLAT)
    p["mlp1_w"] = _uinit(ks[8], (MLP_IN, RNN_HIDDEN), MLP_IN)
    p["mlp1_b"] = _uinit(ks[9], (RNN_HIDDEN,), MLP_IN)
    p["mlp2_w"] = _uinit(ks[10], (RNN_HIDDEN, RNN_HIDDEN), RNN_HIDDEN)
    p["mlp2_b"] = _uinit(ks[11], (RNN_HIDDEN,), RNN_HIDDEN)
    p["rnn_lin_w"] = _uinit(ks[12], (RNN_HIDDEN, RNN_OUT), RNN_HIDDEN)
    p["rnn_lin_b"] = _uinit(ks[13], (RNN_OUT,), RNN_HIDDEN)
    return p


# ----------------------------------------------------------------------------
# Pure-JAX reference (for a correctness sanity check in __main__).
# ----------------------------------------------------------------------------
def vision_encoder_reference(params, obs):
    o = obs[:, :-1]
    prop = o[:, :PROPRIO_SIZE]
    img = o[:, IMG_OFF:].reshape(-1, IMAGE_H, IMAGE_W, 1)
    x = jnp.transpose(img, (0, 3, 1, 2))        # NCHW, as SimpleCNN does

    def conv(x, w, b, s):
        y = jax.lax.conv_general_dilated(
            x, w, (s, s), "VALID", dimension_numbers=("NCHW", "OIHW", "NCHW"))
        return y + b.reshape(1, -1, 1, 1)

    x = jax.nn.relu(conv(x, params["c1_w"], params["c1_b"], S1))
    x = jax.nn.relu(conv(x, params["c2_w"], params["c2_b"], S2))
    x = conv(x, params["c3_w"], params["c3_b"], S3)
    x = x.reshape(x.shape[0], -1)               # NCHW flatten
    enc = jax.nn.relu(x @ params["cnn_fc_w"] + params["cnn_fc_b"])
    h = jnp.concatenate([enc, prop], axis=-1)
    h = jax.nn.relu(h @ params["mlp1_w"] + params["mlp1_b"])
    h = jax.nn.relu(h @ params["mlp2_w"] + params["mlp2_b"])
    return h @ params["rnn_lin_w"] + params["rnn_lin_b"]


if __name__ == "__main__":
    key = jax.random.PRNGKey(0)
    pkey, okey = jax.random.split(key)
    params = init_params(pkey)

    batch = 2
    obs = jax.random.normal(okey, (batch, OBS_DIM), jnp.float32)
    obs = obs.at[:, -1].set(1.0)  # mask column

    # Sanity check against the plain-JAX reference with f32 compute.
    packed_f32 = pack_params(params, compute_dtype=jnp.float32)
    out_f32 = jax.jit(functools.partial(vision_encoder_forward, packed_f32))(obs)
    ref = jax.jit(functools.partial(vision_encoder_reference, params))(obs)
    np.testing.assert_allclose(np.asarray(out_f32), np.asarray(ref), rtol=2e-2, atol=2e-2)

    # Default (performance) path: bf16 MXU compute, f32 accumulation.
    packed = pack_params(params, compute_dtype=jnp.bfloat16)
    fwd = jax.jit(functools.partial(vision_encoder_forward, packed))
    out = fwd(obs)
    jax.block_until_ready(out)
    assert out.shape == (batch, RNN_OUT), out.shape
    assert out.dtype == jnp.float32
    print("KERNEL_OK")
</pallas_src>

<mosaic_0001>
module attributes {stable_mosaic.version = 11 : i64} {
  func.func @_fused_kernel(%arg0: i32, %arg1: memref<8x2540xf32, #tpu.memory_space<vmem>>, %arg2: memref<384x352xf32, #tpu.memory_space<vmem>>, %arg3: memref<1x352xf32, #tpu.memory_space<vmem>>, %arg4: memref<1408x256xf32, #tpu.memory_space<vmem>>, %arg5: memref<1x256xf32, #tpu.memory_space<vmem>>, %arg6: memref<768x64xf32, #tpu.memory_space<vmem>>, %arg7: memref<1x64xf32, #tpu.memory_space<vmem>>, %arg8: memref<128x32xf32, #tpu.memory_space<vmem>>, %arg9: memref<1x32xf32, #tpu.memory_space<vmem>>, %arg10: memref<80x64xf32, #tpu.memory_space<vmem>>, %arg11: memref<1x64xf32, #tpu.memory_space<vmem>>, %arg12: memref<64x64xf32, #tpu.memory_space<vmem>>, %arg13: memref<1x64xf32, #tpu.memory_space<vmem>>, %arg14: memref<64x32xf32, #tpu.memory_space<vmem>>, %arg15: memref<1x32xf32, #tpu.memory_space<vmem>>, %arg16: memref<8x32xf32, #tpu.memory_space<vmem>>) attributes {dimension_semantics = [#tpu.dimension_semantics<parallel>], iteration_bounds = array<i64: 1>, scalar_prefetch = 0 : i64, scratch_operands = 0 : i64, tpu.core_type = #tpu.core_type<tc>, window_params = [{transform_indices = @transform_0, window_bounds = array<i64: 8, 2540>}, {pipeline_mode = #tpu.pipeline_mode<synchronous>, transform_indices = @transform_1, window_bounds = array<i64: 384, 352>}, {pipeline_mode = #tpu.pipeline_mode<synchronous>, transform_indices = @transform_2, window_bounds = array<i64: 1, 352>}, {pipeline_mode = #tpu.pipeline_mode<synchronous>, transform_indices = @transform_3, window_bounds = array<i64: 1408, 256>}, {pipeline_mode = #tpu.pipeline_mode<synchronous>, transform_indices = @transform_4, window_bounds = array<i64: 1, 256>}, {pipeline_mode = #tpu.pipeline_mode<synchronous>, transform_indices = @transform_5, window_bounds = array<i64: 768, 64>}, {pipeline_mode = #tpu.pipeline_mode<synchronous>, transform_indices = @transform_6, window_bounds = array<i64: 1, 64>}, {pipeline_mode = #tpu.pipeline_mode<synchronous>, transform_indices = @transform_7, window_bounds = array<i64: 128, 32>}, {pipeline_mode = #tpu.pipeline_mode<synchronous>, transform_indices = @transform_8, window_bounds = array<i64: 1, 32>}, {pipeline_mode = #tpu.pipeline_mode<synchronous>, transform_indices = @transform_9, window_bounds = array<i64: 80, 64>}, {pipeline_mode = #tpu.pipeline_mode<synchronous>, transform_indices = @transform_10, window_bounds = array<i64: 1, 64>}, {pipeline_mode = #tpu.pipeline_mode<synchronous>, transform_indices = @transform_11, window_bounds = array<i64: 64, 64>}, {pipeline_mode = #tpu.pipeline_mode<synchronous>, transform_indices = @transform_12, window_bounds = array<i64: 1, 64>}, {pipeline_mode = #tpu.pipeline_mode<synchronous>, transform_indices = @transform_13, window_bounds = array<i64: 64, 32>}, {pipeline_mode = #tpu.pipeline_mode<synchronous>, transform_indices = @transform_14, window_bounds = array<i64: 1, 32>}, {transform_indices = @transform_15, window_bounds = array<i64: 8, 32>}]} {
    %c0 = arith.constant 0 : index
    %c235 = arith.constant 235 : index
    %0 = vector.load %arg1[%c0, %c235] : memref<8x2540xf32, #tpu.memory_space<vmem>>, vector<8x384xf32>
    %c0_0 = arith.constant 0 : index
    %c427 = arith.constant 427 : index
    %1 = vector.load %arg1[%c0_0, %c427] : memref<8x2540xf32, #tpu.memory_space<vmem>>, vector<8x384xf32>
    %c0_1 = arith.constant 0 : index
    %c619 = arith.constant 619 : index
    %2 = vector.load %arg1[%c0_1, %c619] : memref<8x2540xf32, #tpu.memory_space<vmem>>, vector<8x384xf32>
    %c0_2 = arith.constant 0 : index
    %c811 = arith.constant 811 : index
    %3 = vector.load %arg1[%c0_2, %c811] : memref<8x2540xf32, #tpu.memory_space<vmem>>, vector<8x384xf32>
    %c0_3 = arith.constant 0 : index
    %c1003 = arith.constant 1003 : index
    %4 = vector.load %arg1[%c0_3, %c1003] : memref<8x2540xf32, #tpu.memory_space<vmem>>, vector<8x384xf32>
    %c0_4 = arith.constant 0 : index
    %c1195 = arith.constant 1195 : index
    %5 = vector.load %arg1[%c0_4, %c1195] : memref<8x2540xf32, #tpu.memory_space<vmem>>, vector<8x384xf32>
    %c0_5 = arith.constant 0 : index
    %c1387 = arith.constant 1387 : index
    %6 = vector.load %arg1[%c0_5, %c1387] : memref<8x2540xf32, #tpu.memory_space<vmem>>, vector<8x384xf32>
    %c0_6 = arith.constant 0 : index
    %c1579 = arith.constant 1579 : index
    %7 = vector.load %arg1[%c0_6, %c1579] : memref<8x2540xf32, #tpu.memory_space<vmem>>, vector<8x384xf32>
    %c0_7 = arith.constant 0 : index
    %c1771 = arith.constant 1771 : index
    %8 = vector.load %arg1[%c0_7, %c1771] : memref<8x2540xf32, #tpu.memory_space<vmem>>, vector<8x384xf32>
    %c0_8 = arith.constant 0 : index
    %c1963 = arith.constant 1963 : index
    %9 = vector.load %arg1[%c0_8, %c1963] : memref<8x2540xf32, #tpu.memory_space<vmem>>, vector<8x384xf32>
    %c0_9 = arith.constant 0 : index
    %c2155 = arith.constant 2155 : index
    %10 = vector.load %arg1[%c0_9, %c2155] : memref<8x2540xf32, #tpu.memory_space<vmem>>, vector<8x384xf32>
    %11 = tpu.concatenate %0, %1, %2, %3, %4, %5, %6, %7, %8, %9, %10 in 0 : vector<8x384xf32>, vector<8x384xf32>, vector<8x384xf32>, vector<8x384xf32>, vector<8x384xf32>, vector<8x384xf32>, vector<8x384xf32>, vector<8x384xf32>, vector<8x384xf32>, vector<8x384xf32>, vector<8x384xf32> -> vector<88x384xf32>
    %c0_10 = arith.constant 0 : index
    %c0_11 = arith.constant 0 : index
    %12 = vector.load %arg2[%c0_10, %c0_11] : memref<384x352xf32, #tpu.memory_space<vmem>>, vector<384x352xf32>
    %cst = arith.constant dense<0.000000e+00> : vector<88x352xf32>
    %13 = tpu.matmul %11, %12, %cst {dimension_numbers = #tpu.dot_dimension_numbers<[1], [0], [0], [1], [0, 0, 1, 1], [], []>} : vector<88x384xf32>, vector<384x352xf32>, vector<88x352xf32> -> vector<88x352xf32>
    %c0_12 = arith.constant 0 : index
    %c0_13 = arith.constant 0 : index
    %14 = vector.load %arg3[%c0_12, %c0_13] : memref<1x352xf32, #tpu.memory_space<vmem>>, vector<1x352xf32>
    %15 = vector.broadcast %14 : vector<1x352xf32> to vector<88x352xf32>
    %16 = arith.addf %13, %15 : vector<88x352xf32>
    %cst_14 = arith.constant 0.000000e+00 : f32
    %17 = vector.broadcast %cst_14 : f32 to vector<88x352xf32>
    %18 = arith.maximumf %16, %17 : vector<88x352xf32>
    %19 = vector.extract_strided_slice %18 {offsets = [0, 0], sizes = [8, 352], strides = [1, 1]} : vector<88x352xf32> to vector<8x352xf32>
    %20 = vector.extract_strided_slice %18 {offsets = [8, 0], sizes = [8, 352], strides = [1, 1]} : vector<88x352xf32> to vector<8x352xf32>
    %21 = vector.extract_strided_slice %18 {offsets = [16, 0], sizes = [8, 352], strides = [1, 1]} : vector<88x352xf32> to vector<8x352xf32>
    %22 = vector.extract_strided_slice %18 {offsets = [24, 0], sizes = [8, 352], strides = [1, 1]} : vector<88x352xf32> to vector<8x352xf32>
    %23 = tpu.concatenate %19, %20, %21, %22 in 1 : vector<8x352xf32>, vector<8x352xf32>, vector<8x352xf32>, vector<8x352xf32> -> vector<8x1408xf32>
    %24 = vector.extract_strided_slice %18 {offsets = [16, 0], sizes = [8, 352], strides = [1, 1]} : vector<88x352xf32> to vector<8x352xf32>
    %25 = vector.extract_strided_slice %18 {offsets = [24, 0], sizes = [8, 352], strides = [1, 1]} : vector<88x352xf32> to vector<8x352xf32>
    %26 = vector.extract_strided_slice %18 {offsets = [32, 0], sizes = [8, 352], strides = [1, 1]} : vector<88x352xf32> to vector<8x352xf32>
    %27 = vector.extract_strided_slice %18 {offsets = [40, 0], sizes = [8, 352], strides = [1, 1]} : vector<88x352xf32> to vector<8x352xf32>
    %28 = tpu.concatenate %24, %25, %26, %27 in 1 : vector<8x352xf32>, vector<8x352xf32>, vector<8x352xf32>, vector<8x352xf32> -> vector<8x1408xf32>
    %29 = vector.extract_strided_slice %18 {offsets = [32, 0], sizes = [8, 352], strides = [1, 1]} : vector<88x352xf32> to vector<8x352xf32>
    %30 = vector.extract_strided_slice %18 {offsets = [40, 0], sizes = [8, 352], strides = [1, 1]} : vector<88x352xf32> to vector<8x352xf32>
    %31 = vector.extract_strided_slice %18 {offsets = [48, 0], sizes = [8, 352], strides = [1, 1]} : vector<88x352xf32> to vector<8x352xf32>
    %32 = vector.extract_strided_slice %18 {offsets = [56, 0], sizes = [8, 352], strides = [1, 1]} : vector<88x352xf32> to vector<8x352xf32>
    %33 = tpu.concatenate %29, %30, %31, %32 in 1 : vector<8x352xf32>, vector<8x352xf32>, vector<8x352xf32>, vector<8x352xf32> -> vector<8x1408xf32>
    %34 = vector.extract_strided_slice %18 {offsets = [48, 0], sizes = [8, 352], strides = [1, 1]} : vector<88x352xf32> to vector<8x352xf32>
    %35 = vector.extract_strided_slice %18 {offsets = [56, 0], sizes = [8, 352], strides = [1, 1]} : vector<88x352xf32> to vector<8x352xf32>
    %36 = vector.extract_strided_slice %18 {offsets = [64, 0], sizes = [8, 352], strides = [1, 1]} : vector<88x352xf32> to vector<8x352xf32>
    %37 = vector.extract_strided_slice %18 {offsets = [72, 0], sizes = [8, 352], strides = [1, 1]} : vector<88x352xf32> to vector<8x352xf32>
    %38 = tpu.concatenate %34, %35, %36, %37 in 1 : vector<8x352xf32>, vector<8x352xf32>, vector<8x352xf32>, vector<8x352xf32> -> vector<8x1408xf32>
    %39 = tpu.concatenate %23, %28, %33, %38 in 0 : vector<8x1408xf32>, vector<8x1408xf32>, vector<8x1408xf32>, vector<8x1408xf32> -> vector<32x1408xf32>
    %c0_15 = arith.constant 0 : index
    %c0_16 = arith.constant 0 : index
    %40 = vector.load %arg4[%c0_15, %c0_16] : memref<1408x256xf32, #tpu.memory_space<vmem>>, vector<1408x256xf32>
    %cst_17 = arith.constant dense<0.000000e+00> : vector<32x256xf32>
    %41 = tpu.matmul %39, %40, %cst_17 {dimension_numbers = #tpu.dot_dimension_numbers<[1], [0], [0], [1], [0, 0, 1, 1], [], []>} : vector<32x1408xf32>, vector<1408x256xf32>, vector<32x256xf32> -> vector<32x256xf32>
    %c0_18 = arith.constant 0 : index
    %c0_19 = arith.constant 0 : index
    %42 = vector.load %arg5[%c0_18, %c0_19] : memref<1x256xf32, #tpu.memory_space<vmem>>, vector<1x256xf32>
    %43 = vector.broadcast %42 : vector<1x256xf32> to vector<32x256xf32>
    %44 = arith.addf %41, %43 : vector<32x256xf32>
    %cst_20 = arith.constant 0.000000e+00 : f32
    %45 = vector.broadcast %cst_20 : f32 to vector<32x256xf32>
    %46 = arith.maximumf %44, %45 : vector<32x256xf32>
    %47 = vector.extract_strided_slice %46 {offsets = [0, 0], sizes = [8, 256], strides = [1, 1]} : vector<32x256xf32> to vector<8x256xf32>
    %48 = vector.extract_strided_slice %46 {offsets = [8, 0], sizes = [8, 256], strides = [1, 1]} : vector<32x256xf32> to vector<8x256xf32>
    %49 = vector.extract_strided_slice %46 {offsets = [16, 0], sizes = [8, 256], strides = [1, 1]} : vector<32x256xf32> to vector<8x256xf32>
    %50 = tpu.concatenate %47, %48, %49 in 1 : vector<8x256xf32>, vector<8x256xf32>, vector<8x256xf32> -> vector<8x768xf32>
    %51 = vector.extract_strided_slice %46 {offsets = [8, 0], sizes = [8, 256], strides = [1, 1]} : vector<32x256xf32> to vector<8x256xf32>
    %52 = vector.extract_strided_slice %46 {offsets = [16, 0], sizes = [8, 256], strides = [1, 1]} : vector<32x256xf32> to vector<8x256xf32>
    %53 = vector.extract_strided_slice %46 {offsets = [24, 0], sizes = [8, 256], strides = [1, 1]} : vector<32x256xf32> to vector<8x256xf32>
    %54 = tpu.concatenate %51, %52, %53 in 1 : vector<8x256xf32>, vector<8x256xf32>, vector<8x256xf32> -> vector<8x768xf32>
    %55 = tpu.concatenate %50, %54 in 0 : vector<8x768xf32>, vector<8x768xf32> -> vector<16x768xf32>
    %c0_21 = arith.constant 0 : index
    %c0_22 = arith.constant 0 : index
    %56 = vector.load %arg6[%c0_21, %c0_22] : memref<768x64xf32, #tpu.memory_space<vmem>>, vector<768x64xf32>
    %cst_23 = arith.constant dense<0.000000e+00> : vector<16x64xf32>
    %57 = tpu.matmul %55, %56, %cst_23 {dimension_numbers = #tpu.dot_dimension_numbers<[1], [0], [0], [1], [0, 0, 1, 1], [], []>} : vector<16x768xf32>, vector<768x64xf32>, vector<16x64xf32> -> vector<16x64xf32>
    %c0_24 = arith.constant 0 : index
    %c0_25 = arith.constant 0 : index
    %58 = vector.load %arg7[%c0_24, %c0_25] : memref<1x64xf32, #tpu.memory_space<vmem>>, vector<1x64xf32>
    %59 = vector.broadcast %58 : vector<1x64xf32> to vector<16x64xf32>
    %60 = arith.addf %57, %59 : vector<16x64xf32>
    %61 = vector.extract_strided_slice %60 {offsets = [0, 0], sizes = [8, 64], strides = [1, 1]} : vector<16x64xf32> to vector<8x64xf32>
    %62 = vector.extract_strided_slice %60 {offsets = [8, 0], sizes = [8, 64], strides = [1, 1]} : vector<16x64xf32> to vector<8x64xf32>
    %63 = tpu.concatenate %61, %62 in 1 : vector<8x64xf32>, vector<8x64xf32> -> vector<8x128xf32>
    %c0_26 = arith.constant 0 : index
    %c0_27 = arith.constant 0 : index
    %64 = vector.load %arg8[%c0_26, %c0_27] : memref<128x32xf32, #tpu.memory_space<vmem>>, vector<128x32xf32>
    %cst_28 = arith.constant dense<0.000000e+00> : vector<8x32xf32>
    %65 = tpu.matmul %63, %64, %cst_28 {dimension_numbers = #tpu.dot_dimension_numbers<[1], [0], [0], [1], [0, 0, 1, 1], [], []>} : vector<8x128xf32>, vector<128x32xf32>, vector<8x32xf32> -> vector<8x32xf32>
    %c0_29 = arith.constant 0 : index
    %c0_30 = arith.constant 0 : index
    %66 = vector.load %arg9[%c0_29, %c0_30] : memref<1x32xf32, #tpu.memory_space<vmem>>, vector<1x32xf32>
    %67 = vector.broadcast %66 : vector<1x32xf32> to vector<8x32xf32>
    %68 = arith.addf %65, %67 : vector<8x32xf32>
    %cst_31 = arith.constant 0.000000e+00 : f32
    %69 = vector.broadcast %cst_31 : f32 to vector<8x32xf32>
    %70 = arith.maximumf %68, %69 : vector<8x32xf32>
    %c0_32 = arith.constant 0 : index
    %c0_33 = arith.constant 0 : index
    %71 = vector.load %arg1[%c0_32, %c0_33] : memref<8x2540xf32, #tpu.memory_space<vmem>>, vector<8x48xf32>
    %72 = tpu.concatenate %70, %71 in 1 : vector<8x32xf32>, vector<8x48xf32> -> vector<8x80xf32>
    %c0_34 = arith.constant 0 : index
    %c0_35 = arith.constant 0 : index
    %73 = vector.load %arg10[%c0_34, %c0_35] : memref<80x64xf32, #tpu.memory_space<vmem>>, vector<80x64xf32>
    %cst_36 = arith.constant dense<0.000000e+00> : vector<8x64xf32>
    %74 = tpu.matmul %72, %73, %cst_36 {dimension_numbers = #tpu.dot_dimension_numbers<[1], [0], [0], [1], [0, 0, 1, 1], [], []>} : vector<8x80xf32>, vector<80x64xf32>, vector<8x64xf32> -> vector<8x64xf32>
    %c0_37 = arith.constant 0 : index
    %c0_38 = arith.constant 0 : index
    %75 = vector.load %arg11[%c0_37, %c0_38] : memref<1x64xf32, #tpu.memory_space<vmem>>, vector<1x64xf32>
    %76 = vector.broadcast %75 : vector<1x64xf32> to vector<8x64xf32>
    %77 = arith.addf %74, %76 : vector<8x64xf32>
    %cst_39 = arith.constant 0.000000e+00 : f32
    %78 = vector.broadcast %cst_39 : f32 to vector<8x64xf32>
    %79 = arith.maximumf %77, %78 : vector<8x64xf32>
    %c0_40 = arith.constant 0 : index
    %c0_41 = arith.constant 0 : index
    %80 = vector.load %arg12[%c0_40, %c0_41] : memref<64x64xf32, #tpu.memory_space<vmem>>, vector<64x64xf32>
    %cst_42 = arith.constant dense<0.000000e+00> : vector<8x64xf32>
    %81 = tpu.matmul %79, %80, %cst_42 {dimension_numbers = #tpu.dot_dimension_numbers<[1], [0], [0], [1], [0, 0, 1, 1], [], []>} : vector<8x64xf32>, vector<64x64xf32>, vector<8x64xf32> -> vector<8x64xf32>
    %c0_43 = arith.constant 0 : index
    %c0_44 = arith.constant 0 : index
    %82 = vector.load %arg13[%c0_43, %c0_44] : memref<1x64xf32, #tpu.memory_space<vmem>>, vector<1x64xf32>
    %83 = vector.broadcast %82 : vector<1x64xf32> to vector<8x64xf32>
    %84 = arith.addf %81, %83 : vector<8x64xf32>
    %cst_45 = arith.constant 0.000000e+00 : f32
    %85 = vector.broadcast %cst_45 : f32 to vector<8x64xf32>
    %86 = arith.maximumf %84, %85 : vector<8x64xf32>
    %c0_46 = arith.constant 0 : index
    %c0_47 = arith.constant 0 : index
    %87 = vector.load %arg14[%c0_46, %c0_47] : memref<64x32xf32, #tpu.memory_space<vmem>>, vector<64x32xf32>
    %cst_48 = arith.constant dense<0.000000e+00> : vector<8x32xf32>
    %88 = tpu.matmul %86, %87, %cst_48 {dimension_numbers = #tpu.dot_dimension_numbers<[1], [0], [0], [1], [0, 0, 1, 1], [], []>} : vector<8x64xf32>, vector<64x32xf32>, vector<8x32xf32> -> vector<8x32xf32>
    %c0_49 = arith.constant 0 : index
    %c0_50 = arith.constant 0 : index
    %89 = vector.load %arg15[%c0_49, %c0_50] : memref<1x32xf32, #tpu.memory_space<vmem>>, vector<1x32xf32>
    %90 = vector.broadcast %89 : vector<1x32xf32> to vector<8x32xf32>
    %91 = arith.addf %88, %90 : vector<8x32xf32>
    %c0_51 = arith.constant 0 : index
    %c0_52 = arith.constant 0 : index
    %92 = vector.load %arg16[%c0_51, %c0_52] : memref<8x32xf32, #tpu.memory_space<vmem>>, vector<8x32xf32>
    tpu.vector_store %arg16[%c0_51, %c0_52], %91 {strides = array<i32>} : memref<8x32xf32, #tpu.memory_space<vmem>>, vector<8x32xf32>,
    return
  }
  func.func @transform_0(%arg0: i32) -> (i32, i32) {
    %c0_i32 = arith.constant 0 : i32
    %c0_i32_0 = arith.constant 0 : i32
    return %arg0, %c0_i32 : i32, i32
  }
  func.func @transform_1(%arg0: i32) -> (i32, i32) {
    %c0_i32 = arith.constant 0 : i32
    %c0_i32_0 = arith.constant 0 : i32
    %c0_i32_1 = arith.constant 0 : i32
    return %c0_i32, %c0_i32_0 : i32, i32
  }
  func.func @transform_2(%arg0: i32) -> (i32, i32) {
    %c0_i32 = arith.constant 0 : i32
    %c0_i32_0 = arith.constant 0 : i32
    %c0_i32_1 = arith.constant 0 : i32
    return %c0_i32, %c0_i32_0 : i32, i32
  }
  func.func @transform_3(%arg0: i32) -> (i32, i32) {
    %c0_i32 = arith.constant 0 : i32
    %c0_i32_0 = arith.constant 0 : i32
    %c0_i32_1 = arith.constant 0 : i32
    return %c0_i32, %c0_i32_0 : i32, i32
  }
  func.func @transform_4(%arg0: i32) -> (i32, i32) {
    %c0_i32 = arith.constant 0 : i32
    %c0_i32_0 = arith.constant 0 : i32
    %c0_i32_1 = arith.constant 0 : i32
    return %c0_i32, %c0_i32_0 : i32, i32
  }
  func.func @transform_5(%arg0: i32) -> (i32, i32) {
    %c0_i32 = arith.constant 0 : i32
    %c0_i32_0 = arith.constant 0 : i32
    %c0_i32_1 = arith.constant 0 : i32
    return %c0_i32, %c0_i32_0 : i32, i32
  }
  func.func @transform_6(%arg0: i32) -> (i32, i32) {
    %c0_i32 = arith.constant 0 : i32
    %c0_i32_0 = arith.constant 0 : i32
    %c0_i32_1 = arith.constant 0 : i32
    return %c0_i32, %c0_i32_0 : i32, i32
  }
  func.func @transform_7(%arg0: i32) -> (i32, i32) {
    %c0_i32 = arith.constant 0 : i32
    %c0_i32_0 = arith.constant 0 : i32
    %c0_i32_1 = arith.constant 0 : i32
    return %c0_i32, %c0_i32_0 : i32, i32
  }
  func.func @transform_8(%arg0: i32) -> (i32, i32) {
    %c0_i32 = arith.constant 0 : i32
    %c0_i32_0 = arith.constant 0 : i32
    %c0_i32_1 = arith.constant 0 : i32
    return %c0_i32, %c0_i32_0 : i32, i32
  }
  func.func @transform_9(%arg0: i32) -> (i32, i32) {
    %c0_i32 = arith.constant 0 : i32
    %c0_i32_0 = arith.constant 0 : i32
    %c0_i32_1 = arith.constant 0 : i32
    return %c0_i32, %c0_i32_0 : i32, i32
  }
  func.func @transform_10(%arg0: i32) -> (i32, i32) {
    %c0_i32 = arith.constant 0 : i32
    %c0_i32_0 = arith.constant 0 : i32
    %c0_i32_1 = arith.constant 0 : i32
    return %c0_i32, %c0_i32_0 : i32, i32
  }
  func.func @transform_11(%arg0: i32) -> (i32, i32) {
    %c0_i32 = arith.constant 0 : i32
    %c0_i32_0 = arith.constant 0 : i32
    %c0_i32_1 = arith.constant 0 : i32
    return %c0_i32, %c0_i32_0 : i32, i32
  }
  func.func @transform_12(%arg0: i32) -> (i32, i32) {
    %c0_i32 = arith.constant 0 : i32
    %c0_i32_0 = arith.constant 0 : i32
    %c0_i32_1 = arith.constant 0 : i32
    return %c0_i32, %c0_i32_0 : i32, i32
  }
  func.func @transform_13(%arg0: i32) -> (i32, i32) {
    %c0_i32 = arith.constant 0 : i32
    %c0_i32_0 = arith.constant 0 : i32
    %c0_i32_1 = arith.constant 0 : i32
    return %c0_i32, %c0_i32_0 : i32, i32
  }
  func.func @transform_14(%arg0: i32) -> (i32, i32) {
    %c0_i32 = arith.constant 0 : i32
    %c0_i32_0 = arith.constant 0 : i32
    %c0_i32_1 = arith.constant 0 : i32
    return %c0_i32, %c0_i32_0 : i32, i32
  }
  func.func @transform_15(%arg0: i32) -> (i32, i32) {
    %c0_i32 = arith.constant 0 : i32
    %c0_i32_0 = arith.constant 0 : i32
    return %arg0, %c0_i32 : i32, i32
  }
}

</mosaic_0001>

<bundles_post_ra>
// kernel: vision_encoder_forward.1
= control target key start
LH: loop header
LB: loop body
LE: loop exit
PB: predicated region body
PF: predicated region fallthrough
CT: control target
= control target key end

     0   :  { %20 = vsyncpa [#allocation3], 0  ;;  %s5733_s0 = inlined_call_operand.vmem [shape: f32[8,2540], index: 0, kind: input, shape index: {}]   ;;  %s5734_s1 = inlined_call_operand.hbm [shape: f32[384,352], index: 1, kind: input, shape index: {}]   ;;  %s5735_s2 = inlined_call_operand.hbm [shape: f32[1,352], index: 2, kind: input, shape index: {}]   ;;  %s5736_s3 = inlined_call_operand.hbm [shape: f32[1408,256], index: 3, kind: input, shape index: {}]   ;;  %s5737_s4 = inlined_call_operand.hbm [shape: f32[1,256], index: 4, kind: input, shape index: {}]   ;;  %s5738_s5 = inlined_call_operand.hbm [shape: f32[768,64], index: 5, kind: input, shape index: {}]   ;;  %s5739_s6 = inlined_call_operand.hbm [shape: f32[1,64], index: 6, kind: input, shape index: {}]   ;;  %s5740_s7 = inlined_call_operand.hbm [shape: f32[128,32], index: 7, kind: input, shape index: {}]   ;;  %s5741_s8 = inlined_call_operand.hbm [shape: f32[1,32], index: 8, kind: input, shape index: {}]   ;;  %s5742_s9 = inlined_call_operand.hbm [shape: f32[80,64], index: 9, kind: input, shape index: {}]   ;;  %s5743_s10 = inlined_call_operand.hbm [shape: f32[1,64], index: 10, kind: input, shape index: {}]   ;;  %s5744_s11 = inlined_call_operand.hbm [shape: f32[64,64], index: 11, kind: input, shape index: {}]   ;;  %s5745_s12 = inlined_call_operand.hbm [shape: f32[1,64], index: 12, kind: input, shape index: {}]   ;;  %s5746_s13 = inlined_call_operand.hbm [shape: f32[64,32], index: 13, kind: input, shape index: {}]   ;;  %s5747_s14 = inlined_call_operand.hbm [shape: f32[1,32], index: 14, kind: input, shape index: {}]   ;;  %s5748_s15 = inlined_call_operand.vmem [shape: f32[8,32], index: 15, kind: output, shape index: {}]  }
   0x1   :  { %21 = vsyncpa [#allocation5], 0 }
   0x2   :  { %22 = vsyncpa [#allocation8], 0 }
   0x3   :  { %23 = vsyncpa [#allocation11], 0 }
   0x4   :  { %24 = vsyncpa [#allocation14], 0 }
   0x5   :  { %25 = vsyncpa [#allocation17], 0 }
   0x6   :  { %26 = vsyncpa [#allocation20], 0 }
   0x7   :  { %27 = vsyncpa [#allocation23], 0  ;;  %s4634_s18 = smov [#allocation4]   ;;  %s4635_s20 = smov [#allocation7]  }
   0x8   :  { %s48_s19 = sshll.u32 %s4634_s18, 4  ;;  %s70_s21 = sshll.u32 %s4635_s20, 4  ;;  %s49_s19 = int_to_ptr.vmem [resolvable:$true] %s48_s19  ;;  %s71_s21 = int_to_ptr.vmem [resolvable:$true] %s70_s21 }
   0x9   :  { %s4310_s24 = scalar_lea.hbm %s5735_s2, 48 }
   0xa   :  { %p4311_p0 = scmp.ne.s32.totalorder %s5735_s2, %s4310_s24  ;;  %p4314_p1 = scmp.lt.u32.totalorder %s4310_s24, %s5735_s2 }
   0xc   :  { %p4316_p2 = pnand %p4314_p1, %p4311_p0 }
   0xe   :  { %4319 = shalt.err (!%p4316_p2)
}
   0xf   :  { %s4320_s29 = scalar_lea.vmem %s49_s19, 48  ;;  %s4324_s30 = scalar_lea.vmem %s49_s19, 64 }
  0x10   :  { %p4321_p3 = scmp.ne.s32.totalorder %s49_s19, %s4320_s29  ;;  %p4325_p4 = scmp.lt.s32.totalorder %s49_s19, %s49_s19 }
  0x11   :  { %p4326_p5 = scmp.lt.s32.totalorder %s4324_s30, %s4320_s29 }
  0x13   :  { %p4327_p6 = por %p4326_p5, %p4325_p4 }
  0x15   :  { %p4328_p7 = pnand %p4327_p6, %p4321_p3 }
  0x17   :  { %4331 = shalt.err (!%p4328_p7)
}
  0x18   :  { %51 = dma.hbm_to_vmem [thread:$0]  %s5735_s2, 48, %s49_s19, [#allocation5]  }
  0x19   :  { %s4332_s22 = scalar_lea.hbm %s5737_s4, 32 }
  0x1a   :  { %p4333_p8 = scmp.ne.s32.totalorder %s5737_s4, %s4332_s22  ;;  %p4336_p9 = scmp.lt.u32.totalorder %s4332_s22, %s5737_s4 }
  0x1c   :  { %p4338_p10 = pnand %p4336_p9, %p4333_p8 }
  0x1e   :  { %4341 = shalt.err (!%p4338_p10)
}
  0x1f   :  { %s4342_s27 = scalar_lea.vmem %s71_s21, 32  ;;  %p4347_p12 = scmp.lt.s32.totalorder %s71_s21, %s71_s21 }
  0x20   :  { %p4343_p11 = scmp.ne.s32.totalorder %s71_s21, %s4342_s27  ;;  %p4348_p13 = scmp.lt.s32.totalorder %s4342_s27, %s4342_s27 }
  0x22   :  { %p4349_p0 = por %p4348_p13, %p4347_p12 }
  0x24   :  { %p4350_p1 = pnand %p4349_p0, %p4343_p11 }
  0x26   :  { %4353 = shalt.err (!%p4350_p1)
}
  0x27   :  { %73 = dma.hbm_to_vmem [thread:$0]  %s5737_s4, 32, %s71_s21, [#allocation8]  }
  0x28   :  { %s4636_s28 = smov [#allocation10]   ;;  %s4637_s30 = smov [#allocation13]  }
  0x29   :  { %s92_s29 = sshll.u32 %s4636_s28, 4  ;;  %s114_s16 = sshll.u32 %s4637_s30, 4  ;;  %s93_s29 = int_to_ptr.vmem [resolvable:$true] %s92_s29  ;;  %s115_s16 = int_to_ptr.vmem [resolvable:$true] %s114_s16 }
  0x2a   :  { %s4354_s20 = scalar_lea.hbm %s5739_s6, 16 }
  0x2b   :  { %p4355_p2 = scmp.ne.s32.totalorder %s5739_s6, %s4354_s20  ;;  %p4358_p3 = scmp.lt.u32.totalorder %s4354_s20, %s5739_s6 }
  0x2d   :  { %p4360_p4 = pnand %p4358_p3, %p4355_p2 }
  0x2f   :  { %4363 = shalt.err (!%p4360_p4)
}
  0x30   :  { %s4364_s4 = scalar_lea.vmem %s93_s29, 16  ;;  %s4368_s21 = scalar_lea.vmem %s93_s29, 32 }
  0x31   :  { %p4365_p5 = scmp.ne.s32.totalorder %s93_s29, %s4364_s4  ;;  %p4369_p6 = scmp.lt.s32.totalorder %s93_s29, %s93_s29 }
  0x32   :  { %p4370_p7 = scmp.lt.s32.totalorder %s4368_s21, %s4364_s4 }
  0x34   :  { %p4371_p8 = por %p4370_p7, %p4369_p6 }
  0x36   :  { %p4372_p9 = pnand %p4371_p8, %p4365_p5 }
  0x38   :  { %4375 = shalt.err (!%p4372_p9)
}
  0x39   :  { %95 = dma.hbm_to_vmem [thread:$0]  %s5739_s6, 16, %s93_s29, [#allocation11]  }
  0x3a   :  { %s4376_s28 = scalar_lea.hbm %s5741_s8, 16 }
  0x3b   :  { %p4377_p10 = scmp.ne.s32.totalorder %s5741_s8, %s4376_s28  ;;  %p4380_p11 = scmp.lt.u32.totalorder %s4376_s28, %s5741_s8 }
  0x3d   :  { %p4382_p12 = pnand %p4380_p11, %p4377_p10 }
  0x3f   :  { %4385 = shalt.err (!%p4382_p12)
}
  0x40   :  { %s4386_s22 = scalar_lea.vmem %s115_s16, 16  ;;  %s4390_s23 = scalar_lea.vmem %s115_s16, 32 }
  0x41   :  { %p4387_p13 = scmp.ne.s32.totalorder %s115_s16, %s4386_s22  ;;  %p4391_p0 = scmp.lt.s32.totalorder %s115_s16, %s115_s16 }
  0x42   :  { %p4392_p1 = scmp.lt.s32.totalorder %s4390_s23, %s4386_s22 }
  0x44   :  { %p4393_p2 = por %p4392_p1, %p4391_p0 }
  0x46   :  { %p4394_p3 = pnand %p4393_p2, %p4387_p13 }
  0x48   :  { %4397 = shalt.err (!%p4394_p3)
}
  0x49   :  { %117 = dma.hbm_to_vmem [thread:$0]  %s5741_s8, 16, %s115_s16, [#allocation14]  }
  0x4a   :  { %s4638_s24 = smov [#allocation16]   ;;  %s4639_s4 = smov [#allocation19]  }
  0x4b   :  { %s136_s25 = sshll.u32 %s4638_s24, 4  ;;  %s158_s21 = sshll.u32 %s4639_s4, 4  ;;  %s137_s25 = int_to_ptr.vmem [resolvable:$true] %s136_s25  ;;  %s159_s21 = int_to_ptr.vmem [resolvable:$true] %s158_s21 }
  0x4c   :  { %s4398_s2 = scalar_lea.hbm %s5743_s10, 16 }
  0x4d   :  { %p4399_p4 = scmp.ne.s32.totalorder %s5743_s10, %s4398_s2  ;;  %p4402_p5 = scmp.lt.u32.totalorder %s4398_s2, %s5743_s10 }
  0x4f   :  { %p4404_p6 = pnand %p4402_p5, %p4399_p4 }
  0x51   :  { %4407 = shalt.err (!%p4404_p6)
}
  0x52   :  { %s4408_s8 = scalar_lea.vmem %s137_s25, 16  ;;  %s4412_s16 = scalar_lea.vmem %s137_s25, 32 }
  0x53   :  { %p4409_p7 = scmp.ne.s32.totalorder %s137_s25, %s4408_s8  ;;  %p4413_p8 = scmp.lt.s32.totalorder %s137_s25, %s137_s25 }
  0x54   :  { %p4414_p9 = scmp.lt.s32.totalorder %s4412_s16, %s4408_s8 }
  0x56   :  { %p4415_p10 = por %p4414_p9, %p4413_p8 }
  0x58   :  { %p4416_p11 = pnand %p4415_p10, %p4409_p7 }
  0x5a   :  { %4419 = shalt.err (!%p4416_p11)
}
  0x5b   :  { %139 = dma.hbm_to_vmem [thread:$0]  %s5743_s10, 16, %s137_s25, [#allocation17]  }
  0x5c   :  { %s4420_s6 = scalar_lea.hbm %s5745_s12, 16 }
  0x5d   :  { %p4421_p12 = scmp.ne.s32.totalorder %s5745_s12, %s4420_s6  ;;  %p4424_p13 = scmp.lt.u32.totalorder %s4420_s6, %s5745_s12 }
  0x5f   :  { %p4426_p0 = pnand %p4424_p13, %p4421_p12 }
  0x61   :  { %4429 = shalt.err (!%p4426_p0)
}
  0x62   :  { %s4430_s27 = scalar_lea.vmem %s159_s21, 16  ;;  %s4434_s2 = scalar_lea.vmem %s159_s21, 32 }
  0x63   :  { %p4431_p1 = scmp.ne.s32.totalorder %s159_s21, %s4430_s27  ;;  %p4435_p2 = scmp.lt.s32.totalorder %s159_s21, %s159_s21 }
  0x64   :  { %p4436_p3 = scmp.lt.s32.totalorder %s4434_s2, %s4430_s27 }
  0x66   :  { %p4437_p4 = por %p4436_p3, %p4435_p2 }
  0x68   :  { %p4438_p5 = pnand %p4437_p4, %p4431_p1 }
  0x6a   :  { %4441 = shalt.err (!%p4438_p5)
}
  0x6b   :  { %161 = dma.hbm_to_vmem [thread:$0]  %s5745_s12, 16, %s159_s21, [#allocation20]  }
  0x6c   :  { %s4640_s19 = smov [#allocation2]   ;;  %s4442_s8 = scalar_lea.hbm %s5734_s1, 18432 }
  0x6d   :  { %s35_s28 = sshll.u32 %s4640_s19, 4  ;;  %p4443_p6 = scmp.ne.s32.totalorder %s5734_s1, %s4442_s8  ;;  %s36_s28 = int_to_ptr.vmem [resolvable:$true] %s35_s28 }
  0x6e   :  { %p4446_p7 = scmp.lt.u32.totalorder %s4442_s8, %s5734_s1 }
  0x70   :  { %p4448_p8 = pnand %p4446_p7, %p4443_p6 }
  0x72   :  { %4451 = shalt.err (!%p4448_p8)
}
  0x73   :  { %s4452_s23 = scalar_lea.vmem %s36_s28, 18432  ;;  %p4457_p10 = scmp.lt.s32.totalorder %s36_s28, %s36_s28 }
  0x74   :  { %p4453_p9 = scmp.ne.s32.totalorder %s36_s28, %s4452_s23  ;;  %p4458_p11 = scmp.lt.s32.totalorder %s4452_s23, %s4452_s23 }
  0x76   :  { %p4459_p12 = por %p4458_p11, %p4457_p10 }
  0x78   :  { %p4460_p13 = pnand %p4459_p12, %p4453_p9 }
  0x7a   :  { %4463 = shalt.err (!%p4460_p13)
}
  0x7b   :  { %s4641_s12 = smov 384   ;;  %s4642_s21 = smov 24  }
  0x7c   :  { %41 = dma.hbm_to_vmem [thread:$0]  %s5734_s1, 18432, %s36_s28, [#allocation3], %s4641_s12, %s4641_s12, %s4642_s21  }
  0x7d   :  { %s4643_s24 = smov [#allocation6]   ;;  %s4464_s2 = scalar_lea.hbm %s5736_s3, 45056 }
  0x7e   :  { %s57_s4 = sshll.u32 %s4643_s24, 4  ;;  %p4465_p0 = scmp.ne.s32.totalorder %s5736_s3, %s4464_s2  ;;  %s58_s4 = int_to_ptr.vmem [resolvable:$true] %s57_s4 }
  0x7f   :  { %p4468_p1 = scmp.lt.u32.totalorder %s4464_s2, %s5736_s3 }
  0x81   :  { %p4470_p2 = pnand %p4468_p1, %p4465_p0 }
  0x83   :  { %4473 = shalt.err (!%p4470_p2)
}
  0x84   :  { %s4474_s17 = scalar_lea.vmem %s58_s4, 45056  ;;  %p4479_p4 = scmp.lt.s32.totalorder %s58_s4, %s58_s4 }
  0x85   :  { %p4475_p3 = scmp.ne.s32.totalorder %s58_s4, %s4474_s17  ;;  %p4480_p5 = scmp.lt.s32.totalorder %s4474_s17, %s4474_s17 }
  0x87   :  { %p4481_p6 = por %p4480_p5, %p4479_p4 }
  0x89   :  { %p4482_p7 = pnand %p4481_p6, %p4475_p3 }
  0x8b   :  { %4485 = shalt.err (!%p4482_p7)
}
  0x8c   :  { %s4644_s1 = smov 256   ;;  %s4645_s28 = smov 16  }
  0x8d   :  { %63 = dma.hbm_to_vmem [thread:$0]  %s5736_s3, 45056, %s58_s4, [#allocation5], %s4644_s1, %s4644_s1, %s4645_s28  }
  0x8e   :  { %s4646_s18 = smov [#allocation9]   ;;  %s4486_s12 = scalar_lea.hbm %s5738_s5, 12288 }
  0x8f   :  { %s79_s20 = sshll.u32 %s4646_s18, 4  ;;  %p4487_p8 = scmp.ne.s32.totalorder %s5738_s5, %s4486_s12  ;;  %s80_s20 = int_to_ptr.vmem [resolvable:$true] %s79_s20 }
  0x90   :  { %p4490_p9 = scmp.lt.u32.totalorder %s4486_s12, %s5738_s5 }
  0x92   :  { %p4492_p10 = pnand %p4490_p9, %p4487_p8 }
  0x94   :  { %4495 = shalt.err (!%p4492_p10)
}
  0x95   :  { %s4496_s26 = scalar_lea.vmem %s80_s20, 12288  ;;  %p4501_p12 = scmp.lt.s32.totalorder %s80_s20, %s80_s20 }
  0x96   :  { %p4497_p11 = scmp.ne.s32.totalorder %s80_s20, %s4496_s26  ;;  %p4502_p13 = scmp.lt.s32.totalorder %s4496_s26, %s4496_s26 }
  0x98   :  { %p4503_p0 = por %p4502_p13, %p4501_p12 }
  0x9a   :  { %p4504_p1 = pnand %p4503_p0, %p4497_p11 }
  0x9c   :  { %4507 = shalt.err (!%p4504_p1)
}
  0x9d   :  { %s4647_s3 = smov 128   ;;  %s4648_s4 = smov 8  }
  0x9e   :  { %85 = dma.hbm_to_vmem [thread:$0]  %s5738_s5, 12288, %s80_s20, [#allocation8], %s4647_s3, %s4647_s3, %s4648_s4  }
  0x9f   :  { %s4649_s10 = smov [#allocation12]   ;;  %s4650_s19 = smov [#allocation15]  }
  0xa0   :  { %s101_s25 = sshll.u32 %s4649_s10, 4  ;;  %s123_s30 = sshll.u32 %s4650_s19, 4  ;;  %s102_s25 = int_to_ptr.vmem [resolvable:$true] %s101_s25  ;;  %s124_s30 = int_to_ptr.vmem [resolvable:$true] %s123_s30 }
  0xa1   :  { %s4508_s28 = scalar_lea.hbm %s5740_s7, 2048 }
  0xa2   :  { %p4509_p2 = scmp.ne.s32.totalorder %s5740_s7, %s4508_s28  ;;  %p4512_p3 = scmp.lt.u32.totalorder %s4508_s28, %s5740_s7 }
  0xa4   :  { %p4514_p4 = pnand %p4512_p3, %p4509_p2 }
  0xa6   :  { %4517 = shalt.err (!%p4514_p4)
}
  0xa7   :  { %s4518_s5 = scalar_lea.vmem %s102_s25, 2048  ;;  %p4523_p6 = scmp.lt.s32.totalorder %s102_s25, %s102_s25 }
  0xa8   :  { %p4519_p5 = scmp.ne.s32.totalorder %s102_s25, %s4518_s5  ;;  %p4524_p7 = scmp.lt.s32.totalorder %s4518_s5, %s4518_s5 }
  0xaa   :  { %p4525_p8 = por %p4524_p7, %p4523_p6 }
  0xac   :  { %p4526_p9 = pnand %p4525_p8, %p4519_p5 }
  0xae   :  { %4529 = shalt.err (!%p4526_p9)
}
  0xaf   :  { %107 = dma.hbm_to_vmem [thread:$0]  %s5740_s7, 2048, %s102_s25, [#allocation11], %s4647_s3, %s4647_s3, %s4648_s4  }
  0xb0   :  { %s4530_s6 = scalar_lea.hbm %s5742_s9, 1280 }
  0xb1   :  { %p4531_p10 = scmp.ne.s32.totalorder %s5742_s9, %s4530_s6  ;;  %p4534_p11 = scmp.lt.u32.totalorder %s4530_s6, %s5742_s9 }
  0xb3   :  { %p4536_p12 = pnand %p4534_p11, %p4531_p10 }
  0xb5   :  { %4539 = shalt.err (!%p4536_p12)
}
  0xb6   :  { %s4540_s2 = scalar_lea.vmem %s124_s30, 1280  ;;  %p4545_p0 = scmp.lt.s32.totalorder %s124_s30, %s124_s30 }
  0xb7   :  { %p4541_p13 = scmp.ne.s32.totalorder %s124_s30, %s4540_s2  ;;  %p4546_p1 = scmp.lt.s32.totalorder %s4540_s2, %s4540_s2 }
  0xb9   :  { %p4547_p2 = por %p4546_p1, %p4545_p0 }
  0xbb   :  { %p4548_p3 = pnand %p4547_p2, %p4541_p13 }
  0xbd   :  { %4551 = shalt.err (!%p4548_p3)
}
  0xbe   :  { %129 = dma.hbm_to_vmem [thread:$0]  %s5742_s9, 1280, %s124_s30, [#allocation14], %s4647_s3, %s4647_s3, %s4648_s4  }
  0xbf   :  { %s4651_s25 = smov [#allocation18]   ;;  %s4652_s17 = smov [#allocation21]  }
  0xc0   :  { %s145_s19 = sshll.u32 %s4651_s25, 4  ;;  %s167_s1 = sshll.u32 %s4652_s17, 4  ;;  %s146_s19 = int_to_ptr.vmem [resolvable:$true] %s145_s19  ;;  %s168_s1 = int_to_ptr.vmem [resolvable:$true] %s167_s1 }
  0xc1   :  { %s4552_s16 = scalar_lea.hbm %s5744_s11, 1024 }
  0xc2   :  { %p4553_p4 = scmp.ne.s32.totalorder %s5744_s11, %s4552_s16  ;;  %p4556_p5 = scmp.lt.u32.totalorder %s4552_s16, %s5744_s11 }
  0xc4   :  { %p4558_p6 = pnand %p4556_p5, %p4553_p4 }
  0xc6   :  { %4561 = shalt.err (!%p4558_p6)
}
  0xc7   :  { %s4562_s9 = scalar_lea.vmem %s146_s19, 1024  ;;  %p4567_p8 = scmp.lt.s32.totalorder %s146_s19, %s146_s19 }
  0xc8   :  { %p4563_p7 = scmp.ne.s32.totalorder %s146_s19, %s4562_s9  ;;  %p4568_p9 = scmp.lt.s32.totalorder %s4562_s9, %s4562_s9 }
  0xca   :  { %p4569_p10 = por %p4568_p9, %p4567_p8 }
  0xcc   :  { %p4570_p11 = pnand %p4569_p10, %p4563_p7 }
  0xce   :  { %4573 = shalt.err (!%p4570_p11)
}
  0xcf   :  { %151 = dma.hbm_to_vmem [thread:$0]  %s5744_s11, 1024, %s146_s19, [#allocation17], %s4647_s3, %s4647_s3, %s4648_s4  }
  0xd0   :  { %s4574_s6 = scalar_lea.hbm %s5746_s13, 1024 }
  0xd1   :  { %p4575_p12 = scmp.ne.s32.totalorder %s5746_s13, %s4574_s6  ;;  %p4578_p13 = scmp.lt.u32.totalorder %s4574_s6, %s5746_s13 }
  0xd3   :  { %p4580_p0 = pnand %p4578_p13, %p4575_p12 }
  0xd5   :  { %4583 = shalt.err (!%p4580_p0)
}
  0xd6   :  { %s4584_s2 = scalar_lea.vmem %s168_s1, 1024  ;;  %p4589_p2 = scmp.lt.s32.totalorder %s168_s1, %s168_s1 }
  0xd7   :  { %p4585_p1 = scmp.ne.s32.totalorder %s168_s1, %s4584_s2  ;;  %p4590_p3 = scmp.lt.s32.totalorder %s4584_s2, %s4584_s2 }
  0xd9   :  { %p4591_p4 = por %p4590_p3, %p4589_p2 }
  0xdb   :  { %p4592_p5 = pnand %p4591_p4, %p4585_p1 }
  0xdd   :  { %4595 = shalt.err (!%p4592_p5)
}
  0xde   :  { %173 = dma.hbm_to_vmem [thread:$0]  %s5746_s13, 1024, %s168_s1, [#allocation20], %s4647_s3, %s4647_s3, %s4648_s4  }
  0xdf   :  { %s4653_s10 = smov [#allocation22]   ;;  %s4596_s28 = scalar_lea.hbm %s5747_s14, 16 }
  0xe0   :  { %s180_s25 = sshll.u32 %s4653_s10, 4  ;;  %p4597_p6 = scmp.ne.s32.totalorder %s5747_s14, %s4596_s28  ;;  %s181_s25 = int_to_ptr.vmem [resolvable:$true] %s180_s25 }
  0xe1   :  { %p4600_p7 = scmp.lt.u32.totalorder %s4596_s28, %s5747_s14 }
  0xe3   :  { %p4602_p8 = pnand %p4600_p7, %p4597_p6 }
  0xe5   :  { %4605 = shalt.err (!%p4602_p8)
}
  0xe6   :  { %s4606_s5 = scalar_lea.vmem %s181_s25, 16  ;;  %s4610_s13 = scalar_lea.vmem %s181_s25, 32 }
  0xe7   :  { %p4607_p9 = scmp.ne.s32.totalorder %s181_s25, %s4606_s5  ;;  %p4611_p10 = scmp.lt.s32.totalorder %s181_s25, %s181_s25 }
  0xe8   :  { %p4612_p11 = scmp.lt.s32.totalorder %s4610_s13, %s4606_s5 }
  0xea   :  { %p4613_p12 = por %p4612_p11, %p4611_p10 }
  0xec   :  { %p4614_p13 = pnand %p4613_p12, %p4607_p9 }
  0xee   :  { %4617 = shalt.err (!%p4614_p13)
}
  0xef   :  { %183 = dma.hbm_to_vmem [thread:$0]  %s5747_s14, 16, %s181_s25, [#allocation23]  }
  0xf0   :  { %4618 = dma.done.wait [#allocation3], 18432  }
  0xf1   :  { %4619 = vsyncadd [#allocation3], 4294948864 }
  0xf2   :  { %4620 = dma.done.wait [#allocation5], 45104  }
  0xf3   :  { %4621 = vsyncadd [#allocation5], 4294922192 }
  0xf4   :  { %4622 = dma.done.wait [#allocation8], 12320  }
  0xf5   :  { %4623 = vsyncadd [#allocation8], 4294954976 }
  0xf6   :  { %4624 = dma.done.wait [#allocation11], 2064  }
  0xf7   :  { %4625 = vsyncadd [#allocation11], 4294965232 }
  0xf8   :  { %4626 = dma.done.wait [#allocation14], 1296  }
  0xf9   :  { %4627 = vsyncadd [#allocation14], 4294966000 }
  0xfa   :  { %4628 = dma.done.wait [#allocation17], 1040  }
  0xfb   :  { %4629 = vsyncadd [#allocation17], 4294966256 }
  0xfc   :  { %4630 = dma.done.wait [#allocation20], 1040  }
  0xfd   :  { %4631 = vsyncadd [#allocation20], 4294966256 }
  0xfe   :  { %4632 = dma.done.wait [#allocation23], 16  }
  0xff   :  { %4633 = vsyncadd [#allocation23], 4294967280  ;;  %v228_v0 = vld [vmem:[%s5733_s0 + $0x18] sm:$0xff]  ;;  %v4930_v1 = vld [vmem:[%s5733_s0 + $0x20] sm:$0xff]  ;;  %s4654_s11 = smov 64   ;;  %s4655_s30 = smov 21  }
 0x100   :  { %v4145_v2 = vpack.i.bf16 %v4930_v1, %v228_v0  ;;  %v4936_v3 = vld [vmem:[%s5733_s0 + $0x30] sm:$0xff]  ;;  %v4941_v4 = vld [vmem:[%s5733_s0 + $0x38] sm:$0xff]  ;;  %v4946_v5 = vld [vmem:[%s5733_s0 + $0x28] sm:$0xff]  ;;  %vm257_vm0 = vcmask 523264   ;;  %vm551_vm1 = vcmask 171008   ;;  %vm4658_vm2 = vmmov 0  }
 0x101   :  { %v4150_v6 = vpack.i.bf16 %v4941_v4, %v4936_v3  ;;  %v4185_v7 = vpack.i.bf16 %v4936_v3, %v4946_v5  ;;  %v4955_v8 = vld [vmem:[%s5733_s0 + $0x40] sm:$0xff]  ;;  %v4960_v9 = vld [vmem:[%s5733_s0 + $0x48] sm:$0xff]  ;;  %v4968_v11 = vld [vmem:[%s5733_s0 + $0x58] sm:$0xff]  ;;  %s4659_s26 = smov 96   ;;  %s4660_s27 = smov 32   ;;  %vm1153_vm3 = vcmask 785408  }
 0x102   :  { %4146 = vrot.lane.b32.xlu0 %v4145_v2, %s4654_s11  ;;  %v4200_v10 = vpack.i.bf16 %v4960_v9, %v4955_v8  ;;  %v4973_v12 = vld [vmem:[%s5733_s0 + $0x60] sm:$0xff]  ;;  %v4979_v13 = vld [vmem:[%s5733_s0 + $0x50] sm:$0xff]  ;;  %v4991_v16 = vld [vmem:[%s5733_s0 + $0x78] sm:$0xff]  ;;  %vm1184_vm4 = vcmask 261120   ;;  %vm2681_vm5 = vcmask 654336  }
 0x103   :  { %4151 = vrot.lane.b32.xlu1 %v4150_v6, %s4654_s11  ;;  %v4215_v14 = vpack.i.bf16 %v4973_v12, %v4968_v11  ;;  %v4986_v15 = vld [vmem:[%s5733_s0 + $0x70] sm:$0xff]  ;;  %v4155_v18 = vpack.i.bf16 %v4979_v13, %v4960_v9  ;;  %v5004_v19 = vld [vmem:[%s5733_s0 + $0x68] sm:$0xff]  ;;  %v5014_v21 = vld [vmem:[%s5733_s0 + $0x80] sm:$0xff] }
 0x104   :  { %v4230_v17 = vpack.i.bf16 %v4991_v16, %v4986_v15  ;;  %v4160_v20 = vpack.i.bf16 %v5004_v19, %v4973_v12  ;;  %v4165_v22 = vpack.i.bf16 %v5014_v21, %v4991_v16  ;;  %v227_v23 = vld [vmem:[%s5733_s0 + $0x10] sm:$0xff]  ;;  %v5027_v24 = vld [vmem:[%s5733_s0 + $0x88] sm:$0xff]  ;;  %v313_v27 = vld [vmem:[#allocation2 + $0x20] sm:$0xff] }
 0x105   :  { %v4170_v25 = vpack.i.bf16 %v228_v0, %v227_v23  ;;  %v310_v26 = vld [vmem:[#allocation2 + $0x8] sm:$0xff]  ;;  %v309_v28 = vld [vmem:[#allocation2] sm:$0xff]  ;;  %v312_v30 = vld [vmem:[#allocation2 + $0x18] sm:$0xff] }
 0x106   :  { %253 = vrot.lane.b32.xlu0 %v4946_v5, %s4654_s11  ;;  %v3367_v29 = vpack.c.bf16 %v313_v27, %v310_v26  ;;  %v316_v31 = vld [vmem:[#allocation2 + $0x38] sm:$0xff]  ;;  %v319_v32 = vld [vmem:[#allocation2 + $0x50] sm:$0xff]  ;;  %v3369_v33 = vpack.c.bf16 %v312_v30, %v309_v28  ;;  %v318_v36 = vld [vmem:[#allocation2 + $0x48] sm:$0xff] }
 0x107   :  { %266 = vrot.lane.b32.xlu1 %v4955_v8, %s4654_s11  ;;  %v3371_v34 = vpack.c.bf16 %v319_v32, %v316_v31  ;;  %v315_v35 = vld [vmem:[#allocation2 + $0x30] sm:$0xff]  ;;  %v322_v37 = vld [vmem:[#allocation2 + $0x68] sm:$0xff]  ;;  %v325_v38 = vld [vmem:[#allocation2 + $0x80] sm:$0xff] }
 0x108   :  { %3368 = vmatprep.subr.bf16.mxu0 %v3367_v29  ;;  %v3373_v39 = vpack.c.bf16 %v318_v36, %v315_v35  ;;  %v3375_v40 = vpack.c.bf16 %v325_v38, %v322_v37  ;;  %v321_v41 = vld [vmem:[#allocation2 + $0x60] sm:$0xff]  ;;  %v324_v42 = vld [vmem:[#allocation2 + $0x78] sm:$0xff]  ;;  %v331_v44 = vld [vmem:[#allocation2 + $0xb0] sm:$0xff] }
 0x109   :  { %3370 = vmatpush1.bf16.msra.mxu0 %v3369_v33  ;;  %v328_v43 = vld [vmem:[#allocation2 + $0x98] sm:$0xff]  ;;  %v3377_v45 = vpack.c.bf16 %v324_v42, %v321_v41  ;;  %v327_v47 = vld [vmem:[#allocation2 + $0x90] sm:$0xff]  ;;  %v330_v48 = vld [vmem:[#allocation2 + $0xa8] sm:$0xff] }
 0x10a   :  { %4156 = vrot.lane.b32.xlu0 %v4155_v18, %s4654_s11  ;;  %3372 = vmatprep.subr.bf16.mxu0 %v3371_v34  ;;  %v3379_v46 = vpack.c.bf16 %v331_v44, %v328_v43  ;;  %v334_v49 = vld [vmem:[#allocation2 + $0xc8] sm:$0xff]  ;;  %v337_v50 = vld [vmem:[#allocation2 + $0xe0] sm:$0xff]  ;;  %v3381_v51 = vpack.c.bf16 %v330_v48, %v327_v47  ;;  %v359_v52 = vld [vmem:[#allocation2 + $0x190] sm:$0xff] }
 0x10b   :  { %278 = vrot.lane.b32.xlu1 %v4968_v11, %s4654_s11  ;;  %v362_v53 = vld [vmem:[#allocation2 + $0x1a8] sm:$0xff]  ;;  %v311_v54 = vld [vmem:[#allocation2 + $0x10] sm:$0xff]  ;;  %v3383_v55 = vpack.c.bf16 %v337_v50, %v334_v49  ;;  %v333_v56 = vld [vmem:[#allocation2 + $0xc0] sm:$0xff] }
 0x10c   :  { %v336_v57 = vld [vmem:[#allocation2 + $0xd8] sm:$0xff]  ;;  %v3463_v58 = vpack.c.bf16 %v362_v53, %v359_v52  ;;  %v314_v59 = vld [vmem:[#allocation2 + $0x28] sm:$0xff]  ;;  %v343_v61 = vld [vmem:[#allocation2 + $0x110] sm:$0xff] }
 0x10d   :  { %3374 = vmatpush1.bf16.msra.mxu0 %v3373_v39  ;;  %v340_v60 = vld [vmem:[#allocation2 + $0xf8] sm:$0xff]  ;;  %v3465_v62 = vpack.c.bf16 %v314_v59, %v311_v54  ;;  %v365_v63 = vld [vmem:[#allocation2 + $0x1c0] sm:$0xff]  ;;  %v3385_v18 = vpack.c.bf16 %v336_v57, %v333_v56  ;;  %v346_v27 = vld [vmem:[#allocation2 + $0x128] sm:$0xff] }
 0x10e   :  { %4161 = vrot.lane.b32.xlu0 %v4160_v20, %s4654_s11  ;;  %3376 = vmatprep.subr.bf16.mxu0 %v3375_v40  ;;  %v368_v0 = vld [vmem:[#allocation2 + $0x1d8] sm:$0xff]  ;;  %v317_v2 = vld [vmem:[#allocation2 + $0x40] sm:$0xff]  ;;  %v339_v20 = vld [vmem:[#allocation2 + $0xf0] sm:$0xff]  ;;  %v3387_v26 = vpack.c.bf16 %v343_v61, %v340_v60 }
 0x10f   :  { %290 = vrot.lane.b32.xlu1 %v4986_v15, %s4654_s11  ;;  %3464 = vmatprep.subr.bf16.mxu1 %v3463_v58  ;;  %v320_v6 = vld [vmem:[#allocation2 + $0x58] sm:$0xff]  ;;  %v3467_v23 = vpack.c.bf16 %v368_v0, %v365_v63  ;;  %v371_v28 = vld [vmem:[#allocation2 + $0x1f0] sm:$0xff]  ;;  %v374_v29 = vld [vmem:[#allocation2 + $0x208] sm:$0xff] }
 0x110   :  { %3466 = vmatpush3.bf16.msra.mxu1 %v3465_v62  ;;  %v349_v30 = vld [vmem:[#allocation2 + $0x140] sm:$0xff]  ;;  %v3471_v31 = vpack.c.bf16 %v374_v29, %v371_v28  ;;  %v323_v32 = vld [vmem:[#allocation2 + $0x70] sm:$0xff]  ;;  %v326_v33 = vld [vmem:[#allocation2 + $0x88] sm:$0xff] }
 0x111   :  { %3378 = vmatpush1.bf16.msra.mxu0 %v3377_v45  ;;  %3468 = vmatprep.subr.bf16.mxu1 %v3467_v23  ;;  %v345_v35 = vld [vmem:[#allocation2 + $0x120] sm:$0xff]  ;;  %v3473_v36 = vpack.c.bf16 %v326_v33, %v323_v32  ;;  %v380_v38 = vld [vmem:[#allocation2 + $0x238] sm:$0xff]  ;;  %v3391_v39 = vpack.c.bf16 %v349_v30, %v346_v27  ;;  %v355_v45 = vld [vmem:[#allocation2 + $0x170] sm:$0xff] }
 0x112   :  { %4166 = vrot.lane.b32.xlu0 %v4165_v22, %s4654_s11  ;;  %3380 = vmatprep.subr.bf16.mxu0 %v3379_v46  ;;  %v342_v22 = vld [vmem:[#allocation2 + $0x108] sm:$0xff]  ;;  %v377_v37 = vld [vmem:[#allocation2 + $0x220] sm:$0xff]  ;;  %v348_v40 = vld [vmem:[#allocation2 + $0x138] sm:$0xff] }
 0x113   :  { %302 = vrot.lane.b32.xlu1 %v5027_v24, %s4654_s11  ;;  %v3389_v34 = vpack.c.bf16 %v342_v22, %v339_v20  ;;  %v3475_v41 = vpack.c.bf16 %v380_v38, %v377_v37  ;;  %v329_v42 = vld [vmem:[#allocation2 + $0xa0] sm:$0xff]  ;;  %v332_v43 = vld [vmem:[#allocation2 + $0xb8] sm:$0xff]  ;;  %v383_v46 = vld [vmem:[#allocation2 + $0x250] sm:$0xff]  ;;  %v3393_v48 = vpack.c.bf16 %v348_v40, %v345_v35 }
 0x114   :  { %v352_v44 = vld [vmem:[#allocation2 + $0x158] sm:$0xff]  ;;  %v386_v47 = vld [vmem:[#allocation2 + $0x268] sm:$0xff]  ;;  %v351_v49 = vld [vmem:[#allocation2 + $0x150] sm:$0xff] }
 0x115   :  { %3382 = vmatpush1.bf16.msra.mxu0 %v3381_v51  ;;  %v354_v50 = vld [vmem:[#allocation2 + $0x168] sm:$0xff]  ;;  %v3477_v51 = vpack.c.bf16 %v332_v43, %v329_v42  ;;  %v3395_v52 = vpack.c.bf16 %v355_v45, %v352_v44  ;;  %v3479_v54 = vpack.c.bf16 %v386_v47, %v383_v46  ;;  %v361_v57 = vld [vmem:[#allocation2 + $0x1a0] sm:$0xff]  ;;  %v392_v59 = vld [vmem:[#allocation2 + $0x298] sm:$0xff] }
 0x116   :  { %4171 = vrot.lane.b32.xlu0 %v4170_v25, %s4655_s30  ;;  %v3469_v25 = vpack.c.bf16 %v320_v6, %v317_v2  ;;  %3384 = vmatprep.subr.bf16.mxu0 %v3383_v55  ;;  %v358_v53 = vld [vmem:[#allocation2 + $0x188] sm:$0xff]  ;;  %v335_v55 = vld [vmem:[#allocation2 + $0xd0] sm:$0xff]  ;;  %v389_v58 = vld [vmem:[#allocation2 + $0x280] sm:$0xff]  ;;  %v3397_v60 = vpack.c.bf16 %v354_v50, %v351_v49 }
 0x117   :  { %v338_v56 = vld [vmem:[#allocation2 + $0xe8] sm:$0xff]  ;;  %v357_v61 = vld [vmem:[#allocation2 + $0x180] sm:$0xff]  ;;  %v360_v62 = vld [vmem:[#allocation2 + $0x198] sm:$0xff]  ;;  %v3399_v0 = vpack.c.bf16 %v361_v57, %v358_v53  ;;  %v3483_v6 = vpack.c.bf16 %v392_v59, %v389_v58 }
 0x118   :  { %3470 = vmatpush3.bf16.msra.mxu1 %v3469_v25  ;;  %v3481_v63 = vpack.c.bf16 %v338_v56, %v335_v55  ;;  %v364_v2 = vld [vmem:[#allocation2 + $0x1b8] sm:$0xff]  ;;  %v367_v22 = vld [vmem:[#allocation2 + $0x1d0] sm:$0xff]  ;;  %v398_v25 = vld [vmem:[#allocation2 + $0x2c8] sm:$0xff] }
 0x119   :  { %3386 = vmatpush1.bf16.msra.mxu0 %v3385_v18  ;;  %3472 = vmatprep.subr.bf16.mxu1 %v3471_v31  ;;  %v341_v18 = vld [vmem:[#allocation2 + $0x100] sm:$0xff]  ;;  %v344_v20 = vld [vmem:[#allocation2 + $0x118] sm:$0xff]  ;;  %v395_v23 = vld [vmem:[#allocation2 + $0x2b0] sm:$0xff]  ;;  %v3403_v30 = vpack.c.bf16 %v367_v22, %v364_v2 }
 0x11a   :  { %3388 = vmatprep.subr.bf16.mxu0 %v3387_v26  ;;  %v3401_v26 = vpack.c.bf16 %v360_v62, %v357_v61  ;;  %v363_v27 = vld [vmem:[#allocation2 + $0x1b0] sm:$0xff]  ;;  %v366_v28 = vld [vmem:[#allocation2 + $0x1c8] sm:$0xff]  ;;  %v3485_v29 = vpack.c.bf16 %v344_v20, %v341_v18  ;;  %v3487_v32 = vpack.c.bf16 %v398_v25, %v395_v23  ;;  %v373_v35 = vld [vmem:[#allocation2 + $0x200] sm:$0xff] }
 0x11b   :  { %v370_v31 = vld [vmem:[#allocation2 + $0x1e8] sm:$0xff]  ;;  %v347_v33 = vld [vmem:[#allocation2 + $0x130] sm:$0xff]  ;;  %v404_v37 = vld [vmem:[#allocation2 + $0x2f8] sm:$0xff]  ;;  %v3405_v38 = vpack.c.bf16 %v366_v28, %v363_v27 }
 0x11c   :  { %3474 = vmatpush3.bf16.msra.mxu1 %v3473_v36  ;;  %v401_v36 = vld [vmem:[#allocation2 + $0x2e0] sm:$0xff]  ;;  %v3407_v40 = vpack.c.bf16 %v373_v35, %v370_v31  ;;  %v372_v42 = vld [vmem:[#allocation2 + $0x1f8] sm:$0xff]  ;;  %v379_v45 = vld [vmem:[#allocation2 + $0x230] sm:$0xff] }
 0x11d   :  { %3390 = vmatpush1.bf16.msra.mxu0 %v3389_v34  ;;  %3476 = vmatprep.subr.bf16.mxu1 %v3475_v41  ;;  %v350_v34 = vld [vmem:[#allocation2 + $0x148] sm:$0xff]  ;;  %v369_v41 = vld [vmem:[#allocation2 + $0x1e0] sm:$0xff]  ;;  %v3491_v43 = vpack.c.bf16 %v404_v37, %v401_v36  ;;  %v376_v44 = vld [vmem:[#allocation2 + $0x218] sm:$0xff] }
 0x11e   :  { %3392 = vmatprep.subr.bf16.mxu0 %v3391_v39  ;;  %v3489_v39 = vpack.c.bf16 %v350_v34, %v347_v33  ;;  %v3409_v46 = vpack.c.bf16 %v372_v42, %v369_v41  ;;  %v3411_v47 = vpack.c.bf16 %v379_v45, %v376_v44  ;;  %v378_v49 = vld [vmem:[#allocation2 + $0x228] sm:$0xff]  ;;  %v384_v55 = vld [vmem:[#allocation2 + $0x258] sm:$0xff]  ;;  %v391_v57 = vld [vmem:[#allocation2 + $0x290] sm:$0xff] }
 0x11f   :  { %v382_v50 = vld [vmem:[#allocation2 + $0x248] sm:$0xff]  ;;  %v388_v56 = vld [vmem:[#allocation2 + $0x278] sm:$0xff]  ;;  %v403_v22 = vld [vmem:[#allocation2 + $0x2f0] sm:$0xff] }
 0x120   :  { %3478 = vmatpush3.bf16.msra.mxu1 %v3477_v51  ;;  %v385_v51 = vld [vmem:[#allocation2 + $0x260] sm:$0xff]  ;;  %v3419_v59 = vpack.c.bf16 %v391_v57, %v388_v56  ;;  %v390_v61 = vld [vmem:[#allocation2 + $0x288] sm:$0xff]  ;;  %v396_v18 = vld [vmem:[#allocation2 + $0x2b8] sm:$0xff] }
 0x121   :  { %3394 = vmatpush1.bf16.msra.mxu0 %v3393_v48  ;;  %3480 = vmatprep.subr.bf16.mxu1 %v3479_v54  ;;  %v375_v48 = vld [vmem:[#allocation2 + $0x210] sm:$0xff]  ;;  %v3415_v53 = vpack.c.bf16 %v385_v51, %v382_v50  ;;  %v381_v54 = vld [vmem:[#allocation2 + $0x240] sm:$0xff]  ;;  %v394_v62 = vld [vmem:[#allocation2 + $0x2a8] sm:$0xff] }
 0x122   :  { %3396 = vmatprep.subr.bf16.mxu0 %v3395_v52  ;;  %v3413_v52 = vpack.c.bf16 %v378_v49, %v375_v48  ;;  %v3417_v58 = vpack.c.bf16 %v384_v55, %v381_v54  ;;  %v400_v20 = vld [vmem:[#allocation2 + $0x2d8] sm:$0xff]  ;;  %v402_v27 = vld [vmem:[#allocation2 + $0x2e8] sm:$0xff]  ;;  %v409_v33 = vld [vmem:[#allocation2 + $0x320] sm:$0xff] }
 0x123   :  { %v3427_v25 = vpack.c.bf16 %v403_v22, %v400_v20  ;;  %v243_v12 = vld [vmem:[%s5733_s0 + $0x90] sm:$0xff] }
 0x124   :  { %3482 = vmatpush3.bf16.msra.mxu1 %v3481_v63  ;;  %v397_v63 = vld [vmem:[#allocation2 + $0x2c0] sm:$0xff] }
 0x125   :  { %3398 = vmatpush1.bf16.msra.mxu0 %v3397_v60  ;;  %3484 = vmatprep.subr.bf16.mxu1 %v3483_v6  ;;  %v387_v60 = vld [vmem:[#allocation2 + $0x270] sm:$0xff]  ;;  %v3423_v2 = vpack.c.bf16 %v397_v63, %v394_v62  ;;  %v393_v6 = vld [vmem:[#allocation2 + $0x2a0] sm:$0xff] }
 0x126   :  { %3400 = vmatprep.subr.bf16.mxu0 %v3399_v0  ;;  %v3421_v0 = vpack.c.bf16 %v390_v61, %v387_v60  ;;  %v3425_v23 = vpack.c.bf16 %v396_v18, %v393_v6 }
 0x128   :  { %3486 = vmatpush3.bf16.msra.mxu1 %v3485_v29  ;;  %v353_v29 = vld [vmem:[#allocation2 + $0x160] sm:$0xff] }
 0x129   :  { %3402 = vmatpush1.bf16.msra.mxu0 %v3401_v26  ;;  %3488 = vmatprep.subr.bf16.mxu1 %v3487_v32  ;;  %v399_v26 = vld [vmem:[#allocation2 + $0x2d0] sm:$0xff]  ;;  %v406_v32 = vld [vmem:[#allocation2 + $0x308] sm:$0xff] }
 0x12a   :  { %3404 = vmatprep.subr.bf16.mxu0 %v3403_v30  ;;  %v3429_v28 = vpack.c.bf16 %v402_v27, %v399_v26  ;;  %v356_v30 = vld [vmem:[#allocation2 + $0x178] sm:$0xff]  ;;  %v3431_v34 = vpack.c.bf16 %v409_v33, %v406_v32  ;;  %v407_v26 = vld [vmem:[#allocation2 + $0x310] sm:$0xff]  ;;  %v410_v27 = vld [vmem:[#allocation2 + $0x328] sm:$0xff] }
 0x12b   :  { %v3493_v31 = vpack.c.bf16 %v356_v30, %v353_v29  ;;  %v415_v29 = vld [vmem:[#allocation2 + $0x350] sm:$0xff]  ;;  %v3496_v33 = vpack.c.bf16 %v410_v27, %v407_v26 }
 0x12c   :  { %3490 = vmatpush3.bf16.msra.mxu1 %v3489_v39  ;;  %v226_v39 = vld [vmem:[%s5733_s0 + $0x8] sm:$0xff] }
 0x12d   :  { %3406 = vmatpush1.bf16.msra.mxu0 %v3405_v38  ;;  %3492 = vmatprep.subr.bf16.mxu1 %v3491_v43 }
 0x12e   :  { %3408 = vmatprep.subr.bf16.mxu0 %v3407_v40 }
 0x130   :  { %3494 = vmatpush3.bf16.msra.mxu1 %v3493_v31 }
 0x131   :  { %3410 = vmatpush1.bf16.msra.mxu0 %v3409_v46 }
 0x132   :  { %3412 = vmatprep.subr.bf16.mxu0 %v3411_v47 }
 0x135   :  { %3414 = vmatpush1.bf16.msra.mxu0 %v3413_v52  ;;  %v4656_v52 = vmov 0.0|0.0  }
 0x136   :  { %3416 = vmatprep.subr.bf16.mxu0 %v3415_v53  ;;  %3495 = vmatprep.subr.bf16.mxu1 %v4656_v52 }
 0x139   :  { %3418 = vmatpush1.bf16.msra.mxu0 %v3417_v58 }
 0x13a   :  { %3420 = vmatprep.subr.bf16.mxu0 %v3419_v59 }
 0x13d   :  { %3422 = vmatpush1.bf16.msra.mxu0 %v3421_v0 }
 0x13e   :  { %3424 = vmatprep.subr.bf16.mxu0 %v3423_v2 }
 0x141   :  { %3426 = vmatpush1.bf16.msra.mxu0 %v3425_v23  ;;  %v4245_v23 = vpack.i.bf16 %v243_v12, %v5027_v24  ;;  %v408_v24 = vld [vmem:[#allocation2 + $0x318] sm:$0xff] }
 0x142   :  { %3428 = vmatprep.subr.bf16.mxu0 %v3427_v25 }
 0x145   :  { %3430 = vmatpush1.bf16.msra.mxu0 %v3429_v28  ;;  %v412_v28 = vld [vmem:[#allocation2 + $0x338] sm:$0xff] }
 0x146   :  { %3432 = vmatprep.subr.bf16.mxu0 %v3431_v34 }
 0x174   :  { %v4147_v35 = vpop.permute.xlu0 %4146 }
 0x175   :  { %v4149_v36 = vunpack.i.h.bf16 %v4147_v35  ;;  %v4148_v37 = vunpack.i.l.bf16 %v4147_v35  ;;  %v4152_v38 = vpop.permute.xlu1 %4151  ;;  %v3435_v35 = vpack.c.bf16 %v415_v29, %v412_v28  ;;  %v429_v28 = vld [vmem:[#allocation2 + $0x3c0] sm:$0xff]  ;;  %v432_v29 = vld [vmem:[#allocation2 + $0x3d8] sm:$0xff] }
 0x176   :  { %v4154_v40 = vunpack.i.h.bf16 %v4152_v38  ;;  %v5036_v41 = vunpack.i.l.bf16 %v4152_v38  ;;  %v418_v38 = vld [vmem:[#allocation2 + $0x368] sm:$0xff] }
 0x177   :  { %v258_v42 = vsel %vm257_vm0, %v4148_v37, %v4149_v36 }
 0x178   :  { %v254_v43 = vpop.permute.xlu0 %253  ;;  %v4175_v44 = vpack.i.bf16 %v258_v42, %v226_v39  ;;  %v270_v47 = vsel %vm257_vm0, %v5036_v41, %v4154_v40 }
 0x179   :  { %v259_v45 = vsel %vm257_vm0, %v4149_v36, %v254_v43  ;;  %v267_v46 = vpop.permute.xlu1 %266  ;;  %v4190_v51 = vpack.i.bf16 %v270_v47, %v4930_v1  ;;  %v411_v36 = vld [vmem:[#allocation2 + $0x330] sm:$0xff] }
 0x17a   :  { %v4180_v48 = vpack.i.bf16 %v4148_v37, %v259_v45  ;;  %4176 = vrot.lane.b32.xlu1 %v4175_v44, %s4655_s30  ;;  %v271_v49 = vsel %vm257_vm0, %v4154_v40, %v267_v46  ;;  %v414_v37 = vld [vmem:[#allocation2 + $0x348] sm:$0xff]  ;;  %v413_v44 = vld [vmem:[#allocation2 + $0x340] sm:$0xff]  ;;  %v416_v45 = vld [vmem:[#allocation2 + $0x358] sm:$0xff] }
 0x17b   :  { %v4195_v55 = vpack.i.bf16 %v5036_v41, %v271_v49 }
 0x17c   :  { %4181 = vrot.lane.b32.xlu0 %v4180_v48, %s4655_s30  ;;  %v4157_v50 = vpop.permute.xlu0 %4156 }
 0x17d   :  { %v4159_v53 = vunpack.i.h.bf16 %v4157_v50  ;;  %v4158_v54 = vunpack.i.l.bf16 %v4157_v50  ;;  %v279_v56 = vpop.permute.xlu1 %278  ;;  %v3437_v50 = vpack.c.bf16 %v414_v37, %v411_v36  ;;  %v439_v36 = vld [vmem:[#allocation2 + $0x410] sm:$0xff] }
 0x17e   :  { %4186 = vrot.lane.b32.xlu1 %v4185_v7, %s4655_s30  ;;  %v431_v37 = vld [vmem:[#allocation2 + $0x3d0] sm:$0xff] }
 0x17f   :  { %v282_v57 = vsel %vm257_vm0, %v4158_v54, %v4159_v53  ;;  %v283_v1 = vsel %vm257_vm0, %v4159_v53, %v279_v56  ;;  %v272_v25 = vsel %vm257_vm0, %v267_v46, %v4158_v54 }
 0x180   :  { %4191 = vrot.lane.b32.xlu0 %v4190_v51, %s4655_s30  ;;  %v4162_v58 = vpop.permute.xlu0 %4161  ;;  %v4205_v61 = vpack.i.bf16 %v282_v57, %v4941_v4  ;;  %v4210_v62 = vpack.i.bf16 %v4158_v54, %v283_v1  ;;  %v417_v54 = vld [vmem:[#allocation2 + $0x360] sm:$0xff]  ;;  %v3499_v57 = vpack.c.bf16 %v416_v45, %v413_v44 }
 0x181   :  { %v4164_v59 = vunpack.i.h.bf16 %v4162_v58  ;;  %v4163_v60 = vunpack.i.l.bf16 %v4162_v58  ;;  %v291_v3 = vpop.permute.xlu1 %290 }
 0x182   :  { %4196 = vrot.lane.b32.xlu1 %v4195_v55, %s4655_s30  ;;  %v420_v55 = vld [vmem:[#allocation2 + $0x378] sm:$0xff] }
 0x183   :  { %v294_v7 = vsel %vm257_vm0, %v4163_v60, %v4164_v59  ;;  %v295_v63 = vsel %vm257_vm0, %v4164_v59, %v291_v3  ;;  %v284_v15 = vsel %vm257_vm0, %v279_v56, %v4163_v60  ;;  %v424_v56 = vld [vmem:[#allocation2 + $0x398] sm:$0xff] }
 0x184   :  { %4201 = vrot.lane.b32.xlu0 %v4200_v10, %s4655_s30  ;;  %v4167_v5 = vpop.permute.xlu0 %4166  ;;  %v4220_v4 = vpack.i.bf16 %v294_v7, %v4979_v13  ;;  %v4225_v10 = vpack.i.bf16 %v4163_v60, %v295_v63 }
 0x185   :  { %v4169_v0 = vunpack.i.h.bf16 %v4167_v5  ;;  %v4168_v2 = vunpack.i.l.bf16 %v4167_v5  ;;  %v5074_v18 = vpop.permute.xlu1 %302 }
 0x186   :  { %4206 = vrot.lane.b32.xlu1 %v4205_v61, %s4655_s30  ;;  %v427_v61 = vld [vmem:[#allocation2 + $0x3b0] sm:$0xff] }
 0x187   :  { %v306_v20 = vsel %vm257_vm0, %v4168_v2, %v4169_v0  ;;  %v307_v22 = vsel %vm257_vm0, %v4169_v0, %v5074_v18  ;;  %v296_v16 = vsel %vm257_vm0, %v291_v3, %v4168_v2  ;;  %v422_v3 = vld [vmem:[#allocation2 + $0x388] sm:$0xff] }
 0x188   :  { %4211 = vrot.lane.b32.xlu0 %v4210_v62, %s4655_s30  ;;  %v5066_v6 = vpop.permute.xlu0 %4171  ;;  %v4235_v11 = vpack.i.bf16 %v306_v20, %v5004_v19  ;;  %v260_v19 = vsel %vm257_vm0, %v254_v43, %v5036_v41  ;;  %v421_v43 = vld [vmem:[#allocation2 + $0x380] sm:$0xff]  ;;  %v419_v62 = vld [vmem:[#allocation2 + $0x370] sm:$0xff] }
 0x189   :  { %v4174_v8 = vunpack.i.h.bf16 %v5066_v6  ;;  %v4173_v9 = vunpack.i.l.bf16 %v5066_v6  ;;  %v3439_v53 = vpack.c.bf16 %v421_v43, %v418_v38  ;;  %v434_v38 = vld [vmem:[#allocation2 + $0x3e8] sm:$0xff]  ;;  %v3449_v43 = vpack.c.bf16 %v432_v29, %v429_v28 }
 0x18a   :  { %4216 = vrot.lane.b32.xlu1 %v4215_v14, %s4655_s30  ;;  %v4240_v14 = vpack.i.bf16 %v4168_v2, %v307_v22  ;;  %v3441_v2 = vpack.c.bf16 %v420_v55, %v417_v54  ;;  %v437_v54 = vld [vmem:[#allocation2 + $0x400] sm:$0xff] }
 0x18b   :  { %v553_v13 = vsel %vm551_vm1, %v4173_v9, %v4174_v8 }
 0x18c   :  { %4221 = vrot.lane.b32.xlu0 %v4220_v4, %s4655_s30  ;;  %682 = vmatprep.mubr.f32.mxu0 %v553_v13  ;;  %v3443_v4 = vpack.c.bf16 %v427_v61, %v424_v56 }
 0x18d   :  { %940 = vmatprep.mubr.f32.mxu1 %v553_v13 }
 0x18e   :  { %4226 = vrot.lane.b32.xlu1 %v4225_v10, %s4655_s30 }
 0x190   :  { %4231 = vrot.lane.b32.xlu0 %v4230_v17, %s4655_s30  ;;  %v244_v17 = vld [vmem:[%s5733_s0 + $0x98] sm:$0xff] }
 0x192   :  { %4236 = vrot.lane.b32.xlu1 %v4235_v11, %s4655_s30  ;;  %v423_v11 = vld [vmem:[#allocation2 + $0x390] sm:$0xff] }
 0x194   :  { %4241 = vrot.lane.b32.xlu0 %v4240_v14, %s4655_s30  ;;  %v430_v14 = vld [vmem:[#allocation2 + $0x3c8] sm:$0xff] }
 0x196   :  { %4246 = vrot.lane.b32.xlu1 %v4245_v23, %s4655_s30 }
 0x198   :  { %535 = vrot.lane.b32.xlu0 %v5014_v21, %s4655_s30  ;;  %v405_v21 = vld [vmem:[#allocation2 + $0x300] sm:$0xff] }
 0x199   :  { %v3433_v32 = vpack.c.bf16 %v408_v24, %v405_v21 }
 0x19a   :  { %487 = vrot.lane.b32.xlu1 %v260_v19, %s4655_s30  ;;  %v433_v19 = vld [vmem:[#allocation2 + $0x3e0] sm:$0xff] }
 0x19b   :  { %v3447_v27 = vpack.c.bf16 %v433_v19, %v430_v14  ;;  %v448_v14 = vld [vmem:[#allocation2 + $0x458] sm:$0xff]  ;;  %v451_v19 = vld [vmem:[#allocation2 + $0x470] sm:$0xff] }
 0x19c   :  { %501 = vrot.lane.b32.xlu0 %v272_v25, %s4655_s30  ;;  %v425_v25 = vld [vmem:[#allocation2 + $0x3a0] sm:$0xff]  ;;  %v3459_v29 = vpack.c.bf16 %v451_v19, %v448_v14 }
 0x19d   :  { %v1325_v19 = vld [vmem:[#allocation6] sm:$0xff] }
 0x19e   :  { %515 = vrot.lane.b32.xlu1 %v284_v15, %s4655_s30  ;;  %v428_v15 = vld [vmem:[#allocation2 + $0x3b8] sm:$0xff] }
 0x1a0   :  { %529 = vrot.lane.b32.xlu0 %v296_v16, %s4655_s30 }
 0x1a2   :  { %304 = vrot.lane.b32.xlu1 %v243_v12, %s4654_s11  ;;  %v426_v12 = vld [vmem:[#allocation2 + $0x3a8] sm:$0xff] }
 0x1a3   :  { %v3445_v21 = vpack.c.bf16 %v426_v12, %v423_v11  ;;  %v446_v12 = vld [vmem:[#allocation2 + $0x448] sm:$0xff] }
 0x1a6   :  { %549 = vrot.lane.b32.xlu1 %v244_v17, %s4655_s30 }
 0x1ec   :  { %v4177_v30 = vpop.permute.xlu1 %4176 }
 0x1ed   :  { %v4178_v31 = vunpack.i.l.bf16 %v4177_v30  ;;  %v4179_v39 = vunpack.i.h.bf16 %v4177_v30  ;;  %v3505_v30 = vpack.c.bf16 %v428_v15, %v425_v25 }
 0x1ee   :  { %v5112_v34 = vpop.permute.xlu0 %4181 }
 0x1ef   :  { %v4184_v40 = vunpack.i.h.bf16 %v5112_v34  ;;  %v4183_v41 = vunpack.i.l.bf16 %v5112_v34  ;;  %v552_v42 = vsel %vm551_vm1, %v4178_v31, %v4173_v9  ;;  %v3502_v9 = vpack.c.bf16 %v422_v3, %v419_v62  ;;  %v436_v31 = vld [vmem:[#allocation2 + $0x3f8] sm:$0xff] }
 0x1f0   :  { %v5117_v46 = vpop.permute.xlu1 %4186  ;;  %683 = vmatmul.mubr.f32.vlgmr.msra.gmra.mrb[0].mxu0 %v552_v42  ;;  %941 = vmatmul.mubr.f32.vlgmr.msra.gmra.mrb[0].mxu1 %v552_v42 }
 0x1f1   :  { %v4189_v47 = vunpack.i.h.bf16 %v5117_v46  ;;  %v4188_v48 = vunpack.i.l.bf16 %v5117_v46  ;;  %3434 = vmatpush1.bf16.msra.mxu0 %v3433_v32  ;;  %v556_v49 = vsel %vm551_vm1, %v4179_v39, %v4183_v41  ;;  %3497 = vmatpush3.bf16.msra.mxu1 %v3496_v33  ;;  %v555_v59 = vsel %vm551_vm1, %v4184_v40, %v4179_v39 }
 0x1f2   :  { %v5124_v51 = vpop.permute.xlu0 %4191  ;;  %688 = vmatprep.mubr.f32.mxu0 %v556_v49  ;;  %945 = vmatprep.mubr.f32.mxu1 %v556_v49  ;;  %v435_v49 = vld [vmem:[#allocation2 + $0x3f0] sm:$0xff] }
 0x1f3   :  { %v4194_v58 = vunpack.i.h.bf16 %v5124_v51  ;;  %v4193_v1 = vunpack.i.l.bf16 %v5124_v51  ;;  %3436 = vmatprep.subr.bf16.mxu0 %v3435_v35  ;;  %v559_v60 = vsel %vm551_vm1, %v4188_v48, %v4189_v47  ;;  %3498 = vmatprep.subr.bf16.mxu1 %v4656_v52  ;;  %v1333_v51 = vld [vmem:[#allocation6 + $0x40] sm:$0xff] }
 0x1f4   :  { %v5133_v5 = vpop.permute.xlu1 %4196  ;;  %689 = vmatmul.mubr.f32.gmra.mrb[2].mxu0 %v555_v59  ;;  %946 = vmatmul.mubr.f32.gmra.mrb[2].mxu1 %v555_v59  ;;  %v440_v59 = vld [vmem:[#allocation2 + $0x418] sm:$0xff] }
 0x1f5   :  { %v4198_v7 = vunpack.i.l.bf16 %v5133_v5  ;;  %3438 = vmatpush1.bf16.msra.mxu0 %v3437_v50  ;;  %694 = vmatprep.mubr.f32.mxu0 %v559_v60  ;;  %v558_v63 = vsel %vm551_vm1, %v4193_v1, %v4188_v48  ;;  %v4199_v10 = vunpack.i.h.bf16 %v5133_v5  ;;  %v3451_v48 = vpack.c.bf16 %v439_v36, %v436_v31  ;;  %v438_v50 = vld [vmem:[#allocation2 + $0x408] sm:$0xff] }
 0x1f6   :  { %v5139_v0 = vpop.permute.xlu0 %4201  ;;  %950 = vmatprep.mubr.f32.mxu1 %v559_v60  ;;  %3440 = vmatprep.subr.bf16.mxu0 %v3439_v53  ;;  %v3508_v53 = vpack.c.bf16 %v434_v38, %v431_v37  ;;  %v3453_v61 = vpack.c.bf16 %v438_v50, %v435_v49  ;;  %v450_v31 = vld [vmem:[#allocation2 + $0x468] sm:$0xff]  ;;  %v449_v37 = vld [vmem:[#allocation2 + $0x460] sm:$0xff]  ;;  %v452_v38 = vld [vmem:[#allocation2 + $0x478] sm:$0xff] }
 0x1f7   :  { %v4204_v20 = vunpack.i.h.bf16 %v5139_v0  ;;  %v4203_v13 = vunpack.i.l.bf16 %v5139_v0  ;;  %v562_v22 = vsel %vm551_vm1, %v4194_v58, %v4198_v7  ;;  %3500 = vmatpush3.bf16.msra.mxu1 %v3499_v57  ;;  %v561_v26 = vsel %vm551_vm1, %v4199_v10, %v4194_v58  ;;  %v442_v57 = vld [vmem:[#allocation2 + $0x428] sm:$0xff]  ;;  %v445_v58 = vld [vmem:[#allocation2 + $0x440] sm:$0xff]  ;;  %v443_v10 = vld [vmem:[#allocation2 + $0x430] sm:$0xff] }
 0x1f8   :  { %v5147_v23 = vpop.permute.xlu1 %4206  ;;  %695 = vmatmul.mubr.f32.gmra.mrb[4].mxu0 %v558_v63  ;;  %951 = vmatmul.mubr.f32.gmra.mrb[4].mxu1 %v558_v63  ;;  %v3455_v63 = vpack.c.bf16 %v445_v58, %v442_v57  ;;  %v3514_v28 = vpack.c.bf16 %v446_v12, %v443_v10  ;;  %v3517_v49 = vpack.c.bf16 %v452_v38, %v449_v37  ;;  %v1336_v37 = vld [vmem:[#allocation6 + $0x58] sm:$0xff] }
 0x1f9   :  { %700 = vmatprep.mubr.f32.mxu0 %v562_v22  ;;  %955 = vmatprep.mubr.f32.mxu1 %v562_v22  ;;  %v565_v17 = vsel %vm551_vm1, %v4203_v13, %v4204_v20  ;;  %v4208_v24 = vunpack.i.l.bf16 %v5147_v23  ;;  %v4209_v32 = vunpack.i.h.bf16 %v5147_v23  ;;  %v1337_v23 = vld [vmem:[#allocation6 + $0x60] sm:$0xff] }
 0x1fa   :  { %v5149_v16 = vpop.permute.xlu0 %4211  ;;  %3442 = vmatpush1.bf16.msra.mxu0 %v3441_v2  ;;  %3501 = vmatprep.subr.bf16.mxu1 %v4656_v52  ;;  %v441_v2 = vld [vmem:[#allocation2 + $0x420] sm:$0xff] }
 0x1fb   :  { %3444 = vmatprep.subr.bf16.mxu0 %v3443_v4  ;;  %3503 = vmatpush3.bf16.msra.mxu1 %v3502_v9  ;;  %v4213_v33 = vunpack.i.l.bf16 %v5149_v16  ;;  %v564_v39 = vsel %vm551_vm1, %v4208_v24, %v4203_v13  ;;  %v4214_v44 = vunpack.i.h.bf16 %v5149_v16  ;;  %v444_v4 = vld [vmem:[#allocation2 + $0x438] sm:$0xff]  ;;  %v3511_v9 = vpack.c.bf16 %v440_v59, %v437_v54  ;;  %v1326_v59 = vld [vmem:[#allocation6 + $0x8] sm:$0xff] }
 0x1fc   :  { %v5159_v35 = vpop.permute.xlu1 %4216  ;;  %701 = vmatmul.mubr.f32.gmra.mrb[6].mxu0 %v561_v26  ;;  %956 = vmatmul.mubr.f32.gmra.mrb[6].mxu1 %v561_v26  ;;  %v3457_v26 = vpack.c.bf16 %v444_v4, %v441_v2  ;;  %v560_v34 = vsel %vm551_vm1, %v4189_v47, %v4208_v24  ;;  %v1339_v16 = vld [vmem:[#allocation6 + $0x70] sm:$0xff] }
 0x1fd   :  { %706 = vmatprep.mubr.f32.mxu0 %v565_v17  ;;  %960 = vmatprep.mubr.f32.mxu1 %v565_v17  ;;  %v4219_v40 = vunpack.i.h.bf16 %v5159_v35  ;;  %v4218_v42 = vunpack.i.l.bf16 %v5159_v35  ;;  %v568_v56 = vsel %vm551_vm1, %v4209_v32, %v4213_v33  ;;  %v567_v3 = vsel %vm551_vm1, %v4214_v44, %v4209_v32  ;;  %v1344_v35 = vld [vmem:[#allocation6 + $0x98] sm:$0xff] }
 0x1fe   :  { %3446 = vmatpush1.bf16.msra.mxu0 %v3445_v21  ;;  %3504 = vmatprep.subr.bf16.mxu1 %v4656_v52  ;;  %v5168_v45 = vpop.permute.xlu0 %4221  ;;  %v3533_v24 = vpack.c.bf16 %v1339_v16, %v1337_v23  ;;  %v1380_v23 = vld [vmem:[#allocation6 + $0x1b8] sm:$0xff] }
 0x1ff   :  { %3448 = vmatprep.subr.bf16.mxu0 %v3447_v27  ;;  %3506 = vmatpush3.bf16.msra.mxu1 %v3505_v30  ;;  %v571_v60 = vsel %vm551_vm1, %v4218_v42, %v4219_v40  ;;  %v4223_v62 = vunpack.i.l.bf16 %v5168_v45  ;;  %v4224_v13 = vunpack.i.h.bf16 %v5168_v45  ;;  %v447_v30 = vld [vmem:[#allocation2 + $0x450] sm:$0xff]  ;;  %v1341_v45 = vld [vmem:[#allocation6 + $0x80] sm:$0xff] }
 0x200   :  { %v5170_v55 = vpop.permute.xlu1 %4226  ;;  %707 = vmatmul.mubr.f32.gmra.mrb[8].mxu0 %v564_v39  ;;  %961 = vmatmul.mubr.f32.gmra.mrb[8].mxu1 %v564_v39 }
 0x201   :  { %712 = vmatprep.mubr.f32.mxu0 %v568_v56  ;;  %965 = vmatprep.mubr.f32.mxu1 %v568_v56  ;;  %v4228_v22 = vunpack.i.l.bf16 %v5170_v55  ;;  %v570_v15 = vsel %vm551_vm1, %v4223_v62, %v4218_v42  ;;  %v4229_v27 = vunpack.i.h.bf16 %v5170_v55  ;;  %v3461_v42 = vpack.c.bf16 %v450_v31, %v447_v30  ;;  %v1329_v30 = vld [vmem:[#allocation6 + $0x20] sm:$0xff]  ;;  %v1331_v31 = vld [vmem:[#allocation6 + $0x30] sm:$0xff] }
 0x202   :  { %3450 = vmatpush1.bf16.msra.mxu0 %v3449_v43  ;;  %3507 = vmatprep.subr.bf16.mxu1 %v4656_v52  ;;  %v5185_v25 = vpop.permute.xlu0 %4231  ;;  %v3525_v38 = vpack.c.bf16 %v1331_v31, %v1329_v30  ;;  %v566_v46 = vsel %vm551_vm1, %v4204_v20, %v4223_v62  ;;  %v1343_v55 = vld [vmem:[#allocation6 + $0x90] sm:$0xff]  ;;  %v1361_v30 = vld [vmem:[#allocation6 + $0x120] sm:$0xff] }
 0x203   :  { %3452 = vmatprep.subr.bf16.mxu0 %v3451_v48  ;;  %3509 = vmatpush3.bf16.msra.mxu1 %v3508_v53  ;;  %v4234_v17 = vunpack.i.h.bf16 %v5185_v25  ;;  %v4233_v21 = vunpack.i.l.bf16 %v5185_v25  ;;  %v574_v36 = vsel %vm551_vm1, %v4224_v13, %v4228_v22  ;;  %v573_v48 = vsel %vm551_vm1, %v4229_v27, %v4224_v13  ;;  %v1363_v31 = vld [vmem:[#allocation6 + $0x130] sm:$0xff] }
 0x204   :  { %v5183_v11 = vpop.permute.xlu1 %4236  ;;  %713 = vmatmul.mubr.f32.gmra.mrb[10].mxu0 %v567_v3  ;;  %966 = vmatmul.mubr.f32.gmra.mrb[10].mxu1 %v567_v3  ;;  %v4657_v27 = vmov 0.0   ;;  %v3537_v62 = vpack.c.bf16 %v1343_v55, %v1341_v45  ;;  %v1384_v45 = vld [vmem:[#allocation6 + $0x1d8] sm:$0xff] }
 0x205   :  { %718 = vmatprep.mubr.f32.mxu0 %v571_v60  ;;  %970 = vmatprep.mubr.f32.mxu1 %v571_v60  ;;  %v577_v39 = vsel %vm551_vm1, %v4233_v21, %v4234_v17  ;;  %v4238_v43 = vunpack.i.l.bf16 %v5183_v11  ;;  %v4239_v50 = vunpack.i.h.bf16 %v5183_v11  ;;  %v1328_v60 = vld [vmem:[#allocation6 + $0x18] sm:$0xff] }
 0x206   :  { %3454 = vmatpush1.bf16.msra.mxu0 %v3453_v61  ;;  %3510 = vmatprep.subr.bf16.mxu1 %v4656_v52  ;;  %v5204_v44 = vpop.permute.xlu0 %4241  ;;  %v3519_v3 = vpack.c.bf16 %v1328_v60, %v1326_v59  ;;  %v1348_v11 = vld [vmem:[#allocation6 + $0xb8] sm:$0xff]  ;;  %v1349_v60 = vld [vmem:[#allocation6 + $0xc0] sm:$0xff] }
 0x207   :  { %3456 = vmatprep.subr.bf16.mxu0 %v3455_v63  ;;  %3512 = vmatpush3.bf16.msra.mxu1 %v3511_v9  ;;  %v4243_v53 = vunpack.i.l.bf16 %v5204_v44  ;;  %v576_v56 = vsel %vm551_vm1, %v4238_v43, %v4233_v21  ;;  %v4244_v61 = vunpack.i.h.bf16 %v5204_v44  ;;  %v1330_v21 = vld [vmem:[#allocation6 + $0x28] sm:$0xff]  ;;  %v572_v5 = vsel %vm551_vm1, %v4219_v40, %v4238_v43  ;;  %v1347_v43 = vld [vmem:[#allocation6 + $0xb0] sm:$0xff]  ;;  %v1389_v44 = vld [vmem:[#allocation6 + $0x200] sm:$0xff] }
 0x208   :  { %v5194_v32 = vpop.permute.xlu1 %4246  ;;  %719 = vmatmul.mubr.f32.gmra.mrb[12].mxu0 %v570_v15  ;;  %971 = vmatmul.mubr.f32.gmra.mrb[12].mxu1 %v570_v15  ;;  %v1327_v15 = vld [vmem:[#allocation6 + $0x10] sm:$0xff] }
 0x209   :  { %724 = vmatprep.mubr.f32.mxu0 %v574_v36  ;;  %975 = vmatprep.mubr.f32.mxu1 %v574_v36  ;;  %v4249_v57 = vunpack.i.h.bf16 %v5194_v32  ;;  %v4248_v58 = vunpack.i.l.bf16 %v5194_v32  ;;  %v580_v2 = vsel %vm551_vm1, %v4239_v50, %v4243_v53  ;;  %v579_v9 = vsel %vm551_vm1, %v4244_v61, %v4239_v50  ;;  %v1334_v36 = vld [vmem:[#allocation6 + $0x48] sm:$0xff]  ;;  %v1351_v61 = vld [vmem:[#allocation6 + $0xd0] sm:$0xff]  ;;  %v1400_v32 = vld [vmem:[#allocation6 + $0x258] sm:$0xff] }
 0x20a   :  { %3458 = vmatpush1.bf16.msra.mxu0 %v3457_v26  ;;  %3513 = vmatprep.subr.bf16.mxu1 %v4656_v52  ;;  %v5225_v10 = vpop.permute.xlu0 %535  ;;  %v1332_v26 = vld [vmem:[#allocation6 + $0x38] sm:$0xff] }
 0x20b   :  { %3515 = vmatpush3.bf16.msra.mxu1 %v3514_v28  ;;  %3460 = vmatprep.subr.bf16.mxu0 %v3459_v29  ;;  %v583_v4 = vsel %vm551_vm1, %v4248_v58, %v4249_v57  ;;  %v582_v14 = vsel %vm551_vm1, %v5225_v10, %v4248_v58  ;;  %v554_v28 = vsel %vm551_vm1, %v4174_v8, %v4193_v1  ;;  %v1335_v1 = vld [vmem:[#allocation6 + $0x50] sm:$0xff]  ;;  %v1352_v58 = vld [vmem:[#allocation6 + $0xd8] sm:$0xff] }
 0x20c   :  { %v488_v54 = vpop.permute.xlu1 %487  ;;  %725 = vmatmul.mubr.f32.gmra.mrb[14].mxu0 %v573_v48  ;;  %976 = vmatmul.mubr.f32.gmra.mrb[14].mxu1 %v573_v48  ;;  %v3523_v29 = vpack.c.bf16 %v1332_v26, %v1330_v21  ;;  %v3527_v8 = vpack.c.bf16 %v1336_v37, %v1334_v36  ;;  %v3529_v48 = vpack.c.bf16 %v1335_v1, %v1333_v51  ;;  %v1359_v21 = vld [vmem:[#allocation6 + $0x110] sm:$0xff]  ;;  %v1366_v37 = vld [vmem:[#allocation6 + $0x148] sm:$0xff] }
 0x20d   :  { %730 = vmatprep.mubr.f32.mxu0 %v577_v39  ;;  %980 = vmatprep.mubr.f32.mxu1 %v577_v39  ;;  %v557_v6 = vsel %vm551_vm1, %v4183_v41, %v488_v54  ;;  %v1338_v39 = vld [vmem:[#allocation6 + $0x68] sm:$0xff]  ;;  %v578_v20 = vsel %vm551_vm1, %v4234_v17, %v5225_v10  ;;  %v1345_v17 = vld [vmem:[#allocation6 + $0xa0] sm:$0xff]  ;;  %v1355_v10 = vld [vmem:[#allocation6 + $0xf0] sm:$0xff]  ;;  %v3557_v36 = vpack.c.bf16 %v1363_v31, %v1361_v30  ;;  %v455_v31 = vlaneseq }
 0x20e   :  { %3462 = vmatpush1.bf16.msra.mxu0 %v3461_v42  ;;  %3516 = vmatprep.subr.bf16.mxu1 %v4656_v52  ;;  %v1340_v42 = vld [vmem:[#allocation6 + $0x78] sm:$0xff]  ;;  %v3541_v54 = vpack.c.bf16 %v1347_v43, %v1345_v17  ;;  %v1367_v51 = vld [vmem:[#allocation6 + $0x150] sm:$0xff] }
 0x20f   :  { %3518 = vmatpush3.bf16.msra.mxu1 %v3517_v49  ;;  %3520 = vmatprep.subr.bf16.mxu0 %v3519_v3  ;;  %v3531_v41 = vpack.c.bf16 %v1340_v42, %v1338_v39  ;;  %v502_v49 = vpop.permute.xlu0 %501  ;;  %v3545_v3 = vpack.c.bf16 %v1351_v61, %v1349_v60  ;;  %v1370_v39 = vld [vmem:[#allocation6 + $0x168] sm:$0xff]  ;;  %v1372_v42 = vld [vmem:[#allocation6 + $0x178] sm:$0xff] }
 0x210   :  { %v5216_v63 = vpop.permute.xlu1 %515  ;;  %731 = vmatmul.mubr.f32.gmra.mrb[16].mxu0 %v576_v56  ;;  %981 = vmatmul.mubr.f32.gmra.mrb[16].mxu1 %v576_v56  ;;  %v563_v50 = vsel %vm551_vm1, %v4198_v7, %v502_v49  ;;  %v1350_v56 = vld [vmem:[#allocation6 + $0xc8] sm:$0xff]  ;;  %v1388_v17 = vld [vmem:[#allocation6 + $0x1f8] sm:$0xff] }
 0x211   :  { %736 = vmatprep.mubr.f32.mxu0 %v580_v2  ;;  %985 = vmatprep.mubr.f32.mxu1 %v580_v2  ;;  %v569_v47 = vsel %vm551_vm1, %v4213_v33, %v5216_v63  ;;  %v1342_v33 = vld [vmem:[#allocation6 + $0x88] sm:$0xff]  ;;  %v3543_v59 = vpack.c.bf16 %v1352_v58, %v1350_v56  ;;  %v1356_v2 = vld [vmem:[#allocation6 + $0xf8] sm:$0xff]  ;;  %v1387_v56 = vld [vmem:[#allocation6 + $0x1f0] sm:$0xff] }
 0x212   :  { %v3535_v40 = vpack.c.bf16 %v1344_v35, %v1342_v33  ;;  %v1354_v63 = vld [vmem:[#allocation6 + $0xe8] sm:$0xff]  ;;  %v1379_v33 = vld [vmem:[#allocation6 + $0x1b0] sm:$0xff] }
 0x213   :  { %v530_v7 = vpop.permute.xlu0 %529 }
 0x214   :  { %v305_v13 = vpop.permute.xlu1 %304  ;;  %737 = vmatmul.mubr.f32.gmra.mrb[18].mxu0 %v579_v9  ;;  %986 = vmatmul.mubr.f32.gmra.mrb[18].mxu1 %v579_v9  ;;  %v575_v0 = vsel %vm551_vm1, %v4228_v22, %v530_v7  ;;  %v1346_v22 = vld [vmem:[#allocation6 + $0xa8] sm:$0xff]  ;;  %v1353_v9 = vld [vmem:[#allocation6 + $0xe0] sm:$0xff]  ;;  %v1375_v7 = vld [vmem:[#allocation6 + $0x190] sm:$0xff] }
 0x215   :  { %v308_v12 = vsel %vm257_vm0, %v5074_v18, %v305_v13  ;;  %742 = vmatprep.mubr.f32.mxu0 %v583_v4  ;;  %990 = vmatprep.mubr.f32.mxu1 %v583_v4  ;;  %v3521_v18 = vpack.c.bf16 %v1327_v15, %v1325_v19  ;;  %v3539_v25 = vpack.c.bf16 %v1348_v11, %v1346_v22  ;;  %v1357_v15 = vld [vmem:[#allocation6 + $0x100] sm:$0xff]  ;;  %v1383_v22 = vld [vmem:[#allocation6 + $0x1d0] sm:$0xff] }
 0x216   :  { %543 = vrot.lane.b32.xlu0 %v308_v12, %s4655_s30  ;;  %v3547_v4 = vpack.c.bf16 %v1356_v2, %v1354_v63  ;;  %v3549_v13 = vpack.c.bf16 %v1355_v10, %v1353_v9  ;;  %v1358_v12 = vld [vmem:[#allocation6 + $0x108] sm:$0xff]  ;;  %v3553_v26 = vpack.c.bf16 %v1359_v21, %v1357_v15  ;;  %v1392_v2 = vld [vmem:[#allocation6 + $0x218] sm:$0xff]  ;;  %v1391_v9 = vld [vmem:[#allocation6 + $0x210] sm:$0xff] }
 0x217   :  { %v1390_v63 = vld [vmem:[#allocation6 + $0x208] sm:$0xff] }
 0x218   :  { %743 = vmatmul.mubr.f32.gmra.mrb[20].mxu0 %v582_v14  ;;  %991 = vmatmul.mubr.f32.gmra.mrb[20].mxu1 %v582_v14  ;;  %v1360_v14 = vld [vmem:[#allocation6 + $0x118] sm:$0xff]  ;;  %v550_v61 = vpop.permute.xlu1 %549  ;;  %v1394_v10 = vld [vmem:[#allocation6 + $0x228] sm:$0xff] }
 0x219   :  { %811 = vmatprep.mubr.f32.mxu0 %v4657_v27  ;;  %3238 = vmatprep.mubr.msk.f32.mxu1 %vm4658_vm2, %v4657_v27  ;;  %v3551_v19 = vpack.c.bf16 %v1360_v14, %v1358_v12  ;;  %v1393_v14 = vld [vmem:[#allocation6 + $0x220] sm:$0xff]  ;;  %v1398_v15 = vld [vmem:[#allocation6 + $0x248] sm:$0xff] }
 0x21c   :  { %812 = vmatmul.mubr.f32.vlgmr.msra.gmra.mrb[0].mxu0 %v554_v28  ;;  %3239 = vmatmul.mubr.f32.vlgmr.msra.gmra.mrb[22].mxu1 %v554_v28  ;;  %v1364_v28 = vld [vmem:[#allocation6 + $0x138] sm:$0xff] }
 0x21d   :  { %817 = vmatprep.mubr.f32.mxu0 %v4657_v27  ;;  %3241 = vmatprep.mubr.msk.f32.mxu1 %vm4658_vm2, %v4657_v27 }
 0x21e   :  { %3522 = vmatpush1.bf16.msra.mxu0 %v3521_v18  ;;  %v1362_v18 = vld [vmem:[#allocation6 + $0x128] sm:$0xff] }
 0x21f   :  { %3524 = vmatprep.subr.bf16.mxu0 %v3523_v29  ;;  %v3555_v29 = vpack.c.bf16 %v1364_v28, %v1362_v18  ;;  %v3591_v18 = vpack.c.bf16 %v1400_v32, %v1398_v15  ;;  %v1402_v28 = vld [vmem:[#allocation6 + $0x268] sm:$0xff]  ;;  %v1425_v15 = vld [vmem:[#allocation6 + $0x320] sm:$0xff] }
 0x220   :  { %818 = vmatmul.mubr.f32.gmra.mrb[2].mxu0 %v557_v6  ;;  %3242 = vmatmul.mubr.f32.gmra.mrb[24].mxu1 %v557_v6 }
 0x221   :  { %823 = vmatprep.mubr.f32.mxu0 %v4657_v27  ;;  %3244 = vmatprep.mubr.msk.f32.mxu1 %vm4658_vm2, %v4657_v27 }
 0x222   :  { %3526 = vmatpush1.bf16.msra.mxu0 %v3525_v38  ;;  %v1368_v38 = vld [vmem:[#allocation6 + $0x158] sm:$0xff] }
 0x223   :  { %3528 = vmatprep.subr.bf16.mxu0 %v3527_v8  ;;  %v3559_v6 = vpack.c.bf16 %v1368_v38, %v1366_v37  ;;  %v1365_v8 = vld [vmem:[#allocation6 + $0x140] sm:$0xff]  ;;  %v1403_v38 = vld [vmem:[#allocation6 + $0x270] sm:$0xff] }
 0x224   :  { %824 = vmatmul.mubr.f32.gmra.mrb[4].mxu0 %v560_v34  ;;  %3245 = vmatmul.mubr.f32.gmra.mrb[26].mxu1 %v560_v34  ;;  %v3561_v1 = vpack.c.bf16 %v1367_v51, %v1365_v8  ;;  %v1369_v34 = vld [vmem:[#allocation6 + $0x160] sm:$0xff]  ;;  %v1408_v8 = vld [vmem:[#allocation6 + $0x298] sm:$0xff] }
 0x225   :  { %829 = vmatprep.mubr.f32.mxu0 %v4657_v27  ;;  %3247 = vmatprep.mubr.msk.f32.mxu1 %vm4658_vm2, %v4657_v27  ;;  %v1401_v37 = vld [vmem:[#allocation6 + $0x260] sm:$0xff] }
 0x226   :  { %3530 = vmatpush1.bf16.msra.mxu0 %v3529_v48  ;;  %v3563_v48 = vpack.c.bf16 %v1372_v42, %v1370_v39  ;;  %v3597_v51 = vpack.c.bf16 %v1403_v38, %v1401_v37  ;;  %v1405_v42 = vld [vmem:[#allocation6 + $0x280] sm:$0xff] }
 0x227   :  { %3532 = vmatprep.subr.bf16.mxu0 %v3531_v41  ;;  %v1371_v41 = vld [vmem:[#allocation6 + $0x170] sm:$0xff] }
 0x228   :  { %830 = vmatmul.mubr.f32.gmra.mrb[6].mxu0 %v563_v50  ;;  %3248 = vmatmul.mubr.f32.gmra.mrb[28].mxu1 %v563_v50  ;;  %v3565_v49 = vpack.c.bf16 %v1371_v41, %v1369_v34  ;;  %v1374_v50 = vld [vmem:[#allocation6 + $0x188] sm:$0xff]  ;;  %v1412_v41 = vld [vmem:[#allocation6 + $0x2b8] sm:$0xff] }
 0x229   :  { %835 = vmatprep.mubr.f32.mxu0 %v4657_v27  ;;  %3250 = vmatprep.mubr.msk.f32.mxu1 %vm4658_vm2, %v4657_v27  ;;  %v1410_v34 = vld [vmem:[#allocation6 + $0x2a8] sm:$0xff] }
 0x22a   :  { %3534 = vmatpush1.bf16.msra.mxu0 %v3533_v24  ;;  %v1377_v24 = vld [vmem:[#allocation6 + $0x1a0] sm:$0xff] }
 0x22b   :  { %3536 = vmatprep.subr.bf16.mxu0 %v3535_v40  ;;  %v3573_v35 = vpack.c.bf16 %v1379_v33, %v1377_v24  ;;  %v1382_v40 = vld [vmem:[#allocation6 + $0x1c8] sm:$0xff] }
 0x22c   :  { %836 = vmatmul.mubr.f32.gmra.mrb[8].mxu0 %v566_v46  ;;  %3251 = vmatmul.mubr.f32.gmra.mrb[30].mxu1 %v566_v46  ;;  %v1376_v46 = vld [vmem:[#allocation6 + $0x198] sm:$0xff]  ;;  %v3575_v55 = vpack.c.bf16 %v1384_v45, %v1382_v40  ;;  %v1415_v40 = vld [vmem:[#allocation6 + $0x2d0] sm:$0xff] }
 0x22d   :  { %841 = vmatprep.mubr.f32.mxu0 %v4657_v27  ;;  %3253 = vmatprep.mubr.msk.f32.mxu1 %vm4658_vm2, %v4657_v27 }
 0x22e   :  { %3538 = vmatpush1.bf16.msra.mxu0 %v3537_v62  ;;  %v1381_v62 = vld [vmem:[#allocation6 + $0x1c0] sm:$0xff] }
 0x22f   :  { %3540 = vmatprep.subr.bf16.mxu0 %v3539_v25  ;;  %v3577_v11 = vpack.c.bf16 %v1383_v22, %v1381_v62  ;;  %v1386_v25 = vld [vmem:[#allocation6 + $0x1e8] sm:$0xff]  ;;  %v1420_v62 = vld [vmem:[#allocation6 + $0x2f8] sm:$0xff] }
 0x230   :  { %842 = vmatmul.mubr.f32.gmra.mrb[10].mxu0 %v569_v47  ;;  %3254 = vmatmul.mubr.f32.gmra.mrb[32].mxu1 %v569_v47  ;;  %v3567_v47 = vpack.c.bf16 %v1376_v46, %v1374_v50  ;;  %v3579_v43 = vpack.c.bf16 %v1388_v17, %v1386_v25  ;;  %v3603_v46 = vpack.c.bf16 %v1412_v41, %v1410_v34 }
 0x231   :  { %847 = vmatprep.mubr.f32.mxu0 %v4657_v27  ;;  %3256 = vmatprep.mubr.msk.f32.mxu1 %vm4658_vm2, %v4657_v27 }
 0x232   :  { %3542 = vmatpush1.bf16.msra.mxu0 %v3541_v54  ;;  %v1385_v54 = vld [vmem:[#allocation6 + $0x1e0] sm:$0xff] }
 0x233   :  { %3544 = vmatprep.subr.bf16.mxu0 %v3543_v59  ;;  %v3581_v58 = vpack.c.bf16 %v1387_v56, %v1385_v54  ;;  %v1417_v54 = vld [vmem:[#allocation6 + $0x2e0] sm:$0xff]  ;;  %v1419_v56 = vld [vmem:[#allocation6 + $0x2f0] sm:$0xff] }
 0x234   :  { %848 = vmatmul.mubr.f32.gmra.mrb[12].mxu0 %v572_v5  ;;  %3257 = vmatmul.mubr.f32.gmra.mrb[34].mxu1 %v572_v5  ;;  %v1373_v5 = vld [vmem:[#allocation6 + $0x180] sm:$0xff] }
 0x235   :  { %853 = vmatprep.mubr.f32.mxu0 %v4657_v27  ;;  %3259 = vmatprep.mubr.msk.f32.mxu1 %vm4658_vm2, %v4657_v27 }
 0x236   :  { %3546 = vmatpush1.bf16.msra.mxu0 %v3545_v3  ;;  %v584_v3 = vsel %vm551_vm1, %v4249_v57, %v550_v61  ;;  %v1399_v57 = vld [vmem:[#allocation6 + $0x250] sm:$0xff] }
 0x237   :  { %3548 = vmatprep.subr.bf16.mxu0 %v3547_v4  ;;  %v3583_v4 = vpack.c.bf16 %v1392_v2, %v1390_v63 }
 0x238   :  { %854 = vmatmul.mubr.f32.gmra.mrb[14].mxu0 %v575_v0  ;;  %3260 = vmatmul.mubr.f32.gmra.mrb[36].mxu1 %v575_v0  ;;  %v3569_v0 = vpack.c.bf16 %v1375_v7, %v1373_v5  ;;  %v1411_v5 = vld [vmem:[#allocation6 + $0x2b0] sm:$0xff]  ;;  %v5311_v7 = vld [vmem:[#allocation4] sm:$0x7] }
 0x239   :  { %859 = vmatprep.mubr.f32.mxu0 %v4657_v27  ;;  %3262 = vmatprep.mubr.msk.f32.mxu1 %vm4658_vm2, %v4657_v27 }
 0x23a   :  { %3550 = vmatpush1.bf16.msra.mxu0 %v3549_v13  ;;  %3584 = vmatprep.subr.bf16.mxu1 %v3583_v4  ;;  %v1396_v13 = vld [vmem:[#allocation6 + $0x238] sm:$0xff]  ;;  %v1421_v4 = vld [vmem:[#allocation6 + $0x300] sm:$0xff] }
 0x23b   :  { %3552 = vmatprep.subr.bf16.mxu0 %v3551_v19  ;;  %v3587_v12 = vpack.c.bf16 %v1396_v13, %v1394_v10  ;;  %v1395_v19 = vld [vmem:[#allocation6 + $0x230] sm:$0xff]  ;;  %v1428_v10 = vld [vmem:[#allocation6 + $0x338] sm:$0xff] }
 0x23c   :  { %860 = vmatmul.mubr.f32.gmra.mrb[16].mxu0 %v578_v20  ;;  %3263 = vmatmul.mubr.f32.gmra.mrb[38].mxu1 %v578_v20  ;;  %v1378_v20 = vld [vmem:[#allocation6 + $0x1a8] sm:$0xff]  ;;  %v3589_v21 = vpack.c.bf16 %v1395_v19, %v1393_v14 }
 0x23d   :  { %865 = vmatprep.mubr.f32.mxu0 %v4657_v27  ;;  %3265 = vmatprep.mubr.msk.f32.mxu1 %vm4658_vm2, %v4657_v27  ;;  %v3571_v16 = vpack.c.bf16 %v1380_v23, %v1378_v20  ;;  %v1416_v20 = vld [vmem:[#allocation6 + $0x2d8] sm:$0xff] }
 0x23e   :  { %3554 = vmatpush1.bf16.msra.mxu0 %v3553_v26  ;;  %v1397_v26 = vld [vmem:[#allocation6 + $0x240] sm:$0xff] }
 0x23f   :  { %3556 = vmatprep.subr.bf16.mxu0 %v3555_v29  ;;  %v1404_v29 = vld [vmem:[#allocation6 + $0x278] sm:$0xff]  ;;  %v3593_v30 = vpack.c.bf16 %v1399_v57, %v1397_v26  ;;  %v1430_v26 = vld [vmem:[#allocation6 + $0x348] sm:$0xff] }
 0x240   :  { %v1432_v57 = vld [vmem:[#allocation6 + $0x358] sm:$0xff] }
 0x242   :  { %3558 = vmatpush1.bf16.msra.mxu0 %v3557_v36  ;;  %v3595_v36 = vpack.c.bf16 %v1404_v29, %v1402_v28 }
 0x243   :  { %3560 = vmatprep.subr.bf16.mxu0 %v3559_v6  ;;  %v1406_v6 = vld [vmem:[#allocation6 + $0x288] sm:$0xff] }
 0x244   :  { %v3599_v39 = vpack.c.bf16 %v1408_v8, %v1406_v6 }
 0x246   :  { %3562 = vmatpush1.bf16.msra.mxu0 %v3561_v1  ;;  %v5308_v1 = vshrl.u32 %v455_v31, 7  ;;  %v1429_v31 = vld [vmem:[#allocation6 + $0x340] sm:$0xff] }
 0x247   :  { %3564 = vmatprep.subr.bf16.mxu0 %v3563_v48  ;;  %v1407_v48 = vld [vmem:[#allocation6 + $0x290] sm:$0xff] }
 0x248   :  { %v465_v50 = vsub.s32 2, %v5308_v1 }
 0x24a   :  { %3566 = vmatpush1.bf16.msra.mxu0 %v3565_v49  ;;  %v3601_v49 = vpack.c.bf16 %v1407_v48, %v1405_v42  ;;  %v5314_v24 = vrot.slane %v5311_v7, %v465_v50  ;;  %v1434_v42 = vld [vmem:[#allocation6 + $0x368] sm:$0xff]  ;;  %v1436_v48 = vld [vmem:[#allocation6 + $0x378] sm:$0xff]  ;;  %v1435_v50 = vld [vmem:[#allocation6 + $0x370] sm:$0xff] }
 0x24b   :  { %3568 = vmatprep.subr.bf16.mxu0 %v3567_v47  ;;  %v1409_v47 = vld [vmem:[#allocation6 + $0x2a0] sm:$0xff]  ;;  %v3627_v41 = vpack.c.bf16 %v1436_v48, %v1434_v42 }
 0x24c   :  { %v3605_v23 = vpack.c.bf16 %v1411_v5, %v1409_v47 }
 0x24e   :  { %3570 = vmatpush1.bf16.msra.mxu0 %v3569_v0  ;;  %v1414_v0 = vld [vmem:[#allocation6 + $0x2c8] sm:$0xff] }
 0x24f   :  { %3572 = vmatprep.subr.bf16.mxu0 %v3571_v16  ;;  %v3607_v33 = vpack.c.bf16 %v1416_v20, %v1414_v0  ;;  %v1438_v0 = vld [vmem:[#allocation6 + $0x388] sm:$0xff]  ;;  %v1440_v20 = vld [vmem:[#allocation6 + $0x398] sm:$0xff] }
 0x252   :  { %3574 = vmatpush1.bf16.msra.mxu0 %v3573_v35  ;;  %v1413_v35 = vld [vmem:[#allocation6 + $0x2c0] sm:$0xff] }
 0x253   :  { %3576 = vmatprep.subr.bf16.mxu0 %v3575_v55  ;;  %v1418_v55 = vld [vmem:[#allocation6 + $0x2e8] sm:$0xff] }
 0x256   :  { %3578 = vmatpush1.bf16.msra.mxu0 %v3577_v11  ;;  %v3609_v11 = vpack.c.bf16 %v1415_v40, %v1413_v35  ;;  %v1439_v35 = vld [vmem:[#allocation6 + $0x390] sm:$0xff] }
 0x257   :  { %3580 = vmatprep.subr.bf16.mxu0 %v3579_v43  ;;  %v3611_v43 = vpack.c.bf16 %v1420_v62, %v1418_v55  ;;  %v1442_v62 = vld [vmem:[#allocation6 + $0x3a8] sm:$0xff] }
 0x25a   :  { %3582 = vmatpush1.bf16.msra.mxu0 %v3581_v58 }
 0x288   :  { %v544_v59 = vpop.permute.xlu0 %543 }
 0x289   :  { %v581_v60 = vsel %vm551_vm1, %v4243_v53, %v544_v59  ;;  %v3585_v53 = vpack.c.bf16 %v1391_v9, %v1389_v44  ;;  %v1422_v59 = vld [vmem:[#allocation6 + $0x308] sm:$0xff]  ;;  %v1423_v44 = vld [vmem:[#allocation6 + $0x310] sm:$0xff] }
 0x28a   :  { %866 = vmatmul.mubr.f32.gmra.mrb[18].mxu0 %v581_v60  ;;  %3266 = vmatmul.mubr.f32.gmra.mrb[40].mxu1 %v581_v60  ;;  %v1424_v60 = vld [vmem:[#allocation6 + $0x318] sm:$0xff] }
 0x28b   :  { %871 = vmatprep.mubr.f32.mxu0 %v4657_v27  ;;  %3268 = vmatprep.mubr.msk.f32.mxu1 %vm4658_vm2, %v4657_v27  ;;  %v3615_v2 = vpack.c.bf16 %v1424_v60, %v1422_v59  ;;  %v1446_v60 = vld [vmem:[#allocation6 + $0x3c8] sm:$0xff] }
 0x28c   :  { %3586 = vmatpush1.bf16.msra.mxu1 %v3585_v53  ;;  %v1426_v53 = vld [vmem:[#allocation6 + $0x328] sm:$0xff] }
 0x28d   :  { %3588 = vmatprep.subr.bf16.mxu1 %v3587_v12  ;;  %v3617_v12 = vpack.c.bf16 %v1423_v44, %v1421_v4  ;;  %v3619_v19 = vpack.c.bf16 %v1428_v10, %v1426_v53  ;;  %v1445_v4 = vld [vmem:[#allocation6 + $0x3c0] sm:$0xff]  ;;  %v1447_v44 = vld [vmem:[#allocation6 + $0x3d0] sm:$0xff]  ;;  %v457_v53 = vsub.s32 0, %v5308_v1 }
 0x28e   :  { %872 = vmatmul.mubr.f32.gmra.mrb[22].mxu0 %v584_v3  ;;  %3269 = vmatmul.mubr.f32.gmra.mrb[42].mxu1 %v584_v3  ;;  %v3613_v3 = vpack.c.bf16 %v1419_v56, %v1417_v54  ;;  %v1443_v54 = vld [vmem:[#allocation6 + $0x3b0] sm:$0xff]  ;;  %v3641_v10 = vpack.c.bf16 %v1447_v44, %v1445_v4 }
 0x290   :  { %3590 = vmatpush1.bf16.msra.mxu1 %v3589_v21  ;;  %v1427_v21 = vld [vmem:[#allocation6 + $0x330] sm:$0xff] }
 0x291   :  { %3592 = vmatprep.subr.bf16.mxu1 %v3591_v18  ;;  %v3621_v28 = vpack.c.bf16 %v1427_v21, %v1425_v15  ;;  %v1452_v15 = vld [vmem:[#allocation6 + $0x3f8] sm:$0xff] }
 0x294   :  { %3594 = vmatpush1.bf16.msra.mxu1 %v3593_v30  ;;  %v3623_v30 = vpack.c.bf16 %v1432_v57, %v1430_v26 }
 0x295   :  { %3596 = vmatprep.subr.bf16.mxu1 %v3595_v36  ;;  %v1431_v36 = vld [vmem:[#allocation6 + $0x350] sm:$0xff] }
 0x296   :  { %v3625_v6 = vpack.c.bf16 %v1431_v36, %v1429_v31  ;;  %v5343_v36 = vrot.slane %v5311_v7, %v457_v53 }
 0x298   :  { %3598 = vmatpush1.bf16.msra.mxu1 %v3597_v51 }
 0x299   :  { %3600 = vmatprep.subr.bf16.mxu1 %v3599_v39 }
 0x29c   :  { %3602 = vmatpush1.bf16.msra.mxu1 %v3601_v49  ;;  %v1433_v49 = vld [vmem:[#allocation6 + $0x360] sm:$0xff] }
 0x29d   :  { %3604 = vmatprep.subr.bf16.mxu1 %v3603_v46  ;;  %v3629_v47 = vpack.c.bf16 %v1435_v50, %v1433_v49 }
 0x2a0   :  { %3606 = vmatpush1.bf16.msra.mxu1 %v3605_v23 }
 0x2a1   :  { %3608 = vmatprep.subr.bf16.mxu1 %v3607_v33  ;;  %v1437_v33 = vld [vmem:[#allocation6 + $0x380] sm:$0xff] }
 0x2a4   :  { %3610 = vmatpush1.bf16.msra.mxu1 %v3609_v11 }
 0x2a5   :  { %3612 = vmatprep.subr.bf16.mxu1 %v3611_v43  ;;  %v1441_v43 = vld [vmem:[#allocation6 + $0x3a0] sm:$0xff] }
 0x2a8   :  { %3614 = vmatpush1.bf16.msra.mxu1 %v3613_v3  ;;  %v1448_v3 = vld [vmem:[#allocation6 + $0x3d8] sm:$0xff] }
 0x2a9   :  { %3616 = vmatprep.subr.bf16.mxu1 %v3615_v2 }
 0x2ac   :  { %3618 = vmatpush1.bf16.msra.mxu1 %v3617_v12 }
 0x2ad   :  { %3620 = vmatprep.subr.bf16.mxu1 %v3619_v19  ;;  %v1450_v19 = vld [vmem:[#allocation6 + $0x3e8] sm:$0xff] }
 0x2ae   :  { %v3643_v21 = vpack.c.bf16 %v1452_v15, %v1450_v19 }
 0x2b0   :  { %3622 = vmatpush1.bf16.msra.mxu1 %v3621_v28  ;;  %v1449_v28 = vld [vmem:[#allocation6 + $0x3e0] sm:$0xff] }
 0x2b1   :  { %3624 = vmatprep.subr.bf16.mxu1 %v3623_v30 }
 0x2b4   :  { %3626 = vmatpush1.bf16.msra.mxu1 %v3625_v6 }
 0x2b5   :  { %3628 = vmatprep.subr.bf16.mxu1 %v3627_v41 }
 0x2b8   :  { %3630 = vmatpush1.bf16.msra.mxu1 %v3629_v47 }
 0x2c3   :  { %v2986_v16 = vpop.f32.mrb[0].mxu1 }
 0x2c4   :  { %v2987_v45 = vpop.f32.mrb[1].mxu1 }
 0x2c5   :  { %v2988_v22 = vadd.f32 %v2987_v45, %v2986_v16  ;;  %v3631_v16 = vpack.c.bf16 %v1440_v20, %v1438_v0  ;;  %v3633_v45 = vpack.c.bf16 %v1439_v35, %v1437_v33 }
 0x2c7   :  { %v2989_v25 = vpop.f32.mrb[2].mxu1  ;;  %v5317_v17 = vadd.f32 %v2988_v22, %v5314_v24  ;;  %3632 = vmatprep.subr.bf16.mxu1 %v3631_v16  ;;  %v1444_v22 = vld [vmem:[#allocation6 + $0x3b8] sm:$0xff] }
 0x2c8   :  { %v2990_v58 = vpop.f32.mrb[3].mxu1  ;;  %3634 = vmatpush1.bf16.msra.mxu1 %v3633_v45 }
 0x2c9   :  { %v5319_v61 = vadd.f32 %v2990_v58, %v2989_v25  ;;  %v3635_v25 = vpack.c.bf16 %v1444_v22, %v1442_v62  ;;  %v3637_v58 = vpack.c.bf16 %v1443_v54, %v1441_v43 }
 0x2cb   :  { %v2992_v63 = vpop.f32.mrb[4].mxu1  ;;  %3636 = vmatprep.subr.bf16.mxu1 %v3635_v25 }
 0x2cc   :  { %v2993_v9 = vpop.f32.mrb[5].mxu1  ;;  %3638 = vmatpush1.bf16.msra.mxu1 %v3637_v58 }
 0x2cd   :  { %v5321_v13 = vadd.f32 %v2993_v9, %v2992_v63  ;;  %v3639_v63 = vpack.c.bf16 %v1448_v3, %v1446_v60 }
 0x2cf   :  { %v2995_v14 = vpop.f32.mrb[6].mxu1  ;;  %3640 = vmatprep.subr.bf16.mxu1 %v3639_v63  ;;  %v953_v22 = vadd.f32 %v5321_v13, %v5314_v24 }
 0x2d0   :  { %v2996_v32 = vpop.f32.mrb[7].mxu1  ;;  %3642 = vmatpush1.bf16.msra.mxu1 %v3641_v10 }
 0x2d1   :  { %v5323_v18 = vadd.f32 %v2996_v32, %v2995_v14  ;;  %v461_v14 = vsub.s32 1, %v5308_v1  ;;  %3644 = vmatprep.subr.bf16.mxu1 %v3643_v21 }
 0x2d3   :  { %v2998_v29 = vpop.f32.mrb[8].mxu1  ;;  %v5348_v6 = vrot.slane %v5311_v7, %v461_v14  ;;  %v948_v7 = vadd.f32 %v5319_v61, %v5314_v24  ;;  %v958_v63 = vadd.f32 %v5323_v18, %v5314_v24 }
 0x2d4   :  { %v2999_v37 = vpop.f32.mrb[9].mxu1 }
 0x2d5   :  { %v5325_v38 = vadd.f32 %v2999_v37, %v2998_v29  ;;  %v1451_v29 = vld [vmem:[#allocation6 + $0x3f0] sm:$0xff] }
 0x2d6   :  { %v3645_v37 = vpack.c.bf16 %v1451_v29, %v1449_v28 }
 0x2d7   :  { %v3001_v8 = vpop.f32.mrb[10].mxu1  ;;  %v963_v21 = vadd.f32 %v5325_v38, %v5314_v24 }
 0x2d8   :  { %v3002_v51 = vpop.f32.mrb[11].mxu1  ;;  %3646 = vmatpush1.bf16.msra.mxu1 %v3645_v37 }
 0x2d9   :  { %v5327_v39 = vadd.f32 %v3002_v51, %v3001_v8  ;;  %v1454_v8 = vld [vmem:[#allocation6 + $0x408] sm:$0xff]  ;;  %v1456_v51 = vld [vmem:[#allocation6 + $0x418] sm:$0xff] }
 0x2db   :  { %v3004_v34 = vpop.f32.mrb[12].mxu1 }
 0x2dc   :  { %v3005_v46 = vpop.f32.mrb[13].mxu1 }
 0x2dd   :  { %v5329_v5 = vadd.f32 %v3005_v46, %v3004_v34  ;;  %v3647_v34 = vpack.c.bf16 %v1456_v51, %v1454_v8 }
 0x2df   :  { %v3007_v23 = vpop.f32.mrb[14].mxu1  ;;  %3648 = vmatprep.subr.bf16.mxu1 %v3647_v34 }
 0x2e0   :  { %v3008_v40 = vpop.f32.mrb[15].mxu1 }
 0x2e1   :  { %v5331_v55 = vadd.f32 %v3008_v40, %v3007_v23 }
 0x2e3   :  { %v3010_v11 = vpop.f32.mrb[16].mxu1 }
 0x2e4   :  { %v3011_v56 = vpop.f32.mrb[17].mxu1 }
 0x2e5   :  { %v5333_v59 = vadd.f32 %v3011_v56, %v3010_v11 }
 0x2e7   :  { %v3013_v2 = vpop.f32.mrb[18].mxu1 }
 0x2e8   :  { %v3014_v9 = vpop.f32.mrb[19].mxu1 }
 0x2e9   :  { %v3015_v12 = vadd.f32 %v3014_v9, %v3013_v2 }
 0x2eb   :  { %v744_v32 = vpop.f32.mrb[20].mxu0  ;;  %v3016_v26 = vpop.f32.mrb[20].mxu1  ;;  %v5338_v57 = vadd.f32 %v3015_v12, %v5314_v24 }
 0x2ec   :  { %v745_v30 = vpop.f32.mrb[21].mxu0  ;;  %v3017_v31 = vpop.f32.mrb[21].mxu1 }
 0x2ef   :  { %v813_v42 = vpop.f32.mrb[0].mxu0  ;;  %v1061_v48 = vpop.f32.mrb[22].mxu1 }
 0x2f0   :  { %v4030_v41 = vadd.f32 %v813_v42, %v5343_v36  ;;  %v5352_v49 = vadd.f32 %v1061_v48, %v5317_v17  ;;  %v815_v50 = vpop.f32.mrb[1].mxu0  ;;  %v3240_v46 = vpop.f32.mrb[23].mxu1  ;;  %v968_v42 = vadd.f32 %v5327_v39, %v5314_v24 }
 0x2f1   :  { %v4031_v47 = vadd.f32 %v815_v50, %v5348_v6 }
 0x2f2   :  { %v1114_v16 = vmax.f32 %v4030_v41, 0.0 }
 0x2f3   :  { %v1115_v0 = vmax.f32 %v4031_v47, 0.0  ;;  %v819_v20 = vpop.f32.mrb[2].mxu0  ;;  %v1066_v23 = vpop.f32.mrb[24].mxu1 }
 0x2f4   :  { %v4032_v33 = vadd.f32 %v819_v20, %v5343_v36  ;;  %v5358_v35 = vadd.f32 %v1066_v23, %v948_v7  ;;  %v821_v40 = vpop.f32.mrb[3].mxu0  ;;  %v3243_v45 = vpop.f32.mrb[25].mxu1  ;;  %v973_v20 = vadd.f32 %v5329_v5, %v5314_v24 }
 0x2f5   :  { %v4033_v17 = vadd.f32 %v821_v40, %v5348_v6  ;;  %1753 = vmatprep.mubr.f32.mxu0 %v1115_v0 }
 0x2f6   :  { %v1117_v62 = vmax.f32 %v4032_v33, 0.0  ;;  %1754 = vmatmul.mubr.f32.vlgmr.msra.gmra.mrb[24].mxu0 %v1114_v16 }
 0x2f7   :  { %v1118_v11 = vmax.f32 %v4033_v17, 0.0  ;;  %v825_v61 = vpop.f32.mrb[4].mxu0  ;;  %v1071_v25 = vpop.f32.mrb[26].mxu1 }
 0x2f8   :  { %v5364_v43 = vadd.f32 %v825_v61, %v5343_v36  ;;  %v5366_v54 = vadd.f32 %v1071_v25, %v953_v22  ;;  %v827_v56 = vpop.f32.mrb[5].mxu0  ;;  %v3246_v58 = vpop.f32.mrb[27].mxu1  ;;  %v978_v61 = vadd.f32 %v5331_v55, %v5314_v24  ;;  %v983_v55 = vadd.f32 %v5333_v59, %v5314_v24 }
 0x2f9   :  { %v4250_v60 = vpack.i.bf16 %v1118_v11, %v1117_v62  ;;  %v5369_v3 = vadd.f32 %v827_v56, %v5348_v6 }
 0x2fa   :  { %v1120_v44 = vmax.f32 %v5364_v43, 0.0 }
 0x2fb   :  { %v1121_v2 = vmax.f32 %v5369_v3, 0.0  ;;  %v831_v13 = vpop.f32.mrb[6].mxu0  ;;  %v1076_v4 = vpop.f32.mrb[28].mxu1  ;;  %4251 = vrot.lane.b32.xlu0 %v4250_v60, %s4659_s26 }
 0x2fc   :  { %v4036_v9 = vadd.f32 %v831_v13, %v5343_v36  ;;  %v5377_v10 = vadd.f32 %v1076_v4, %v958_v63  ;;  %v833_v12 = vpop.f32.mrb[7].mxu0  ;;  %v3249_v19 = vpop.f32.mrb[29].mxu1 }
 0x2fd   :  { %v4037_v15 = vadd.f32 %v833_v12, %v5348_v6  ;;  %1759 = vmatprep.mubr.f32.mxu0 %v1121_v2 }
 0x2fe   :  { %v1123_v18 = vmax.f32 %v4036_v9, 0.0  ;;  %1760 = vmatmul.mubr.f32.gmra.mrb[26].mxu0 %v1120_v44  ;;  %v1119_v9 = vmax.f32 %v5358_v35, 0.0 }
 0x2ff   :  { %v1124_v32 = vmax.f32 %v4037_v15, 0.0  ;;  %v837_v26 = vpop.f32.mrb[8].mxu0  ;;  %v1081_v28 = vpop.f32.mrb[30].mxu1 }
 0x300   :  { %v5387_v29 = vadd.f32 %v837_v26, %v5343_v36  ;;  %v5389_v30 = vadd.f32 %v1081_v28, %v963_v21  ;;  %v839_v31 = vpop.f32.mrb[9].mxu0  ;;  %v3252_v37 = vpop.f32.mrb[31].mxu1 }
 0x301   :  { %v5391_v8 = vpack.i.bf16 %v1124_v32, %v1123_v18  ;;  %v5394_v51 = vadd.f32 %v839_v31, %v5348_v6 }
 0x302   :  { %v1126_v41 = vmax.f32 %v5387_v29, 0.0  ;;  %v1125_v29 = vmax.f32 %v5377_v10, 0.0  ;;  %v1122_v10 = vmax.f32 %v5366_v54, 0.0  ;;  %v1128_v43 = vmax.f32 %v5389_v30, 0.0 }
 0x303   :  { %v1127_v38 = vmax.f32 %v5394_v51, 0.0  ;;  %v843_v48 = vpop.f32.mrb[10].mxu0  ;;  %v1086_v34 = vpop.f32.mrb[32].mxu1  ;;  %4256 = vrot.lane.b32.xlu1 %v5391_v8, %s4659_s26 }
 0x304   :  { %v4040_v50 = vadd.f32 %v843_v48, %v5343_v36  ;;  %v5403_v46 = vadd.f32 %v1086_v34, %v968_v42  ;;  %v845_v47 = vpop.f32.mrb[11].mxu0  ;;  %v3255_v7 = vpop.f32.mrb[33].mxu1  ;;  %v4270_v34 = vpack.i.bf16 %v1122_v10, %v1121_v2 }
 0x305   :  { %v4041_v0 = vadd.f32 %v845_v47, %v5348_v6  ;;  %1765 = vmatprep.mubr.f32.mxu0 %v1127_v38  ;;  %v4275_v3 = vpack.i.bf16 %v1128_v43, %v1127_v38 }
 0x306   :  { %v1129_v39 = vmax.f32 %v4040_v50, 0.0  ;;  %1766 = vmatmul.mubr.f32.gmra.mrb[28].mxu0 %v1126_v41  ;;  %v1131_v24 = vmax.f32 %v5403_v46, 0.0 }
 0x307   :  { %v1130_v23 = vmax.f32 %v4041_v0, 0.0  ;;  %v849_v16 = vpop.f32.mrb[12].mxu0  ;;  %v1091_v33 = vpop.f32.mrb[34].mxu1 }
 0x308   :  { %v4042_v40 = vadd.f32 %v849_v16, %v5343_v36  ;;  %v5411_v45 = vadd.f32 %v1091_v33, %v973_v20  ;;  %v851_v17 = vpop.f32.mrb[13].mxu0  ;;  %v3258_v62 = vpop.f32.mrb[35].mxu1 }
 0x309   :  { %v4295_v22 = vpack.i.bf16 %v1130_v23, %v1129_v39  ;;  %v4043_v11 = vadd.f32 %v851_v17, %v5348_v6 }
 0x30a   :  { %v1132_v5 = vmax.f32 %v4042_v40, 0.0  ;;  %v1134_v50 = vmax.f32 %v5411_v45, 0.0  ;;  %v1485_v45 = vld [vmem:[#allocation6 + $0x500] sm:$0xff] }
 0x30b   :  { %v1133_v25 = vmax.f32 %v4043_v11, 0.0  ;;  %v855_v56 = vpop.f32.mrb[14].mxu0  ;;  %v1096_v58 = vpop.f32.mrb[36].mxu1  ;;  %4261 = vrot.lane.b32.xlu0 %v4295_v22, %s4659_s26  ;;  %v1460_v11 = vld [vmem:[#allocation6 + $0x438] sm:$0xff] }
 0x30c   :  { %v4044_v60 = vadd.f32 %v855_v56, %v5343_v36  ;;  %v1097_v63 = vadd.f32 %v1096_v58, %v978_v61  ;;  %v857_v13 = vpop.f32.mrb[15].mxu0  ;;  %v3261_v4 = vpop.f32.mrb[37].mxu1  ;;  %v1116_v61 = vmax.f32 %v5352_v49, 0.0 }
 0x30d   :  { %v4045_v12 = vadd.f32 %v857_v13, %v5348_v6  ;;  %1771 = vmatprep.mubr.f32.mxu0 %v1133_v25  ;;  %v1457_v13 = vld [vmem:[#allocation6 + $0x420] sm:$0xff]  ;;  %v1459_v4 = vld [vmem:[#allocation6 + $0x430] sm:$0xff] }
 0x30e   :  { %v1135_v19 = vmax.f32 %v4044_v60, 0.0  ;;  %1772 = vmatmul.mubr.f32.gmra.mrb[30].mxu0 %v1132_v5  ;;  %v1137_v48 = vmax.f32 %v1097_v63, 0.0 }
 0x30f   :  { %v1136_v15 = vmax.f32 %v4045_v12, 0.0  ;;  %v861_v18 = vpop.f32.mrb[16].mxu0  ;;  %v1101_v21 = vpop.f32.mrb[38].mxu1  ;;  %1151 = vrot.lane.b32.xlu0 %v1119_v9, %s4659_s26  ;;  %v1462_v9 = vld [vmem:[#allocation6 + $0x448] sm:$0xff]  ;;  %v1464_v12 = vld [vmem:[#allocation6 + $0x458] sm:$0xff] }
 0x310   :  { %v1102_v32 = vadd.f32 %v1101_v21, %v983_v55  ;;  %v863_v26 = vpop.f32.mrb[17].mxu0  ;;  %v3264_v28 = vpop.f32.mrb[39].mxu1  ;;  %v4046_v46 = vadd.f32 %v861_v18, %v5343_v36  ;;  %v3655_v49 = vpack.c.bf16 %v1464_v12, %v1462_v9  ;;  %v1461_v55 = vld [vmem:[#allocation6 + $0x440] sm:$0xff]  ;;  %v1466_v21 = vld [vmem:[#allocation6 + $0x468] sm:$0xff] }
 0x311   :  { %v4300_v31 = vpack.i.bf16 %v1136_v15, %v1135_v19  ;;  %v4047_v35 = vadd.f32 %v863_v26, %v5348_v6  ;;  %v3653_v19 = vpack.c.bf16 %v1459_v4, %v1457_v13  ;;  %v1463_v15 = vld [vmem:[#allocation6 + $0x450] sm:$0xff]  ;;  %v1488_v13 = vld [vmem:[#allocation6 + $0x518] sm:$0xff] }
 0x312   :  { %v1140_v37 = vmax.f32 %v1102_v32, 0.0  ;;  %v1468_v32 = vld [vmem:[#allocation6 + $0x478] sm:$0xff] }
 0x313   :  { %v1139_v42 = vmax.f32 %v4047_v35, 0.0  ;;  %4266 = vrot.lane.b32.xlu1 %v4300_v31, %s4659_s26  ;;  %1197 = vrot.lane.b32.xlu0 %v1125_v29, %s4659_s26 }
 0x315   :  { %v4285_v59 = vpack.i.bf16 %v1140_v37, %v1139_v42  ;;  %v3659_v37 = vpack.c.bf16 %v1468_v32, %v1466_v21  ;;  %v1465_v42 = vld [vmem:[#allocation6 + $0x460] sm:$0xff]  ;;  %v1491_v32 = vld [vmem:[#allocation6 + $0x530] sm:$0xff] }
 0x316   :  { %v1489_v21 = vld [vmem:[#allocation6 + $0x520] sm:$0xff] }
 0x317   :  { %1163 = vrot.lane.b32.xlu1 %v1120_v44, %s4654_s11  ;;  %1241 = vrot.lane.b32.xlu0 %v1131_v24, %s4659_s26  ;;  %v4280_v44 = vpack.i.bf16 %v1134_v50, %v1133_v25 }
 0x31b   :  { %1208 = vrot.lane.b32.xlu1 %v1126_v41, %s4654_s11  ;;  %1285 = vrot.lane.b32.xlu0 %v1137_v48, %s4659_s26  ;;  %v1138_v41 = vmax.f32 %v4046_v46, 0.0 }
 0x31f   :  { %1252 = vrot.lane.b32.xlu1 %v1132_v5, %s4654_s11  ;;  %4271 = vrot.lane.b32.xlu0 %v4270_v34, %s4654_s11 }
 0x323   :  { %1296 = vrot.lane.b32.xlu1 %v1138_v41, %s4654_s11  ;;  %4281 = vrot.lane.b32.xlu0 %v4280_v44, %s4654_s11  ;;  %v1469_v44 = vld [vmem:[#allocation6 + $0x480] sm:$0xff]  ;;  %v1471_v41 = vld [vmem:[#allocation6 + $0x490] sm:$0xff] }
 0x327   :  { %4276 = vrot.lane.b32.xlu1 %v4275_v3, %s4654_s11  ;;  %4291 = vrot.lane.b32.xlu0 %v5391_v8, %s4660_s27 }
 0x32b   :  { %4286 = vrot.lane.b32.xlu1 %v4285_v59, %s4654_s11  ;;  %4301 = vrot.lane.b32.xlu0 %v4300_v31, %s4660_s27  ;;  %v1470_v59 = vld [vmem:[#allocation6 + $0x488] sm:$0xff] }
 0x32f   :  { %4296 = vrot.lane.b32.xlu1 %v4295_v22, %s4660_s27  ;;  %1182 = vrot.lane.b32.xlu0 %v1125_v29, %s4660_s27  ;;  %v1453_v22 = vld [vmem:[#allocation6 + $0x400] sm:$0xff]  ;;  %v3657_v29 = vpack.c.bf16 %v1463_v15, %v1461_v55 }
 0x333   :  { %1271 = vrot.lane.b32.xlu0 %v1137_v48, %s4660_s27  ;;  %v1472_v48 = vld [vmem:[#allocation6 + $0x498] sm:$0xff] }
 0x334   :  { %v3663_v46 = vpack.c.bf16 %v1472_v48, %v1470_v59  ;;  %v1500_v59 = vld [vmem:[#allocation6 + $0x578] sm:$0xff] }
 0x35d   :  { %v867_v2 = vpop.f32.mrb[18].mxu0  ;;  %v1106_v51 = vpop.f32.mrb[40].mxu1 }
 0x35e   :  { %v4048_v38 = vadd.f32 %v867_v2, %v5343_v36  ;;  %v1107_v47 = vadd.f32 %v1106_v51, %v5338_v57  ;;  %v869_v7 = vpop.f32.mrb[19].mxu0  ;;  %v3267_v0 = vpop.f32.mrb[41].mxu1  ;;  %v1455_v36 = vld [vmem:[#allocation6 + $0x410] sm:$0xff]  ;;  %v1474_v2 = vld [vmem:[#allocation6 + $0x4a8] sm:$0xff]  ;;  %v1476_v51 = vld [vmem:[#allocation6 + $0x4b8] sm:$0xff] }
 0x35f   :  { %v4049_v8 = vadd.f32 %v869_v7, %v5348_v6  ;;  %v1458_v6 = vld [vmem:[#allocation6 + $0x428] sm:$0xff]  ;;  %v3649_v58 = vpack.c.bf16 %v1455_v36, %v1453_v22  ;;  %v3667_v0 = vpack.c.bf16 %v1476_v51, %v1474_v2  ;;  %v1479_v22 = vld [vmem:[#allocation6 + $0x4d0] sm:$0xff]  ;;  %v1484_v36 = vld [vmem:[#allocation6 + $0x4f8] sm:$0xff] }
 0x360   :  { %v1141_v39 = vmax.f32 %v4048_v38, 0.0  ;;  %v1143_v62 = vmax.f32 %v1107_v47, 0.0  ;;  %v3651_v63 = vpack.c.bf16 %v1460_v11, %v1458_v6  ;;  %v3665_v38 = vpack.c.bf16 %v1471_v41, %v1469_v44  ;;  %v1499_v44 = vld [vmem:[#allocation6 + $0x570] sm:$0xff]  ;;  %v1502_v41 = vld [vmem:[#allocation6 + $0x588] sm:$0xff]  ;;  %v1504_v2 = vld [vmem:[#allocation6 + $0x598] sm:$0xff] }
 0x361   :  { %v1142_v20 = vmax.f32 %v4049_v8, 0.0  ;;  %v873_v23 = vpop.f32.mrb[22].mxu0  ;;  %v1111_v16 = vpop.f32.mrb[42].mxu1  ;;  %v1473_v8 = vld [vmem:[#allocation6 + $0x4a0] sm:$0xff] }
 0x362   :  { %v874_v33 = vpop.f32.mrb[23].mxu0  ;;  %v3270_v40 = vpop.f32.mrb[43].mxu1  ;;  %v1478_v23 = vld [vmem:[#allocation6 + $0x4c8] sm:$0xff]  ;;  %v1480_v16 = vld [vmem:[#allocation6 + $0x4d8] sm:$0xff] }
 0x363   :  { %v4305_v17 = vpack.i.bf16 %v1142_v20, %v1141_v39  ;;  %v1475_v39 = vld [vmem:[#allocation6 + $0x4b0] sm:$0xff] }
 0x364   :  { %v3669_v40 = vpack.c.bf16 %v1475_v39, %v1473_v8 }
 0x365   :  { %4306 = vrot.lane.b32.xlu1 %v4305_v17, %s4660_s27  ;;  %v3671_v17 = vpack.c.bf16 %v1480_v16, %v1478_v23  ;;  %v1507_v23 = vld [vmem:[#allocation6 + $0x5b0] sm:$0xff]  ;;  %v1510_v16 = vld [vmem:[#allocation6 + $0x5c8] sm:$0xff] }
 0x369   :  { %1227 = vrot.lane.b32.xlu1 %v1131_v24, %s4660_s27  ;;  %v1467_v24 = vld [vmem:[#allocation6 + $0x470] sm:$0xff] }
 0x36a   :  { %v3661_v34 = vpack.c.bf16 %v1467_v24, %v1465_v42  ;;  %v1495_v42 = vld [vmem:[#allocation6 + $0x550] sm:$0xff]  ;;  %v1498_v24 = vld [vmem:[#allocation6 + $0x568] sm:$0xff] }
 0x36d   :  { %1315 = vrot.lane.b32.xlu1 %v1143_v62, %s4660_s27  ;;  %v5466_v57 = vpop.permute.xlu0 %4251  ;;  %v1477_v62 = vld [vmem:[#allocation6 + $0x4c0] sm:$0xff] }
 0x36e   :  { %v4254_v25 = vunpack.i.h.bf16 %v5466_v57  ;;  %v4253_v56 = vunpack.i.l.bf16 %v5466_v57  ;;  %v3673_v11 = vpack.c.bf16 %v1479_v22, %v1477_v62  ;;  %v1509_v22 = vld [vmem:[#allocation6 + $0x5c0] sm:$0xff] }
 0x370   :  { %v1154_v5 = vsel %vm1153_vm3, %v4253_v56, %v4254_v25  ;;  %v1190_v60 = vsel %vm1153_vm3, %v1116_v61, %v4253_v56 }
 0x371   :  { %1842 = vmatprep.mubr.f32.mxu1 %v1154_v5  ;;  %v1483_v5 = vld [vmem:[#allocation6 + $0x4f0] sm:$0xff] }
 0x372   :  { %1843 = vmatmul.mubr.f32.vlgmr.msra.gmra.mrb[44].mxu1 %v1190_v60 }
 0x373   :  { %3650 = vmatpush1.bf16.msra.mxu1 %v3649_v58  ;;  %v1481_v58 = vld [vmem:[#allocation6 + $0x4e0] sm:$0xff] }
 0x374   :  { %3652 = vmatprep.subr.bf16.mxu1 %v3651_v63  ;;  %v1486_v63 = vld [vmem:[#allocation6 + $0x508] sm:$0xff]  ;;  %v3677_v9 = vpack.c.bf16 %v1483_v5, %v1481_v58  ;;  %v1515_v58 = vld [vmem:[#allocation6 + $0x5f0] sm:$0xff] }
 0x375   :  { %v5473_v18 = vpop.permute.xlu1 %4256  ;;  %v3679_v12 = vpack.c.bf16 %v1488_v13, %v1486_v63  ;;  %v1518_v5 = vld [vmem:[#allocation6 + $0x608] sm:$0xff]  ;;  %v1520_v63 = vld [vmem:[#allocation6 + $0x618] sm:$0xff] }
 0x376   :  { %v4259_v26 = vunpack.i.h.bf16 %v5473_v18  ;;  %v4258_v28 = vunpack.i.l.bf16 %v5473_v18 }
 0x377   :  { %3654 = vmatpush1.bf16.msra.mxu1 %v3653_v19  ;;  %v1487_v19 = vld [vmem:[#allocation6 + $0x510] sm:$0xff] }
 0x378   :  { %v1199_v31 = vsel %vm1153_vm3, %v4258_v28, %v4259_v26  ;;  %3656 = vmatprep.subr.bf16.mxu1 %v3655_v49  ;;  %v1234_v35 = vsel %vm1153_vm3, %v1122_v10, %v4258_v28  ;;  %v1492_v49 = vld [vmem:[#allocation6 + $0x538] sm:$0xff]  ;;  %v3681_v55 = vpack.c.bf16 %v1487_v19, %v1485_v45  ;;  %v1494_v28 = vld [vmem:[#allocation6 + $0x548] sm:$0xff]  ;;  %v1517_v45 = vld [vmem:[#allocation6 + $0x600] sm:$0xff] }
 0x379   :  { %1848 = vmatprep.mubr.f32.mxu1 %v1199_v31  ;;  %v3685_v31 = vpack.c.bf16 %v1491_v32, %v1489_v21  ;;  %v1519_v19 = vld [vmem:[#allocation6 + $0x610] sm:$0xff]  ;;  %v1521_v21 = vld [vmem:[#allocation6 + $0x620] sm:$0xff] }
 0x37a   :  { %1849 = vmatmul.mubr.f32.gmra.mrb[46].mxu1 %v1234_v35  ;;  %v1523_v32 = vld [vmem:[#allocation6 + $0x630] sm:$0xff] }
 0x37b   :  { %3658 = vmatpush1.bf16.msra.mxu1 %v3657_v29  ;;  %v1496_v29 = vld [vmem:[#allocation6 + $0x558] sm:$0xff] }
 0x37c   :  { %3660 = vmatprep.subr.bf16.mxu1 %v3659_v37  ;;  %v3687_v35 = vpack.c.bf16 %v1496_v29, %v1494_v28  ;;  %v1493_v37 = vld [vmem:[#allocation6 + $0x540] sm:$0xff] }
 0x37d   :  { %v5483_v3 = vpop.permute.xlu0 %4261  ;;  %v3689_v48 = vpack.c.bf16 %v1495_v42, %v1493_v37  ;;  %v3717_v42 = vpack.c.bf16 %v1523_v32, %v1521_v21  ;;  %v1549_v21 = vld [vmem:[#allocation6 + $0x700] sm:$0xff]  ;;  %v1551_v32 = vld [vmem:[#allocation6 + $0x710] sm:$0xff] }
 0x37e   :  { %v4264_v54 = vunpack.i.h.bf16 %v5483_v3  ;;  %v4263_v10 = vunpack.i.l.bf16 %v5483_v3 }
 0x37f   :  { %3662 = vmatpush1.bf16.msra.mxu1 %v3661_v34  ;;  %v3691_v34 = vpack.c.bf16 %v1500_v59, %v1498_v24  ;;  %v1525_v59 = vld [vmem:[#allocation6 + $0x640] sm:$0xff] }
 0x380   :  { %v1243_v47 = vsel %vm1153_vm3, %v4263_v10, %v4264_v54  ;;  %3664 = vmatprep.subr.bf16.mxu1 %v3663_v46  ;;  %v1278_v7 = vsel %vm1153_vm3, %v1128_v43, %v4263_v10  ;;  %v1482_v43 = vld [vmem:[#allocation6 + $0x4e8] sm:$0xff]  ;;  %v1497_v46 = vld [vmem:[#allocation6 + $0x560] sm:$0xff]  ;;  %v3695_v10 = vpack.c.bf16 %v1504_v2, %v1502_v41 }
 0x381   :  { %v1152_v20 = vpop.permute.xlu0 %1151  ;;  %1854 = vmatprep.mubr.f32.mxu1 %v1243_v47  ;;  %v3675_v56 = vpack.c.bf16 %v1484_v36, %v1482_v43  ;;  %v3693_v51 = vpack.c.bf16 %v1499_v44, %v1497_v46  ;;  %v1503_v47 = vld [vmem:[#allocation6 + $0x590] sm:$0xff]  ;;  %v1530_v46 = vld [vmem:[#allocation6 + $0x668] sm:$0xff]  ;;  %v1532_v44 = vld [vmem:[#allocation6 + $0x678] sm:$0xff] }
 0x382   :  { %v5494_v33 = vsel %vm1153_vm3, %v4254_v25, %v1152_v20  ;;  %1855 = vmatmul.mubr.f32.gmra.mrb[48].mxu1 %v1278_v7  ;;  %v1506_v7 = vld [vmem:[#allocation6 + $0x5a8] sm:$0xff]  ;;  %v1511_v43 = vld [vmem:[#allocation6 + $0x5d0] sm:$0xff] }
 0x383   :  { %3666 = vmatpush1.bf16.msra.mxu1 %v3665_v38  ;;  %v1501_v38 = vld [vmem:[#allocation6 + $0x580] sm:$0xff] }
 0x384   :  { %3668 = vmatprep.subr.bf16.mxu1 %v3667_v0  ;;  %v1508_v0 = vld [vmem:[#allocation6 + $0x5b8] sm:$0xff]  ;;  %v3697_v8 = vpack.c.bf16 %v1503_v47, %v1501_v38  ;;  %v1529_v38 = vld [vmem:[#allocation6 + $0x660] sm:$0xff]  ;;  %v1531_v47 = vld [vmem:[#allocation6 + $0x670] sm:$0xff] }
 0x385   :  { %v5496_v30 = vpop.permute.xlu1 %4266  ;;  %v3699_v39 = vpack.c.bf16 %v1508_v0, %v1506_v7  ;;  %v1198_v36 = vpop.permute.xlu0 %1197  ;;  %v1536_v7 = vld [vmem:[#allocation6 + $0x698] sm:$0xff] }
 0x386   :  { %v4269_v57 = vunpack.i.h.bf16 %v5496_v30  ;;  %v4268_v6 = vunpack.i.l.bf16 %v5496_v30  ;;  %v1544_v30 = vld [vmem:[#allocation6 + $0x6d8] sm:$0xff] }
 0x387   :  { %3670 = vmatpush1.bf16.msra.mxu1 %v3669_v40  ;;  %v1512_v40 = vld [vmem:[#allocation6 + $0x5d8] sm:$0xff] }
 0x388   :  { %v1287_v61 = vsel %vm1153_vm3, %v4268_v6, %v4269_v57  ;;  %3672 = vmatprep.subr.bf16.mxu1 %v3671_v17  ;;  %v1322_v25 = vsel %vm1153_vm3, %v1134_v50, %v4268_v6  ;;  %v1490_v50 = vld [vmem:[#allocation6 + $0x528] sm:$0xff]  ;;  %v3703_v62 = vpack.c.bf16 %v1512_v40, %v1510_v16  ;;  %v1533_v16 = vld [vmem:[#allocation6 + $0x680] sm:$0xff]  ;;  %v1535_v40 = vld [vmem:[#allocation6 + $0x690] sm:$0xff] }
 0x389   :  { %v5506_v60 = vpop.permute.xlu1 %1163  ;;  %1860 = vmatprep.mubr.f32.mxu1 %v1287_v61  ;;  %v3683_v15 = vpack.c.bf16 %v1492_v49, %v1490_v50  ;;  %v1514_v6 = vld [vmem:[#allocation6 + $0x5e8] sm:$0xff]  ;;  %v3705_v61 = vpack.c.bf16 %v1511_v43, %v1509_v22  ;;  %v1242_v13 = vpop.permute.xlu0 %1241  ;;  %v1524_v49 = vld [vmem:[#allocation6 + $0x638] sm:$0xff]  ;;  %v3729_v22 = vpack.c.bf16 %v1535_v40, %v1533_v16 }
 0x38a   :  { %1861 = vmatmul.mubr.f32.gmra.mrb[50].mxu1 %v1322_v25  ;;  %v1191_v4 = vsel %vm257_vm0, %v1152_v20, %v5506_v60  ;;  %v1505_v20 = vld [vmem:[#allocation6 + $0x5a0] sm:$0xff]  ;;  %v1522_v50 = vld [vmem:[#allocation6 + $0x628] sm:$0xff]  ;;  %v1244_v18 = vsel %vm1153_vm3, %v4264_v54, %v1242_v13  ;;  %v1568_v16 = vld [vmem:[#allocation6 + $0x798] sm:$0xff] }
 0x38b   :  { %3674 = vmatpush1.bf16.msra.mxu1 %v3673_v11  ;;  %1931 = vmatprep.mubr.f32.mxu1 %v1191_v4  ;;  %v3701_v17 = vpack.c.bf16 %v1507_v23, %v1505_v20  ;;  %v1516_v11 = vld [vmem:[#allocation6 + $0x5f8] sm:$0xff]  ;;  %v3725_v20 = vpack.c.bf16 %v1531_v47, %v1529_v38  ;;  %v1538_v54 = vld [vmem:[#allocation6 + $0x6a8] sm:$0xff] }
 0x38c   :  { %3676 = vmatprep.subr.bf16.mxu1 %v3675_v56  ;;  %v3707_v25 = vpack.c.bf16 %v1516_v11, %v1514_v6  ;;  %v1513_v56 = vld [vmem:[#allocation6 + $0x5e0] sm:$0xff]  ;;  %v1539_v6 = vld [vmem:[#allocation6 + $0x6b0] sm:$0xff]  ;;  %v1542_v11 = vld [vmem:[#allocation6 + $0x6c8] sm:$0xff] }
 0x38d   :  { %v5510_v4 = vpop.permute.xlu1 %1208  ;;  %v1286_v28 = vpop.permute.xlu0 %1285  ;;  %v1562_v38 = vld [vmem:[#allocation6 + $0x768] sm:$0xff]  ;;  %v1564_v47 = vld [vmem:[#allocation6 + $0x778] sm:$0xff] }
 0x38e   :  { %v1235_v37 = vsel %vm257_vm0, %v1198_v36, %v5510_v4  ;;  %v1288_v3 = vsel %vm1153_vm3, %v4269_v57, %v1286_v28 }
 0x38f   :  { %3678 = vmatpush1.bf16.msra.mxu1 %v3677_v9  ;;  %v3709_v9 = vpack.c.bf16 %v1515_v58, %v1513_v56  ;;  %v1543_v56 = vld [vmem:[#allocation6 + $0x6d0] sm:$0xff]  ;;  %v1546_v58 = vld [vmem:[#allocation6 + $0x6e8] sm:$0xff] }
 0x390   :  { %3680 = vmatprep.subr.bf16.mxu1 %v3679_v12  ;;  %v3711_v12 = vpack.c.bf16 %v1520_v63, %v1518_v5  ;;  %v1548_v5 = vld [vmem:[#allocation6 + $0x6f8] sm:$0xff] }
 0x391   :  { %v5512_v29 = vpop.permute.xlu1 %1252  ;;  %v5522_v41 = vpop.permute.xlu0 %4271 }
 0x392   :  { %v4274_v0 = vunpack.i.h.bf16 %v5522_v41 }
 0x393   :  { %3682 = vmatpush1.bf16.msra.mxu1 %v3681_v55  ;;  %v3713_v55 = vpack.c.bf16 %v1519_v19, %v1517_v45  ;;  %v1550_v19 = vld [vmem:[#allocation6 + $0x708] sm:$0xff] }
 0x394   :  { %3684 = vmatprep.subr.bf16.mxu1 %v3683_v15  ;;  %v3715_v15 = vpack.c.bf16 %v1524_v49, %v1522_v50  ;;  %v1552_v50 = vld [vmem:[#allocation6 + $0x718] sm:$0xff] }
 0x395   :  { %v5524_v2 = vpop.permute.xlu1 %1296 }
 0x397   :  { %3686 = vmatpush1.bf16.msra.mxu1 %v3685_v31  ;;  %v1526_v31 = vld [vmem:[#allocation6 + $0x648] sm:$0xff] }
 0x398   :  { %3688 = vmatprep.subr.bf16.mxu1 %v3687_v35  ;;  %v1528_v35 = vld [vmem:[#allocation6 + $0x658] sm:$0xff] }
 0x399   :  { %v3719_v24 = vpack.c.bf16 %v1528_v35, %v1526_v31  ;;  %v1556_v31 = vld [vmem:[#allocation6 + $0x738] sm:$0xff]  ;;  %v3745_v35 = vpack.c.bf16 %v1551_v32, %v1549_v21 }
 0x39b   :  { %3690 = vmatpush1.bf16.msra.mxu1 %v3689_v48  ;;  %v1527_v48 = vld [vmem:[#allocation6 + $0x650] sm:$0xff] }
 0x39c   :  { %3692 = vmatprep.subr.bf16.mxu1 %v3691_v34  ;;  %v1200_v34 = vsel %vm1153_vm3, %v4259_v26, %v1198_v36  ;;  %v1534_v26 = vld [vmem:[#allocation6 + $0x688] sm:$0xff]  ;;  %v1537_v36 = vld [vmem:[#allocation6 + $0x6a0] sm:$0xff] }
 0x39d   :  { %v3727_v23 = vpack.c.bf16 %v1536_v7, %v1534_v26  ;;  %v3733_v57 = vpack.c.bf16 %v1539_v6, %v1537_v36  ;;  %v3755_v26 = vpack.c.bf16 %v1564_v47, %v1562_v38  ;;  %v1561_v7 = vld [vmem:[#allocation6 + $0x760] sm:$0xff]  ;;  %v1572_v36 = vld [vmem:[#allocation6 + $0x7b8] sm:$0xff]  ;;  %v1578_v47 = vld [vmem:[#allocation6 + $0x7e8] sm:$0xff] }
 0x39e   :  { %v1569_v6 = vld [vmem:[#allocation6 + $0x7a0] sm:$0xff] }
 0x39f   :  { %3694 = vmatpush1.bf16.msra.mxu1 %v3693_v51  ;;  %v3721_v51 = vpack.c.bf16 %v1527_v48, %v1525_v59  ;;  %v1558_v48 = vld [vmem:[#allocation6 + $0x748] sm:$0xff]  ;;  %v2254_v38 = vld [vmem:[#allocation9 + $0xb8] sm:$0xff] }
 0x3a0   :  { %3696 = vmatprep.subr.bf16.mxu1 %v3695_v10  ;;  %v3723_v10 = vpack.c.bf16 %v1532_v44, %v1530_v46 }
 0x3a3   :  { %3698 = vmatpush1.bf16.msra.mxu1 %v3697_v8  ;;  %v4273_v8 = vunpack.i.l.bf16 %v5522_v41 }
 0x3a4   :  { %3700 = vmatprep.subr.bf16.mxu1 %v3699_v39  ;;  %v1323_v39 = vsel %vm257_vm0, %v1286_v28, %v5524_v2  ;;  %v1554_v28 = vld [vmem:[#allocation6 + $0x728] sm:$0xff] }
 0x3a7   :  { %3702 = vmatpush1.bf16.msra.mxu1 %v3701_v17  ;;  %v1540_v17 = vld [vmem:[#allocation6 + $0x6b8] sm:$0xff] }
 0x3a8   :  { %3704 = vmatprep.subr.bf16.mxu1 %v3703_v62  ;;  %v1170_v62 = vsel %vm257_vm0, %v4273_v8, %v4274_v0  ;;  %v3731_v43 = vpack.c.bf16 %v1540_v17, %v1538_v54  ;;  %v1565_v17 = vld [vmem:[#allocation6 + $0x780] sm:$0xff] }
 0x3ab   :  { %3706 = vmatpush1.bf16.msra.mxu1 %v3705_v61  ;;  %v3735_v61 = vpack.c.bf16 %v1544_v30, %v1542_v11  ;;  %v1571_v11 = vld [vmem:[#allocation6 + $0x7b0] sm:$0xff]  ;;  %v2247_v30 = vld [vmem:[#allocation9 + $0x80] sm:$0xff] }
 0x3ac   :  { %3708 = vmatprep.subr.bf16.mxu1 %v3707_v25  ;;  %v1541_v25 = vld [vmem:[#allocation6 + $0x6c0] sm:$0xff] }
 0x3ad   :  { %v3737_v63 = vpack.c.bf16 %v1543_v56, %v1541_v25 }
 0x3af   :  { %3710 = vmatpush1.bf16.msra.mxu1 %v3709_v9  ;;  %v1545_v9 = vld [vmem:[#allocation6 + $0x6e0] sm:$0xff] }
 0x3b0   :  { %3712 = vmatprep.subr.bf16.mxu1 %v3711_v12  ;;  %v1547_v12 = vld [vmem:[#allocation6 + $0x6f0] sm:$0xff] }
 0x3b2   :  { %1932 = vmatmul.mubr.f32.vlgmr.msra.gmra.mrb[44].mxu1 %v5494_v33  ;;  %v1279_v33 = vsel %vm257_vm0, %v1242_v13, %v5512_v29  ;;  %v3739_v13 = vpack.c.bf16 %v1548_v5, %v1546_v58  ;;  %v2232_v58 = vld [vmem:[#allocation9 + $0x8] sm:$0xff]  ;;  %v2249_v5 = vld [vmem:[#allocation9 + $0x90] sm:$0xff] }
 0x3b3   :  { %1937 = vmatprep.mubr.f32.mxu1 %v1235_v37  ;;  %3714 = vmatpush1.bf16.msra.mxu1 %v3713_v55  ;;  %v3741_v55 = vpack.c.bf16 %v1547_v12, %v1545_v9  ;;  %v3747_v37 = vpack.c.bf16 %v1556_v31, %v1554_v28  ;;  %v1574_v28 = vld [vmem:[#allocation6 + $0x7c8] sm:$0xff]  ;;  %v1576_v31 = vld [vmem:[#allocation6 + $0x7d8] sm:$0xff] }
 0x3b4   :  { %3716 = vmatprep.subr.bf16.mxu1 %v3715_v15  ;;  %v3743_v15 = vpack.c.bf16 %v1552_v50, %v1550_v19  ;;  %v2233_v50 = vld [vmem:[#allocation9 + $0x10] sm:$0xff] }
 0x3b6   :  { %1938 = vmatmul.mubr.f32.gmra.mrb[46].mxu1 %v1200_v34  ;;  %v1560_v34 = vld [vmem:[#allocation6 + $0x758] sm:$0xff] }
 0x3b7   :  { %1943 = vmatprep.mubr.f32.mxu1 %v1279_v33  ;;  %3718 = vmatpush1.bf16.msra.mxu1 %v3717_v42  ;;  %v1553_v42 = vld [vmem:[#allocation6 + $0x720] sm:$0xff]  ;;  %v3751_v33 = vpack.c.bf16 %v1560_v34, %v1558_v48  ;;  %v3765_v48 = vpack.c.bf16 %v1571_v11, %v1569_v6  ;;  %v5567_v11 = vpop.permute.xlu1 %4276 }
 0x3b8   :  { %3720 = vmatprep.subr.bf16.mxu1 %v3719_v24  ;;  %v1555_v24 = vld [vmem:[#allocation6 + $0x730] sm:$0xff]  ;;  %v1573_v34 = vld [vmem:[#allocation6 + $0x7c0] sm:$0xff] }
 0x3b9   :  { %v3749_v44 = vpack.c.bf16 %v1555_v24, %v1553_v42 }
 0x3ba   :  { %1944 = vmatmul.mubr.f32.gmra.mrb[48].mxu1 %v1244_v18 }
 0x3bb   :  { %1949 = vmatprep.mubr.f32.mxu1 %v1323_v39  ;;  %3722 = vmatpush1.bf16.msra.mxu1 %v3721_v51  ;;  %v1557_v51 = vld [vmem:[#allocation6 + $0x740] sm:$0xff]  ;;  %v1563_v39 = vld [vmem:[#allocation6 + $0x770] sm:$0xff] }
 0x3bc   :  { %3724 = vmatprep.subr.bf16.mxu1 %v3723_v10  ;;  %v1559_v10 = vld [vmem:[#allocation6 + $0x750] sm:$0xff] }
 0x3bd   :  { %v3753_v18 = vpack.c.bf16 %v1559_v10, %v1557_v51  ;;  %v1575_v51 = vld [vmem:[#allocation6 + $0x7d0] sm:$0xff] }
 0x3be   :  { %1950 = vmatmul.mubr.f32.gmra.mrb[50].mxu1 %v1288_v3  ;;  %v3757_v3 = vpack.c.bf16 %v1563_v39, %v1561_v7  ;;  %v2253_v10 = vld [vmem:[#allocation9 + $0xb0] sm:$0xff]  ;;  %v3769_v7 = vpack.c.bf16 %v1575_v51, %v1573_v34  ;;  %v1577_v39 = vld [vmem:[#allocation6 + $0x7e0] sm:$0xff]  ;;  %v1590_v34 = vld [vmem:[#allocation6 + $0x848] sm:$0xff] }
 0x3bf   :  { %3726 = vmatpush1.bf16.msra.mxu1 %v3725_v20  ;;  %2020 = vmatprep.mubr.f32.mxu1 %v1170_v62  ;;  %v1567_v62 = vld [vmem:[#allocation6 + $0x790] sm:$0xff] }
 0x3c0   :  { %3728 = vmatprep.subr.bf16.mxu1 %v3727_v23  ;;  %v1566_v23 = vld [vmem:[#allocation6 + $0x788] sm:$0xff]  ;;  %v3761_v25 = vpack.c.bf16 %v1567_v62, %v1565_v17  ;;  %v1579_v17 = vld [vmem:[#allocation6 + $0x7f0] sm:$0xff] }
 0x3c1   :  { %v3759_v54 = vpack.c.bf16 %v1568_v16, %v1566_v23  ;;  %v3883_v23 = vpack.c.bf16 %v2254_v38, %v2253_v10  ;;  %v2237_v16 = vld [vmem:[#allocation9 + $0x30] sm:$0xff]  ;;  %v2255_v62 = vld [vmem:[#allocation9 + $0xc0] sm:$0xff]  ;;  %v2260_v51 = vld [vmem:[#allocation9 + $0xe8] sm:$0xff] }
 0x3c3   :  { %3730 = vmatpush1.bf16.msra.mxu1 %v3729_v22  ;;  %v1677_v22 = vld [vmem:[#allocation7] sm:$0x3] }
 0x3c4   :  { %3732 = vmatprep.subr.bf16.mxu1 %v3731_v43  ;;  %v1570_v43 = vld [vmem:[#allocation6 + $0x7a8] sm:$0xff]  ;;  %v5559_v21 = vrot.slane %v1677_v22, %v461_v14 }
 0x3c5   :  { %v3763_v9 = vpack.c.bf16 %v1572_v36, %v1570_v43  ;;  %v2235_v14 = vld [vmem:[#allocation9 + $0x20] sm:$0xff]  ;;  %v1584_v36 = vld [vmem:[#allocation6 + $0x818] sm:$0xff] }
 0x3c6   :  { %v1582_v43 = vld [vmem:[#allocation6 + $0x808] sm:$0xff] }
 0x3c7   :  { %3734 = vmatpush1.bf16.msra.mxu1 %v3733_v57  ;;  %v2248_v57 = vld [vmem:[#allocation9 + $0x88] sm:$0xff] }
 0x3c8   :  { %3736 = vmatprep.subr.bf16.mxu1 %v3735_v61  ;;  %v2231_v61 = vld [vmem:[#allocation9] sm:$0xff]  ;;  %v3871_v56 = vpack.c.bf16 %v2248_v57, %v2247_v30  ;;  %v3773_v30 = vpack.c.bf16 %v1579_v17, %v1577_v39 }
 0x3c9   :  { %v5541_v45 = vpop.f32.mrb[24].mxu0  ;;  %v3873_v12 = vpack.c.bf16 %v2232_v58, %v2231_v61  ;;  %v2239_v61 = vld [vmem:[#allocation9 + $0x40] sm:$0xff] }
 0x3ca   :  { %v5543_v49 = vpop.f32.mrb[25].mxu0  ;;  %3872 = vmatprep.subr.bf16.mxu0 %v3871_v56  ;;  %v3775_v56 = vpack.c.bf16 %v1584_v36, %v1582_v43  ;;  %v1581_v58 = vld [vmem:[#allocation6 + $0x800] sm:$0xff]  ;;  %v1594_v17 = vld [vmem:[#allocation6 + $0x868] sm:$0xff] }
 0x3cb   :  { %3738 = vmatpush1.bf16.msra.mxu1 %v3737_v63  ;;  %v2250_v63 = vld [vmem:[#allocation9 + $0x98] sm:$0xff]  ;;  %3874 = vmatpush3.bf16.msra.mxu0 %v3873_v12  ;;  %v2257_v12 = vld [vmem:[#allocation9 + $0xd0] sm:$0xff] }
 0x3cc   :  { %3740 = vmatprep.subr.bf16.mxu1 %v3739_v13  ;;  %v5555_v13 = vrot.slane %v1677_v22, %v457_v53  ;;  %v3875_v19 = vpack.c.bf16 %v2250_v63, %v2249_v5  ;;  %v2256_v22 = vld [vmem:[#allocation9 + $0xc8] sm:$0xff] }
 0x3cd   :  { %v3887_v57 = vpack.c.bf16 %v2256_v22, %v2255_v62  ;;  %v1583_v5 = vld [vmem:[#allocation6 + $0x810] sm:$0xff]  ;;  %v1586_v63 = vld [vmem:[#allocation6 + $0x828] sm:$0xff]  ;;  %v1596_v62 = vld [vmem:[#allocation6 + $0x878] sm:$0xff] }
 0x3ce   :  { %3876 = vmatprep.subr.bf16.mxu0 %v3875_v19  ;;  %v2258_v19 = vld [vmem:[#allocation9 + $0xd8] sm:$0xff] }
 0x3cf   :  { %3742 = vmatpush1.bf16.msra.mxu1 %v3741_v55  ;;  %v2234_v55 = vld [vmem:[#allocation9 + $0x18] sm:$0xff] }
 0x3d0   :  { %3744 = vmatprep.subr.bf16.mxu1 %v3743_v15  ;;  %v2251_v15 = vld [vmem:[#allocation9 + $0xa0] sm:$0xff]  ;;  %v3877_v42 = vpack.c.bf16 %v2234_v55, %v2233_v50  ;;  %v4279_v50 = vunpack.i.h.bf16 %v5567_v11  ;;  %v4278_v55 = vunpack.i.l.bf16 %v5567_v11  ;;  %v1659_v11 = vld [vmem:[#allocation6 + $0xa70] sm:$0xff] }
 0x3d1   :  { %v5545_v59 = vpop.f32.mrb[26].mxu0 }
 0x3d2   :  { %v5547_v46 = vpop.f32.mrb[27].mxu0  ;;  %3878 = vmatpush3.bf16.msra.mxu0 %v3877_v42  ;;  %v1585_v42 = vld [vmem:[#allocation6 + $0x820] sm:$0xff] }
 0x3d3   :  { %3746 = vmatpush1.bf16.msra.mxu1 %v3745_v35  ;;  %v2252_v35 = vld [vmem:[#allocation9 + $0xa8] sm:$0xff] }
 0x3d4   :  { %3748 = vmatprep.subr.bf16.mxu1 %v3747_v37  ;;  %v3879_v1 = vpack.c.bf16 %v2252_v35, %v2251_v15  ;;  %v2242_v35 = vld [vmem:[#allocation9 + $0x58] sm:$0xff] }
 0x3d6   :  { %3880 = vmatprep.subr.bf16.mxu0 %v3879_v1  ;;  %v3891_v1 = vpack.c.bf16 %v2258_v19, %v2257_v12 }
 0x3d7   :  { %3750 = vmatpush1.bf16.msra.mxu1 %v3749_v44  ;;  %v2236_v44 = vld [vmem:[#allocation9 + $0x28] sm:$0xff] }
 0x3d8   :  { %3752 = vmatprep.subr.bf16.mxu1 %v3751_v33  ;;  %v3767_v33 = vpack.c.bf16 %v1576_v31, %v1574_v28  ;;  %v3777_v28 = vpack.c.bf16 %v1583_v5, %v1581_v58  ;;  %v2241_v31 = vld [vmem:[#allocation9 + $0x50] sm:$0xff]  ;;  %v1598_v58 = vld [vmem:[#allocation6 + $0x888] sm:$0xff] }
 0x3d9   :  { %v5549_v20 = vpop.f32.mrb[28].mxu0  ;;  %v1600_v5 = vld [vmem:[#allocation6 + $0x898] sm:$0xff] }
 0x3da   :  { %v5551_v40 = vpop.f32.mrb[29].mxu0 }
 0x3db   :  { %3754 = vmatpush1.bf16.msra.mxu1 %v3753_v18  ;;  %v1580_v18 = vld [vmem:[#allocation6 + $0x7f8] sm:$0xff] }
 0x3dc   :  { %3756 = vmatprep.subr.bf16.mxu1 %v3755_v26  ;;  %v3881_v26 = vpack.c.bf16 %v2236_v44, %v2235_v14  ;;  %v1169_v14 = vsel %vm257_vm0, %v5506_v60, %v4273_v8  ;;  %v1592_v44 = vld [vmem:[#allocation6 + $0x858] sm:$0xff]  ;;  %v2243_v60 = vld [vmem:[#allocation9 + $0x60] sm:$0xff]  ;;  %v2244_v8 = vld [vmem:[#allocation9 + $0x68] sm:$0xff] }
 0x3dd   :  { %v3783_v39 = vpack.c.bf16 %v1592_v44, %v1590_v34  ;;  %v1601_v34 = vld [vmem:[#allocation6 + $0x8a0] sm:$0xff]  ;;  %v1608_v44 = vld [vmem:[#allocation6 + $0x8d8] sm:$0xff] }
 0x3de   :  { %3882 = vmatpush3.bf16.msra.mxu0 %v3881_v26  ;;  %v5582_v26 = vpop.permute.xlu1 %4286 }
 0x3df   :  { %3758 = vmatpush1.bf16.msra.mxu1 %v3757_v3  ;;  %v2238_v3 = vld [vmem:[#allocation9 + $0x38] sm:$0xff]  ;;  %3884 = vmatprep.subr.bf16.mxu0 %v3883_v23  ;;  %v4289_v22 = vunpack.i.h.bf16 %v5582_v26  ;;  %v4288_v43 = vunpack.i.l.bf16 %v5582_v26 }
 0x3e0   :  { %3760 = vmatprep.subr.bf16.mxu1 %v3759_v54  ;;  %v3771_v54 = vpack.c.bf16 %v1580_v18, %v1578_v47  ;;  %v3885_v6 = vpack.c.bf16 %v2238_v3, %v2237_v16  ;;  %v1215_v47 = vsel %vm257_vm0, %v4278_v55, %v4279_v50  ;;  %v3893_v18 = vpack.c.bf16 %v2242_v35, %v2241_v31  ;;  %v1589_v23 = vld [vmem:[#allocation6 + $0x840] sm:$0xff]  ;;  %v1591_v16 = vld [vmem:[#allocation6 + $0x850] sm:$0xff]  ;;  %v1602_v31 = vld [vmem:[#allocation6 + $0x8a8] sm:$0xff] }
 0x3e1   :  { %v1773_v32 = vpop.f32.mrb[30].mxu0  ;;  %v1303_v12 = vsel %vm257_vm0, %v4288_v43, %v4289_v22  ;;  %v1604_v35 = vld [vmem:[#allocation6 + $0x8b8] sm:$0xff]  ;;  %v1669_v26 = vld [vmem:[#allocation6 + $0xac0] sm:$0xff] }
 0x3e2   :  { %v5562_v37 = vadd.f32 %v1773_v32, %v5555_v13  ;;  %v1775_v53 = vpop.f32.mrb[31].mxu0  ;;  %3886 = vmatpush3.bf16.msra.mxu0 %v3885_v6  ;;  %v5571_v32 = vpop.permute.xlu0 %4281  ;;  %v3897_v6 = vpack.c.bf16 %v2244_v8, %v2243_v60  ;;  %v1609_v8 = vld [vmem:[#allocation6 + $0x8e0] sm:$0xff] }
 0x3e3   :  { %v5565_v24 = vadd.f32 %v1775_v53, %v5559_v21  ;;  %3762 = vmatpush1.bf16.msra.mxu1 %v3761_v25  ;;  %v2240_v25 = vld [vmem:[#allocation9 + $0x48] sm:$0xff]  ;;  %3888 = vmatprep.subr.bf16.mxu0 %v3887_v57  ;;  %v4284_v10 = vunpack.i.h.bf16 %v5571_v32  ;;  %v4283_v38 = vunpack.i.l.bf16 %v5571_v32  ;;  %v3785_v57 = vpack.c.bf16 %v1591_v16, %v1589_v23  ;;  %v1616_v16 = vld [vmem:[#allocation6 + $0x918] sm:$0xff] }
 0x3e4   :  { %3764 = vmatprep.subr.bf16.mxu1 %v3763_v9  ;;  %v1588_v9 = vld [vmem:[#allocation6 + $0x838] sm:$0xff]  ;;  %v3889_v15 = vpack.c.bf16 %v2240_v25, %v2239_v61  ;;  %v1593_v61 = vld [vmem:[#allocation6 + $0x860] sm:$0xff]  ;;  %v1595_v25 = vld [vmem:[#allocation6 + $0x870] sm:$0xff] }
 0x3e5   :  { %v3779_v53 = vpack.c.bf16 %v1588_v9, %v1586_v63  ;;  %v1259_v36 = vsel %vm257_vm0, %v4283_v38, %v4284_v10  ;;  %v3789_v19 = vpack.c.bf16 %v1595_v25, %v1593_v61  ;;  %v1614_v23 = vld [vmem:[#allocation6 + $0x908] sm:$0xff]  ;;  %v1619_v61 = vld [vmem:[#allocation6 + $0x930] sm:$0xff] }
 0x3e6   :  { %3890 = vmatpush3.bf16.msra.mxu0 %v3889_v15  ;;  %v1597_v15 = vld [vmem:[#allocation6 + $0x880] sm:$0xff]  ;;  %v1622_v25 = vld [vmem:[#allocation6 + $0x948] sm:$0xff] }
 0x3e7   :  { %3766 = vmatpush1.bf16.msra.mxu1 %v3765_v48  ;;  %v1587_v48 = vld [vmem:[#allocation6 + $0x830] sm:$0xff]  ;;  %3892 = vmatprep.subr.bf16.mxu0 %v3891_v1 }
 0x3e8   :  { %3768 = vmatprep.subr.bf16.mxu1 %v3767_v33  ;;  %v2259_v33 = vld [vmem:[#allocation9 + $0xe0] sm:$0xff]  ;;  %v1603_v1 = vld [vmem:[#allocation6 + $0x8b0] sm:$0xff] }
 0x3e9   :  { %v3895_v3 = vpack.c.bf16 %v2260_v51, %v2259_v33  ;;  %v1605_v51 = vld [vmem:[#allocation6 + $0x8c0] sm:$0xff] }
 0x3ea   :  { %3894 = vmatpush3.bf16.msra.mxu0 %v3893_v18  ;;  %v1612_v18 = vld [vmem:[#allocation6 + $0x8f8] sm:$0xff] }
 0x3eb   :  { %3770 = vmatpush1.bf16.msra.mxu1 %v3769_v7  ;;  %v3781_v7 = vpack.c.bf16 %v1587_v48, %v1585_v42  ;;  %3896 = vmatprep.subr.bf16.mxu0 %v3895_v3  ;;  %v3795_v48 = vpack.c.bf16 %v1604_v35, %v1602_v31  ;;  %v1625_v31 = vld [vmem:[#allocation6 + $0x960] sm:$0xff]  ;;  %v1627_v35 = vld [vmem:[#allocation6 + $0x970] sm:$0xff] }
 0x3ec   :  { %3772 = vmatprep.subr.bf16.mxu1 %v3771_v54  ;;  %v1214_v54 = vsel %vm257_vm0, %v5510_v4, %v4278_v55  ;;  %v3787_v4 = vpack.c.bf16 %v1596_v62, %v1594_v17  ;;  %v3791_v55 = vpack.c.bf16 %v1600_v5, %v1598_v58  ;;  %v1613_v17 = vld [vmem:[#allocation6 + $0x900] sm:$0xff]  ;;  %v1615_v62 = vld [vmem:[#allocation6 + $0x910] sm:$0xff] }
 0x3ee   :  { %3898 = vmatpush3.bf16.msra.mxu0 %v3897_v6  ;;  %v3809_v6 = vpack.c.bf16 %v1615_v62, %v1613_v17  ;;  %v1641_v62 = vld [vmem:[#allocation6 + $0x9e0] sm:$0xff] }
 0x3ef   :  { %3774 = vmatpush1.bf16.msra.mxu1 %v3773_v30  ;;  %v5591_v30 = vpop.permute.xlu0 %4291 }
 0x3f0   :  { %3776 = vmatprep.subr.bf16.mxu1 %v3775_v56  ;;  %v1258_v56 = vsel %vm257_vm0, %v5512_v29, %v4283_v38  ;;  %v4294_v63 = vunpack.i.h.bf16 %v5591_v30  ;;  %v4293_v9 = vunpack.i.l.bf16 %v5591_v30  ;;  %v1599_v29 = vld [vmem:[#allocation6 + $0x890] sm:$0xff] }
 0x3f1   :  { %v3793_v42 = vpack.c.bf16 %v1599_v29, %v1597_v15  ;;  %v1607_v38 = vld [vmem:[#allocation6 + $0x8d0] sm:$0xff]  ;;  %v1628_v15 = vld [vmem:[#allocation6 + $0x978] sm:$0xff] }
 0x3f2   :  { %2021 = vmatmul.mubr.f32.vlgmr.msra.gmra.mrb[44].mxu1 %v1169_v14  ;;  %v1606_v14 = vld [vmem:[#allocation6 + $0x8c8] sm:$0xff] }
 0x3f3   :  { %2026 = vmatprep.mubr.f32.mxu1 %v1215_v47  ;;  %3778 = vmatpush1.bf16.msra.mxu1 %v3777_v28  ;;  %v1302_v28 = vsel %vm257_vm0, %v5524_v2, %v4288_v43  ;;  %v3797_v2 = vpack.c.bf16 %v1603_v1, %v1601_v34  ;;  %v3799_v33 = vpack.c.bf16 %v1608_v44, %v1606_v14  ;;  %v1610_v47 = vld [vmem:[#allocation6 + $0x8e8] sm:$0xff]  ;;  %v1629_v1 = vld [vmem:[#allocation6 + $0x980] sm:$0xff]  ;;  %v1631_v14 = vld [vmem:[#allocation6 + $0x990] sm:$0xff] }
 0x3f4   :  { %3780 = vmatprep.subr.bf16.mxu1 %v3779_v53  ;;  %v1185_v53 = vsel %vm1184_vm4, %v4293_v9, %v4294_v63  ;;  %v3803_v60 = vpack.c.bf16 %v1612_v18, %v1610_v47  ;;  %v1618_v43 = vld [vmem:[#allocation6 + $0x928] sm:$0xff]  ;;  %v1635_v47 = vld [vmem:[#allocation6 + $0x9b0] sm:$0xff] }
 0x3f5   :  { %v1634_v44 = vld [vmem:[#allocation6 + $0x9a8] sm:$0xff] }
 0x3f6   :  { %2027 = vmatmul.mubr.f32.gmra.mrb[46].mxu1 %v1214_v54  ;;  %v3807_v54 = vpack.c.bf16 %v1616_v16, %v1614_v23  ;;  %v1638_v18 = vld [vmem:[#allocation6 + $0x9c8] sm:$0xff]  ;;  %v1639_v23 = vld [vmem:[#allocation6 + $0x9d0] sm:$0xff] }
 0x3f7   :  { %2032 = vmatprep.mubr.f32.mxu1 %v1259_v36  ;;  %3782 = vmatpush1.bf16.msra.mxu1 %v3781_v7  ;;  %v3801_v7 = vpack.c.bf16 %v1607_v38, %v1605_v51  ;;  %v1620_v36 = vld [vmem:[#allocation6 + $0x938] sm:$0xff]  ;;  %v1633_v38 = vld [vmem:[#allocation6 + $0x9a0] sm:$0xff]  ;;  %v1642_v16 = vld [vmem:[#allocation6 + $0x9e8] sm:$0xff] }
 0x3f8   :  { %3784 = vmatprep.subr.bf16.mxu1 %v3783_v39  ;;  %v1611_v39 = vld [vmem:[#allocation6 + $0x8f0] sm:$0xff] }
 0x3f9   :  { %v3805_v3 = vpack.c.bf16 %v1611_v39, %v1609_v8  ;;  %v1637_v39 = vld [vmem:[#allocation6 + $0x9c0] sm:$0xff] }
 0x3fa   :  { %2033 = vmatmul.mubr.f32.gmra.mrb[48].mxu1 %v1258_v56  ;;  %v1624_v56 = vld [vmem:[#allocation6 + $0x958] sm:$0xff] }
 0x3fb   :  { %2038 = vmatprep.mubr.f32.mxu1 %v1303_v12  ;;  %3786 = vmatpush1.bf16.msra.mxu1 %v3785_v57  ;;  %v3811_v57 = vpack.c.bf16 %v1620_v36, %v1618_v43  ;;  %v3815_v5 = vpack.c.bf16 %v1624_v56, %v1622_v25  ;;  %v1621_v12 = vld [vmem:[#allocation6 + $0x940] sm:$0xff]  ;;  %v1643_v43 = vld [vmem:[#allocation6 + $0x9f0] sm:$0xff]  ;;  %v1646_v36 = vld [vmem:[#allocation6 + $0xa08] sm:$0xff] }
 0x3fc   :  { %3788 = vmatprep.subr.bf16.mxu1 %v3787_v4  ;;  %v1617_v4 = vld [vmem:[#allocation6 + $0x920] sm:$0xff]  ;;  %v1647_v56 = vld [vmem:[#allocation6 + $0xa10] sm:$0xff] }
 0x3fd   :  { %v3813_v58 = vpack.c.bf16 %v1619_v61, %v1617_v4  ;;  %v3837_v4 = vpack.c.bf16 %v1643_v43, %v1641_v62  ;;  %v1645_v25 = vld [vmem:[#allocation6 + $0xa00] sm:$0xff]  ;;  %v1663_v62 = vld [vmem:[#allocation6 + $0xa90] sm:$0xff]  ;;  %v1666_v43 = vld [vmem:[#allocation6 + $0xaa8] sm:$0xff] }
 0x3fe   :  { %2039 = vmatmul.mubr.f32.gmra.mrb[50].mxu1 %v1302_v28 }
 0x3ff   :  { %3790 = vmatpush1.bf16.msra.mxu1 %v3789_v19  ;;  %2109 = vmatprep.mubr.f32.mxu1 %v1185_v53  ;;  %v1623_v19 = vld [vmem:[#allocation6 + $0x950] sm:$0xff]  ;;  %v1630_v53 = vld [vmem:[#allocation6 + $0x988] sm:$0xff] }
 0x400   :  { %3792 = vmatprep.subr.bf16.mxu1 %v3791_v55  ;;  %v1626_v55 = vld [vmem:[#allocation6 + $0x968] sm:$0xff]  ;;  %v3817_v29 = vpack.c.bf16 %v1623_v19, %v1621_v12 }
 0x401   :  { %v3819_v28 = vpack.c.bf16 %v1628_v15, %v1626_v55  ;;  %v5611_v55 = vpop.permute.xlu0 %4301  ;;  %v3841_v15 = vpack.c.bf16 %v1647_v56, %v1645_v25  ;;  %v1670_v25 = vld [vmem:[#allocation6 + $0xac8] sm:$0xff]  ;;  %v1672_v56 = vld [vmem:[#allocation6 + $0xad8] sm:$0xff] }
 0x403   :  { %3794 = vmatpush1.bf16.msra.mxu1 %v3793_v42  ;;  %v1632_v42 = vld [vmem:[#allocation6 + $0x998] sm:$0xff] }
 0x404   :  { %3796 = vmatprep.subr.bf16.mxu1 %v3795_v48  ;;  %v3821_v48 = vpack.c.bf16 %v1627_v35, %v1625_v31  ;;  %v3823_v34 = vpack.c.bf16 %v1632_v42, %v1630_v53  ;;  %v1651_v31 = vld [vmem:[#allocation6 + $0xa30] sm:$0xff]  ;;  %v1192_v35 = vsel %vm1184_vm4, %v4274_v0, %v4293_v9  ;;  %v1654_v53 = vld [vmem:[#allocation6 + $0xa48] sm:$0xff]  ;;  %v1656_v42 = vld [vmem:[#allocation6 + $0xa58] sm:$0xff] }
 0x405   :  { %v3847_v41 = vpack.c.bf16 %v1656_v42, %v1654_v53  ;;  %v1655_v0 = vld [vmem:[#allocation6 + $0xa50] sm:$0xff]  ;;  %v1183_v42 = vpop.permute.xlu0 %1182 }
 0x407   :  { %3798 = vmatpush1.bf16.msra.mxu1 %v3797_v2  ;;  %v1636_v2 = vld [vmem:[#allocation6 + $0x9b8] sm:$0xff] }
 0x408   :  { %3800 = vmatprep.subr.bf16.mxu1 %v3799_v33  ;;  %v3825_v33 = vpack.c.bf16 %v1631_v14, %v1629_v1  ;;  %v3827_v51 = vpack.c.bf16 %v1636_v2, %v1634_v44  ;;  %v1653_v2 = vld [vmem:[#allocation6 + $0xa40] sm:$0xff] }
 0x40b   :  { %3802 = vmatpush1.bf16.msra.mxu1 %v3801_v7  ;;  %v1640_v7 = vld [vmem:[#allocation6 + $0x9d8] sm:$0xff] }
 0x40c   :  { %3804 = vmatprep.subr.bf16.mxu1 %v3803_v60  ;;  %v3829_v60 = vpack.c.bf16 %v1635_v47, %v1633_v38  ;;  %v3831_v8 = vpack.c.bf16 %v1640_v7, %v1638_v18  ;;  %v3849_v7 = vpack.c.bf16 %v1655_v0, %v1653_v2 }
 0x40f   :  { %3806 = vmatpush1.bf16.msra.mxu1 %v3805_v3  ;;  %v1644_v3 = vld [vmem:[#allocation6 + $0x9f8] sm:$0xff] }
 0x410   :  { %3808 = vmatprep.subr.bf16.mxu1 %v3807_v54  ;;  %v3833_v54 = vpack.c.bf16 %v1639_v23, %v1637_v39  ;;  %v3835_v17 = vpack.c.bf16 %v1644_v3, %v1642_v16  ;;  %v1662_v39 = vld [vmem:[#allocation6 + $0xa88] sm:$0xff]  ;;  %v1664_v23 = vld [vmem:[#allocation6 + $0xa98] sm:$0xff] }
 0x413   :  { %3810 = vmatpush1.bf16.msra.mxu1 %v3809_v6  ;;  %v1648_v6 = vld [vmem:[#allocation6 + $0xa18] sm:$0xff] }
 0x414   :  { %3812 = vmatprep.subr.bf16.mxu1 %v3811_v57  ;;  %v5607_v57 = vpop.permute.xlu1 %4296  ;;  %v3839_v61 = vpack.c.bf16 %v1648_v6, %v1646_v36 }
 0x415   :  { %v4299_v12 = vunpack.i.h.bf16 %v5607_v57  ;;  %v4298_v19 = vunpack.i.l.bf16 %v5607_v57  ;;  %v2262_v57 = vld [vmem:[#allocation9 + $0xf8] sm:$0xff] }
 0x417   :  { %3814 = vmatpush1.bf16.msra.mxu1 %v3813_v58  ;;  %v1650_v58 = vld [vmem:[#allocation6 + $0xa28] sm:$0xff]  ;;  %v1229_v1 = vsel %vm1184_vm4, %v4298_v19, %v4299_v12  ;;  %v1236_v9 = vsel %vm1184_vm4, %v4279_v50, %v4298_v19  ;;  %v1671_v19 = vld [vmem:[#allocation6 + $0xad0] sm:$0xff] }
 0x418   :  { %3816 = vmatprep.subr.bf16.mxu1 %v3815_v5  ;;  %v1652_v5 = vld [vmem:[#allocation6 + $0xa38] sm:$0xff]  ;;  %v5623_v14 = vpop.permute.xlu1 %4306 }
 0x419   :  { %v4309_v38 = vunpack.i.h.bf16 %v5623_v14  ;;  %v4308_v47 = vunpack.i.l.bf16 %v5623_v14  ;;  %v1758_v14 = vadd.f32 %v5543_v49, %v5559_v21 }
 0x41b   :  { %3818 = vmatpush1.bf16.msra.mxu1 %v3817_v29  ;;  %v3843_v29 = vpack.c.bf16 %v1652_v5, %v1650_v58  ;;  %v1317_v16 = vsel %vm1184_vm4, %v4308_v47, %v4309_v38  ;;  %v1324_v32 = vsel %vm1184_vm4, %v4289_v22, %v4308_v47  ;;  %v3863_v5 = vpack.c.bf16 %v1672_v56, %v1670_v25  ;;  %v1674_v22 = vld [vmem:[#allocation6 + $0xae8] sm:$0xff] }
 0x41c   :  { %3820 = vmatprep.subr.bf16.mxu1 %v3819_v28  ;;  %v1649_v28 = vld [vmem:[#allocation6 + $0xa20] sm:$0xff]  ;;  %v2280_v47 = vld [vmem:[#allocation9 + $0x188] sm:$0xff] }
 0x41d   :  { %v3845_v44 = vpack.c.bf16 %v1651_v31, %v1649_v28  ;;  %v1673_v31 = vld [vmem:[#allocation6 + $0xae0] sm:$0xff] }
 0x41f   :  { %3822 = vmatpush1.bf16.msra.mxu1 %v3821_v48  ;;  %v4304_v48 = vunpack.i.h.bf16 %v5611_v55 }
 0x420   :  { %3824 = vmatprep.subr.bf16.mxu1 %v3823_v34  ;;  %v4303_v34 = vunpack.i.l.bf16 %v5611_v55  ;;  %v2279_v55 = vld [vmem:[#allocation9 + $0x180] sm:$0xff] }
 0x422   :  { %v1273_v18 = vsel %vm1184_vm4, %v4303_v34, %v4304_v48  ;;  %v1280_v50 = vsel %vm1184_vm4, %v4284_v10, %v4303_v34  ;;  %v1668_v10 = vld [vmem:[#allocation6 + $0xab8] sm:$0xff]  ;;  %v1186_v34 = vsel %vm1184_vm4, %v4294_v63, %v1183_v42 }
 0x423   :  { %3826 = vmatpush1.bf16.msra.mxu1 %v3825_v33  ;;  %v1658_v33 = vld [vmem:[#allocation6 + $0xa68] sm:$0xff]  ;;  %v3859_v6 = vpack.c.bf16 %v1668_v10, %v1666_v43  ;;  %v2261_v63 = vld [vmem:[#allocation9 + $0xf0] sm:$0xff] }
 0x424   :  { %3828 = vmatprep.subr.bf16.mxu1 %v3827_v51  ;;  %v1660_v51 = vld [vmem:[#allocation6 + $0xa78] sm:$0xff] }
 0x425   :  { %v2265_v10 = vld [vmem:[#allocation9 + $0x110] sm:$0xff] }
 0x426   :  { %v2269_v42 = vld [vmem:[#allocation9 + $0x130] sm:$0xff] }
 0x427   :  { %3830 = vmatpush1.bf16.msra.mxu1 %v3829_v60  ;;  %v3851_v60 = vpack.c.bf16 %v1660_v51, %v1658_v33  ;;  %v2246_v33 = vld [vmem:[#allocation9 + $0x78] sm:$0xff] }
 0x428   :  { %3832 = vmatprep.subr.bf16.mxu1 %v3831_v8  ;;  %v1657_v8 = vld [vmem:[#allocation6 + $0xa60] sm:$0xff] }
 0x429   :  { %v3853_v3 = vpack.c.bf16 %v1659_v11, %v1657_v8  ;;  %v2263_v8 = vld [vmem:[#allocation9 + $0x100] sm:$0xff]  ;;  %v2264_v11 = vld [vmem:[#allocation9 + $0x108] sm:$0xff] }
 0x42b   :  { %3834 = vmatpush1.bf16.msra.mxu1 %v3833_v54  ;;  %v3855_v54 = vpack.c.bf16 %v1664_v23, %v1662_v39  ;;  %v2281_v39 = vld [vmem:[#allocation9 + $0x190] sm:$0xff]  ;;  %v2282_v23 = vld [vmem:[#allocation9 + $0x198] sm:$0xff] }
 0x42c   :  { %3836 = vmatprep.subr.bf16.mxu1 %v3835_v17  ;;  %v1661_v17 = vld [vmem:[#allocation6 + $0xa80] sm:$0xff]  ;;  %v3907_v43 = vpack.c.bf16 %v2282_v23, %v2281_v39  ;;  %v2312_v23 = vld [vmem:[#allocation9 + $0x288] sm:$0xff] }
 0x42d   :  { %v3857_v36 = vpack.c.bf16 %v1663_v62, %v1661_v17  ;;  %v2311_v39 = vld [vmem:[#allocation9 + $0x280] sm:$0xff] }
 0x42f   :  { %3838 = vmatpush1.bf16.msra.mxu1 %v3837_v4  ;;  %v1665_v4 = vld [vmem:[#allocation6 + $0xaa0] sm:$0xff] }
 0x430   :  { %3840 = vmatprep.subr.bf16.mxu1 %v3839_v61  ;;  %v1667_v61 = vld [vmem:[#allocation6 + $0xab0] sm:$0xff] }
 0x431   :  { %v3861_v58 = vpack.c.bf16 %v1667_v61, %v1665_v4  ;;  %v2283_v4 = vld [vmem:[#allocation9 + $0x1a0] sm:$0xff]  ;;  %v2284_v61 = vld [vmem:[#allocation9 + $0x1a8] sm:$0xff] }
 0x432   :  { %2110 = vmatmul.mubr.f32.vlgmr.msra.gmra.mrb[44].mxu1 %v1192_v35  ;;  %v1675_v35 = vld [vmem:[#allocation6 + $0xaf0] sm:$0xff] }
 0x433   :  { %2115 = vmatprep.mubr.f32.mxu1 %v1229_v1  ;;  %3842 = vmatpush1.bf16.msra.mxu1 %v3841_v15  ;;  %v1676_v15 = vld [vmem:[#allocation6 + $0xaf8] sm:$0xff]  ;;  %v3869_v53 = vpack.c.bf16 %v1675_v35, %v1673_v31  ;;  %v1228_v1 = vpop.permute.xlu1 %1227 }
 0x434   :  { %3844 = vmatprep.subr.bf16.mxu1 %v3843_v29  ;;  %v3865_v29 = vpack.c.bf16 %v1671_v19, %v1669_v26  ;;  %v3867_v28 = vpack.c.bf16 %v1676_v15, %v1674_v22  ;;  %v3911_v22 = vpack.c.bf16 %v2284_v61, %v2283_v4  ;;  %v2267_v15 = vld [vmem:[#allocation9 + $0x120] sm:$0xff]  ;;  %v2316_v61 = vld [vmem:[#allocation9 + $0x2a8] sm:$0xff] }
 0x435   :  { %v2315_v4 = vld [vmem:[#allocation9 + $0x2a0] sm:$0xff] }
 0x436   :  { %2116 = vmatmul.mubr.f32.gmra.mrb[46].mxu1 %v1236_v9  ;;  %v2245_v9 = vld [vmem:[#allocation9 + $0x70] sm:$0xff] }
 0x437   :  { %2121 = vmatprep.mubr.f32.mxu1 %v1273_v18  ;;  %3846 = vmatpush1.bf16.msra.mxu1 %v3845_v44  ;;  %v1230_v44 = vsel %vm1184_vm4, %v4299_v12, %v1228_v1  ;;  %v1316_v0 = vpop.permute.xlu1 %1315  ;;  %v3899_v12 = vpack.c.bf16 %v2262_v57, %v2261_v63  ;;  %v3901_v51 = vpack.c.bf16 %v2246_v33, %v2245_v9  ;;  %v2272_v63 = vld [vmem:[#allocation9 + $0x148] sm:$0xff]  ;;  %v2289_v57 = vld [vmem:[#allocation9 + $0x1d0] sm:$0xff] }
 0x438   :  { %3848 = vmatprep.subr.bf16.mxu1 %v3847_v41  ;;  %v1272_v41 = vpop.permute.xlu0 %1271  ;;  %v1318_v30 = vsel %vm1184_vm4, %v4309_v38, %v1316_v0  ;;  %v1756_v18 = vadd.f32 %v5541_v45, %v5555_v13  ;;  %v3905_v45 = vpack.c.bf16 %v2264_v11, %v2263_v8  ;;  %v2273_v33 = vld [vmem:[#allocation9 + $0x150] sm:$0xff] }
 0x439   :  { %v1274_v2 = vsel %vm1184_vm4, %v4304_v48, %v1272_v41  ;;  %3900 = vmatprep.subr.bf16.mxu0 %v3899_v12  ;;  %v3903_v48 = vpack.c.bf16 %v2280_v47, %v2279_v55  ;;  %v2288_v41 = vld [vmem:[#allocation9 + $0x1c8] sm:$0xff]  ;;  %v2290_v12 = vld [vmem:[#allocation9 + $0x1d8] sm:$0xff]  ;;  %v2291_v55 = vld [vmem:[#allocation9 + $0x1e0] sm:$0xff] }
 0x43a   :  { %2122 = vmatmul.mubr.f32.gmra.mrb[48].mxu1 %v1280_v50  ;;  %3902 = vmatpush3.bf16.msra.mxu0 %v3901_v51  ;;  %v3923_v9 = vpack.c.bf16 %v2290_v12, %v2289_v57  ;;  %v2274_v51 = vld [vmem:[#allocation9 + $0x158] sm:$0xff]  ;;  %v2292_v47 = vld [vmem:[#allocation9 + $0x1e8] sm:$0xff]  ;;  %v2277_v11 = vld [vmem:[#allocation9 + $0x170] sm:$0xff] }
 0x43b   :  { %2127 = vmatprep.mubr.f32.mxu1 %v1317_v16  ;;  %3850 = vmatpush1.bf16.msra.mxu1 %v3849_v7  ;;  %v1762_v16 = vadd.f32 %v5545_v59, %v5555_v13  ;;  %v1768_v59 = vadd.f32 %v5549_v20, %v5555_v13  ;;  %v2285_v20 = vld [vmem:[#allocation9 + $0x1b0] sm:$0xff]  ;;  %v2286_v13 = vld [vmem:[#allocation9 + $0x1b8] sm:$0xff]  ;;  %v2307_v57 = vld [vmem:[#allocation9 + $0x260] sm:$0xff] }
 0x43c   :  { %3852 = vmatprep.subr.bf16.mxu1 %v3851_v60  ;;  %3904 = vmatprep.subr.bf16.mxu0 %v3903_v48  ;;  %v3927_v48 = vpack.c.bf16 %v2292_v47, %v2291_v55  ;;  %v2308_v12 = vld [vmem:[#allocation9 + $0x268] sm:$0xff]  ;;  %v2309_v55 = vld [vmem:[#allocation9 + $0x270] sm:$0xff]  ;;  %v2310_v47 = vld [vmem:[#allocation9 + $0x278] sm:$0xff] }
 0x43e   :  { %2128 = vmatmul.mubr.f32.gmra.mrb[50].mxu1 %v1324_v32 }
 0x43f   :  { %3854 = vmatpush1.bf16.msra.mxu1 %v3853_v3  ;;  %2198 = vmatprep.mubr.f32.mxu1 %v4657_v27  ;;  %v1764_v3 = vadd.f32 %v5547_v46, %v5559_v21  ;;  %v1770_v46 = vadd.f32 %v5551_v40, %v5559_v21 }
 0x440   :  { %3856 = vmatprep.subr.bf16.mxu1 %v3855_v54 }
 0x443   :  { %3858 = vmatpush1.bf16.msra.mxu1 %v3857_v36  ;;  %v2266_v36 = vld [vmem:[#allocation9 + $0x118] sm:$0xff] }
 0x444   :  { %3860 = vmatprep.subr.bf16.mxu1 %v3859_v6 }
 0x447   :  { %3862 = vmatpush1.bf16.msra.mxu1 %v3861_v58  ;;  %v3909_v58 = vpack.c.bf16 %v2266_v36, %v2265_v10  ;;  %v2297_v10 = vld [vmem:[#allocation9 + $0x210] sm:$0xff]  ;;  %v2298_v36 = vld [vmem:[#allocation9 + $0x218] sm:$0xff] }
 0x448   :  { %3864 = vmatprep.subr.bf16.mxu1 %v3863_v5 }
 0x44b   :  { %3866 = vmatpush1.bf16.msra.mxu1 %v3865_v29  ;;  %v2268_v29 = vld [vmem:[#allocation9 + $0x128] sm:$0xff] }
 0x44c   :  { %3868 = vmatprep.subr.bf16.mxu1 %v3867_v28  ;;  %v3913_v21 = vpack.c.bf16 %v2268_v29, %v2267_v15 }
 0x44f   :  { %3870 = vmatpush1.bf16.msra.mxu1 %v3869_v53  ;;  %v3915_v53 = vpack.c.bf16 %v2286_v13, %v2285_v20  ;;  %v2320_v20 = vld [vmem:[#allocation9 + $0x2c8] sm:$0xff] }
 0x452   :  { %2199 = vmatmul.mubr.f32.vlgmr.msra.gmra.mrb[44].mxu1 %v1186_v34  ;;  %v2270_v34 = vld [vmem:[#allocation9 + $0x138] sm:$0xff] }
 0x453   :  { %2204 = vmatprep.mubr.f32.mxu1 %v4657_v27 }
 0x456   :  { %2205 = vmatmul.mubr.f32.gmra.mrb[46].mxu1 %v1230_v44  ;;  %v2287_v44 = vld [vmem:[#allocation9 + $0x1c0] sm:$0xff] }
 0x457   :  { %2210 = vmatprep.mubr.f32.mxu1 %v4657_v27  ;;  %v3919_v0 = vpack.c.bf16 %v2288_v41, %v2287_v44  ;;  %v2305_v44 = vld [vmem:[#allocation9 + $0x250] sm:$0xff]  ;;  %v2306_v41 = vld [vmem:[#allocation9 + $0x258] sm:$0xff] }
 0x45a   :  { %2211 = vmatmul.mubr.f32.gmra.mrb[48].mxu1 %v1274_v2  ;;  %v3917_v2 = vpack.c.bf16 %v2270_v34, %v2269_v42 }
 0x45b   :  { %2216 = vmatprep.mubr.f32.mxu1 %v4657_v27 }
 0x45e   :  { %2217 = vmatmul.mubr.f32.gmra.mrb[50].mxu1 %v1318_v30  ;;  %v2271_v30 = vld [vmem:[#allocation9 + $0x140] sm:$0xff] }
 0x525   :  { %v2200_v38 = vpop.f32.mrb[44].mxu1 }
 0x526   :  { %v4051_v7 = vadd.f32 %v2200_v38, %v1756_v18  ;;  %v2202_v60 = vpop.f32.mrb[45].mxu1  ;;  %v2275_v18 = vld [vmem:[#allocation9 + $0x160] sm:$0xff]  ;;  %v2293_v38 = vld [vmem:[#allocation9 + $0x1f0] sm:$0xff] }
 0x527   :  { %v4053_v50 = vadd.f32 %v2202_v60, %v1758_v14  ;;  %v2276_v14 = vld [vmem:[#allocation9 + $0x168] sm:$0xff] }
 0x528   :  { %v2223_v62 = vmax.f32 %v4051_v7, 0.0  ;;  %v2294_v7 = vld [vmem:[#allocation9 + $0x1f8] sm:$0xff]  ;;  %v3929_v60 = vpack.c.bf16 %v2276_v14, %v2275_v18  ;;  %v2564_v14 = vld [vmem:[#allocation12] sm:$0xff] }
 0x529   :  { %v2224_v54 = vmax.f32 %v4053_v50, 0.0  ;;  %v2206_v17 = vpop.f32.mrb[46].mxu1  ;;  %v3931_v8 = vpack.c.bf16 %v2294_v7, %v2293_v38  ;;  %v2278_v50 = vld [vmem:[#allocation9 + $0x178] sm:$0xff]  ;;  %v2565_v38 = vld [vmem:[#allocation12 + $0x8] sm:$0xff] }
 0x52a   :  { %v5666_v32 = vadd.f32 %v2206_v17, %v1762_v16  ;;  %v2208_v49 = vpop.f32.mrb[47].mxu1  ;;  %v3933_v16 = vpack.c.bf16 %v2278_v50, %v2277_v11  ;;  %v2296_v17 = vld [vmem:[#allocation9 + $0x208] sm:$0xff]  ;;  %v2566_v7 = vld [vmem:[#allocation12 + $0x10] sm:$0xff] }
 0x52b   :  { %v4057_v6 = vadd.f32 %v2208_v49, %v1764_v3  ;;  %2398 = vmatprep.mubr.f32.mxu0 %v2224_v54  ;;  %v3935_v3 = vpack.c.bf16 %v2312_v23, %v2311_v39  ;;  %v2295_v54 = vld [vmem:[#allocation9 + $0x200] sm:$0xff]  ;;  %v2569_v39 = vld [vmem:[#allocation12 + $0x28] sm:$0xff] }
 0x52c   :  { %2399 = vmatmul.mubr.f32.vlgmr.msra.gmra.mrb[32].mxu0 %v2223_v62  ;;  %v2225_v5 = vmax.f32 %v5666_v32, 0.0  ;;  %v2314_v62 = vld [vmem:[#allocation9 + $0x298] sm:$0xff]  ;;  %v3937_v49 = vpack.c.bf16 %v2296_v17, %v2295_v54  ;;  %v2568_v50 = vld [vmem:[#allocation12 + $0x20] sm:$0xff]  ;;  %v2573_v54 = vld [vmem:[#allocation12 + $0x48] sm:$0xff] }
 0x52d   :  { %v2226_v25 = vmax.f32 %v4057_v6, 0.0  ;;  %3906 = vmatpush3.bf16.msra.mxu0 %v3905_v45  ;;  %v2212_v56 = vpop.f32.mrb[48].mxu1  ;;  %v2313_v45 = vld [vmem:[#allocation9 + $0x290] sm:$0xff]  ;;  %v2302_v32 = vld [vmem:[#allocation9 + $0x238] sm:$0xff] }
 0x52e   :  { %v5673_v26 = vadd.f32 %v2212_v56, %v1768_v59  ;;  %v2214_v19 = vpop.f32.mrb[49].mxu1  ;;  %3908 = vmatprep.subr.bf16.mxu0 %v3907_v43  ;;  %v3939_v43 = vpack.c.bf16 %v2314_v62, %v2313_v45  ;;  %v3941_v59 = vpack.c.bf16 %v2298_v36, %v2297_v10  ;;  %v2299_v56 = vld [vmem:[#allocation9 + $0x220] sm:$0xff]  ;;  %v2574_v45 = vld [vmem:[#allocation12 + $0x50] sm:$0xff]  ;;  %v2577_v10 = vld [vmem:[#allocation12 + $0x68] sm:$0xff] }
 0x52f   :  { %v5675_v28 = vadd.f32 %v2214_v19, %v1770_v46  ;;  %2403 = vmatprep.mubr.f32.mxu0 %v2226_v25  ;;  %v2317_v19 = vld [vmem:[#allocation9 + $0x2b0] sm:$0xff]  ;;  %v2571_v23 = vld [vmem:[#allocation12 + $0x38] sm:$0xff] }
 0x530   :  { %2404 = vmatmul.mubr.f32.gmra.mrb[34].mxu0 %v2225_v5  ;;  %v2227_v46 = vmax.f32 %v5673_v26, 0.0  ;;  %v2575_v62 = vld [vmem:[#allocation12 + $0x58] sm:$0xff] }
 0x531   :  { %3910 = vmatpush3.bf16.msra.mxu0 %v3909_v58  ;;  %v2218_v40 = vpop.f32.mrb[50].mxu1  ;;  %2473 = vmatprep.mubr.f32.mxu0 %v2226_v25  ;;  %v2228_v6 = vmax.f32 %v5675_v28, 0.0  ;;  %v3943_v25 = vpack.c.bf16 %v2316_v61, %v2315_v4  ;;  %v2300_v58 = vld [vmem:[#allocation9 + $0x228] sm:$0xff]  ;;  %v2301_v28 = vld [vmem:[#allocation9 + $0x230] sm:$0xff]  ;;  %v2579_v4 = vld [vmem:[#allocation12 + $0x78] sm:$0xff] }
 0x532   :  { %v5680_v31 = vadd.f32 %v2218_v40, %v5562_v37  ;;  %v2220_v35 = vpop.f32.mrb[51].mxu1  ;;  %3912 = vmatprep.subr.bf16.mxu0 %v3911_v22  ;;  %v3921_v37 = vpack.c.bf16 %v2272_v63, %v2271_v30  ;;  %v2318_v22 = vld [vmem:[#allocation9 + $0x2b8] sm:$0xff]  ;;  %v3945_v15 = vpack.c.bf16 %v2300_v58, %v2299_v56  ;;  %v3949_v13 = vpack.c.bf16 %v2302_v32, %v2301_v28  ;;  %v2303_v40 = vld [vmem:[#allocation9 + $0x240] sm:$0xff] }
 0x533   :  { %v5683_v1 = vadd.f32 %v2220_v35, %v5565_v24  ;;  %v3925_v24 = vpack.c.bf16 %v2274_v51, %v2273_v33  ;;  %v3947_v29 = vpack.c.bf16 %v2318_v22, %v2317_v19  ;;  %v2321_v35 = vld [vmem:[#allocation9 + $0x2d0] sm:$0xff]  ;;  %v3957_v30 = vpack.c.bf16 %v2306_v41, %v2305_v44 }
 0x534   :  { %v3961_v33 = vpack.c.bf16 %v2308_v12, %v2307_v57  ;;  %v2229_v18 = vmax.f32 %v5680_v31, 0.0  ;;  %v2570_v31 = vld [vmem:[#allocation12 + $0x30] sm:$0xff] }
 0x535   :  { %3914 = vmatpush3.bf16.msra.mxu0 %v3913_v21  ;;  %v2304_v21 = vld [vmem:[#allocation9 + $0x248] sm:$0xff] }
 0x536   :  { %3916 = vmatprep.subr.bf16.mxu0 %v3915_v53  ;;  %v2322_v53 = vld [vmem:[#allocation9 + $0x2d8] sm:$0xff]  ;;  %v3953_v42 = vpack.c.bf16 %v2304_v21, %v2303_v40  ;;  %v2665_v57 = vld [vmem:[#allocation15 + $0x8] sm:$0xff] }
 0x537   :  { %v3955_v34 = vpack.c.bf16 %v2322_v53, %v2321_v35  ;;  %v2658_v35 = vld [vmem:[%s5733_s0] sm:$0xff] }
 0x538   :  { %2660 = vrot.lane.b32.xlu1 %v2658_v35, %s4660_s27  ;;  %v2950_v35 = vld [vmem:[#allocation19] ss:$0 sm:$0xff] }
 0x539   :  { %3918 = vmatpush3.bf16.msra.mxu0 %v3917_v2  ;;  %v2323_v2 = vld [vmem:[#allocation9 + $0x2e0] sm:$0xff] }
 0x53a   :  { %3920 = vmatprep.subr.bf16.mxu0 %v3919_v0  ;;  %v2324_v0 = vld [vmem:[#allocation9 + $0x2e8] sm:$0xff] }
 0x53b   :  { %v3959_v63 = vpack.c.bf16 %v2324_v0, %v2323_v2 }
 0x53d   :  { %3922 = vmatpush3.bf16.msra.mxu0 %v3921_v37  ;;  %v2325_v37 = vld [vmem:[#allocation9 + $0x2f0] sm:$0xff] }
 0x53e   :  { %3924 = vmatprep.subr.bf16.mxu0 %v3923_v9  ;;  %v2326_v9 = vld [vmem:[#allocation9 + $0x2f8] sm:$0xff] }
 0x53f   :  { %v3963_v51 = vpack.c.bf16 %v2326_v9, %v2325_v37  ;;  %v2666_v9 = vld [vmem:[#allocation15 + $0x10] sm:$0xff] }
 0x541   :  { %3926 = vmatpush3.bf16.msra.mxu0 %v3925_v24  ;;  %v3965_v24 = vpack.c.bf16 %v2310_v47, %v2309_v55  ;;  %v2668_v47 = vld [vmem:[#allocation15 + $0x20] sm:$0xff] }
 0x542   :  { %3928 = vmatprep.subr.bf16.mxu0 %v3927_v48  ;;  %v2230_v48 = vmax.f32 %v5683_v1, 0.0  ;;  %v3974_v1 = vpack.c.bf16 %v2569_v39, %v2568_v50  ;;  %v2756_v39 = vld [vmem:[#allocation18] sm:$0xff] }
 0x545   :  { %3930 = vmatpush3.bf16.msra.mxu0 %v3929_v60  ;;  %v3968_v60 = vpack.c.bf16 %v2565_v38, %v2564_v14  ;;  %v2671_v14 = vld [vmem:[#allocation15 + $0x38] sm:$0xff] }
 0x546   :  { %3932 = vmatprep.subr.bf16.mxu0 %v3931_v8  ;;  %v2567_v8 = vld [vmem:[#allocation12 + $0x18] sm:$0xff] }
 0x547   :  { %v3971_v11 = vpack.c.bf16 %v2567_v8, %v2566_v7  ;;  %v2672_v7 = vld [vmem:[#allocation15 + $0x40] sm:$0xff] }
 0x549   :  { %3934 = vmatpush3.bf16.msra.mxu0 %v3933_v16  ;;  %v3977_v16 = vpack.c.bf16 %v2571_v23, %v2570_v31 }
 0x54a   :  { %3936 = vmatprep.subr.bf16.mxu0 %v3935_v3  ;;  %v2572_v3 = vld [vmem:[#allocation12 + $0x40] sm:$0xff] }
 0x54b   :  { %v3980_v17 = vpack.c.bf16 %v2573_v54, %v2572_v3 }
 0x54c   :  { %2474 = vmatmul.mubr.f32.vlgmr.msra.gmra.mrb[36].mxu0 %v2225_v5  ;;  %v2319_v5 = vld [vmem:[#allocation9 + $0x2c0] sm:$0xff] }
 0x54d   :  { %2478 = vmatprep.mubr.f32.mxu0 %v2228_v6  ;;  %3938 = vmatpush3.bf16.msra.mxu0 %v3937_v49  ;;  %v3951_v26 = vpack.c.bf16 %v2320_v20, %v2319_v5  ;;  %v3983_v49 = vpack.c.bf16 %v2575_v62, %v2574_v45  ;;  %v2759_v45 = vld [vmem:[#allocation18 + $0x18] sm:$0xff] }
 0x54e   :  { %3940 = vmatprep.subr.bf16.mxu0 %v3939_v43  ;;  %v2576_v43 = vld [vmem:[#allocation12 + $0x60] sm:$0xff] }
 0x54f   :  { %v3986_v36 = vpack.c.bf16 %v2577_v10, %v2576_v43  ;;  %v2760_v43 = vld [vmem:[#allocation18 + $0x20] sm:$0xff]  ;;  %v2761_v10 = vld [vmem:[#allocation18 + $0x28] sm:$0xff] }
 0x550   :  { %2479 = vmatmul.mubr.f32.gmra.mrb[38].mxu0 %v2227_v46 }
 0x551   :  { %3942 = vmatpush3.bf16.msra.mxu0 %v3941_v59  ;;  %2548 = vmatprep.mubr.f32.mxu0 %v2228_v6  ;;  %v2578_v6 = vld [vmem:[#allocation12 + $0x70] sm:$0xff] }
 0x552   :  { %3944 = vmatprep.subr.bf16.mxu0 %v3943_v25  ;;  %v3989_v61 = vpack.c.bf16 %v2579_v4, %v2578_v6  ;;  %v2762_v6 = vld [vmem:[#allocation18 + $0x30] sm:$0xff]  ;;  %v2763_v4 = vld [vmem:[#allocation18 + $0x38] sm:$0xff] }
 0x555   :  { %3946 = vmatpush3.bf16.msra.mxu0 %v3945_v15 }
 0x556   :  { %3948 = vmatprep.subr.bf16.mxu0 %v3947_v29 }
 0x559   :  { %3950 = vmatpush3.bf16.msra.mxu0 %v3949_v13 }
 0x55a   :  { %3952 = vmatprep.subr.bf16.mxu0 %v3951_v26 }
 0x55d   :  { %3954 = vmatpush3.bf16.msra.mxu0 %v3953_v42 }
 0x55e   :  { %3956 = vmatprep.subr.bf16.mxu0 %v3955_v34 }
 0x561   :  { %3958 = vmatpush3.bf16.msra.mxu0 %v3957_v30 }
 0x562   :  { %3960 = vmatprep.subr.bf16.mxu0 %v3959_v63  ;;  %v2664_v63 = vld [vmem:[#allocation15] sm:$0xff] }
 0x563   :  { %v3992_v12 = vpack.c.bf16 %v2665_v57, %v2664_v63 }
 0x565   :  { %3962 = vmatpush3.bf16.msra.mxu0 %v3961_v33  ;;  %v2667_v33 = vld [vmem:[#allocation15 + $0x18] sm:$0xff] }
 0x566   :  { %3964 = vmatprep.subr.bf16.mxu0 %v3963_v51  ;;  %v3995_v55 = vpack.c.bf16 %v2667_v33, %v2666_v9 }
 0x569   :  { %3966 = vmatpush3.bf16.msra.mxu0 %v3965_v24  ;;  %v2669_v24 = vld [vmem:[#allocation15 + $0x28] sm:$0xff] }
 0x56a   :  { %3967 = vmatprep.subr.bf16.mxu0 %v4656_v52 }
 0x56c   :  { %2549 = vmatmul.mubr.f32.vlgmr.msra.gmra.mrb[40].mxu0 %v2227_v46  ;;  %v2946_v46 = vld [vmem:[#allocation10] ss:$0 sm:$0xff] }
 0x56d   :  { %2553 = vmatprep.mubr.f32.mxu0 %v2230_v48  ;;  %3969 = vmatpush3.bf16.msra.mxu0 %v3968_v60  ;;  %v3998_v48 = vpack.c.bf16 %v2669_v24, %v2668_v47  ;;  %v2673_v60 = vld [vmem:[#allocation15 + $0x48] sm:$0xff] }
 0x56e   :  { %3970 = vmatprep.subr.bf16.mxu0 %v4656_v52  ;;  %v4004_v8 = vpack.c.bf16 %v2673_v60, %v2672_v7 }
 0x570   :  { %2554 = vmatmul.mubr.f32.gmra.mrb[42].mxu0 %v2229_v18  ;;  %v2670_v18 = vld [vmem:[#allocation15 + $0x30] sm:$0xff] }
 0x571   :  { %3303 = vmatprep.mubr.msk.f32.mxu0 %vm4658_vm2, %v4657_v27  ;;  %3972 = vmatpush3.bf16.msra.mxu0 %v3971_v11  ;;  %v4001_v38 = vpack.c.bf16 %v2671_v14, %v2670_v18  ;;  %v2947_v11 = vld [vmem:[#allocation13] ss:$0 sm:$0xff] }
 0x572   :  { %3973 = vmatprep.subr.bf16.mxu0 %v4656_v52 }
 0x575   :  { %3975 = vmatpush3.bf16.msra.mxu0 %v3974_v1  ;;  %v2757_v1 = vld [vmem:[#allocation18 + $0x8] sm:$0xff] }
 0x576   :  { %3976 = vmatprep.subr.bf16.mxu0 %v4656_v52  ;;  %v4007_v54 = vpack.c.bf16 %v2757_v1, %v2756_v39 }
 0x579   :  { %3978 = vmatpush3.bf16.msra.mxu0 %v3977_v16 }
 0x57a   :  { %3979 = vmatprep.subr.bf16.mxu0 %v4656_v52 }
 0x57d   :  { %3981 = vmatpush3.bf16.msra.mxu0 %v3980_v17  ;;  %v2758_v17 = vld [vmem:[#allocation18 + $0x10] sm:$0xff] }
 0x57e   :  { %3982 = vmatprep.subr.bf16.mxu0 %v4656_v52 }
 0x581   :  { %3984 = vmatpush3.bf16.msra.mxu0 %v3983_v49  ;;  %v4010_v49 = vpack.c.bf16 %v2759_v45, %v2758_v17 }
 0x582   :  { %3985 = vmatprep.subr.bf16.mxu0 %v4656_v52 }
 0x585   :  { %3987 = vmatpush3.bf16.msra.mxu0 %v3986_v36  ;;  %v4013_v36 = vpack.c.bf16 %v2761_v10, %v2760_v43 }
 0x586   :  { %3988 = vmatprep.subr.bf16.mxu0 %v4656_v52 }
 0x589   :  { %3990 = vmatpush3.bf16.msra.mxu0 %v3989_v61  ;;  %v4016_v61 = vpack.c.bf16 %v2763_v4, %v2762_v6 }
 0x58a   :  { %3991 = vmatprep.subr.bf16.mxu0 %v4656_v52 }
 0x5aa   :  { %v2661_v16 = vpop.permute.xlu1 %2660 }
 0x5ff   :  { %v3078_v59 = vpop.f32.mrb[32].mxu0 }
 0x600   :  { %v3079_v25 = vpop.f32.mrb[33].mxu0 }
 0x601   :  { %v3080_v56 = vadd.f32 %v3079_v25, %v3078_v59  ;;  %v2948_v59 = vld [vmem:[#allocation16] ss:$0 sm:$0xff]  ;;  %v2846_v25 = vld [vmem:[#allocation21 + $0x8] sm:$0xff] }
 0x603   :  { %v2401_v58 = vadd.f32 %v3080_v56, %v2946_v46  ;;  %v3081_v19 = vpop.f32.mrb[34].mxu0 }
 0x604   :  { %v3082_v22 = vpop.f32.mrb[35].mxu0 }
 0x605   :  { %v3083_v15 = vadd.f32 %v3082_v22, %v3081_v19 }
 0x607   :  { %v2406_v26 = vadd.f32 %v3083_v15, %v2946_v46  ;;  %v2845_v46 = vld [vmem:[#allocation21] sm:$0xff] }
 0x608   :  { %v4019_v22 = vpack.c.bf16 %v2846_v25, %v2845_v46 }
 0x61f   :  { %v3116_v29 = vpop.f32.mrb[36].mxu0 }
 0x620   :  { %v3117_v28 = vpop.f32.mrb[37].mxu0 }
 0x621   :  { %v3118_v32 = vadd.f32 %v3117_v28, %v3116_v29  ;;  %v2847_v29 = vld [vmem:[#allocation21 + $0x10] sm:$0xff]  ;;  %v2848_v28 = vld [vmem:[#allocation21 + $0x18] sm:$0xff] }
 0x623   :  { %v2476_v5 = vadd.f32 %v3118_v32, %v2401_v58  ;;  %v3119_v20 = vpop.f32.mrb[38].mxu0  ;;  %v4022_v32 = vpack.c.bf16 %v2848_v28, %v2847_v29 }
 0x624   :  { %v3120_v13 = vpop.f32.mrb[39].mxu0 }
 0x625   :  { %v3121_v40 = vadd.f32 %v3120_v13, %v3119_v20  ;;  %v2850_v20 = vld [vmem:[#allocation21 + $0x28] sm:$0xff] }
 0x627   :  { %v2481_v21 = vadd.f32 %v3121_v40, %v2406_v26  ;;  %v2851_v26 = vld [vmem:[#allocation21 + $0x30] sm:$0xff]  ;;  %v2852_v40 = vld [vmem:[#allocation21 + $0x38] sm:$0xff] }
 0x63f   :  { %v3154_v53 = vpop.f32.mrb[40].mxu0 }
 0x640   :  { %v3155_v42 = vpop.f32.mrb[41].mxu0 }
 0x641   :  { %v3156_v34 = vadd.f32 %v3155_v42, %v3154_v53 }
 0x643   :  { %v2551_v44 = vadd.f32 %v3156_v34, %v2476_v5  ;;  %v3157_v41 = vpop.f32.mrb[42].mxu0  ;;  %v2849_v5 = vld [vmem:[#allocation21 + $0x20] sm:$0xff] }
 0x644   :  { %v3158_v2 = vpop.f32.mrb[43].mxu0  ;;  %v4025_v13 = vpack.c.bf16 %v2850_v20, %v2849_v5 }
 0x645   :  { %v3159_v0 = vadd.f32 %v3158_v2, %v3157_v41 }
 0x647   :  { %v2556_v30 = vadd.f32 %v3159_v0, %v2481_v21  ;;  %v4028_v21 = vpack.c.bf16 %v2852_v40, %v2851_v26 }
 0x649   :  { %2560 = vrot.lane.b32.xlu0 %v2556_v30, %s4654_s11 }
 0x6bb   :  { %v2561_v37 = vpop.permute.xlu0 %2560 }
 0x6bc   :  { %v2563_v51 = vsel %vm257_vm0, %v2551_v44, %v2561_v37  ;;  %v2952_v44 = vld [vmem:[#allocation22] ss:$0 sm:$0xff] }
 0x6bd   :  { %3304 = vmatmul.mubr.f32.vlgmr.msra.gmra.mrb[44].mxu0 %v2563_v51 }
 0x6be   :  { %3993 = vmatpush3.bf16.msra.mxu0 %v3992_v12  ;;  %3326 = vmatprep.mubr.msk.f32.mxu0 %vm4658_vm2, %v4657_v27 }
 0x6bf   :  { %3994 = vmatprep.subr.bf16.mxu0 %v4656_v52 }
 0x6c2   :  { %3996 = vmatpush3.bf16.msra.mxu0 %v3995_v55 }
 0x6c3   :  { %3997 = vmatprep.subr.bf16.mxu0 %v4656_v52 }
 0x6c6   :  { %3999 = vmatpush3.bf16.msra.mxu0 %v3998_v48 }
 0x6c7   :  { %4000 = vmatprep.subr.bf16.mxu0 %v4656_v52 }
 0x6ca   :  { %4002 = vmatpush3.bf16.msra.mxu0 %v4001_v38 }
 0x6cb   :  { %4003 = vmatprep.subr.bf16.mxu0 %v4656_v52 }
 0x6ce   :  { %4005 = vmatpush3.bf16.msra.mxu0 %v4004_v8 }
 0x6cf   :  { %4006 = vmatprep.subr.bf16.mxu0 %v4656_v52 }
 0x790   :  { %v2653_v50 = vpop.f32.mrb[44].mxu0 }
 0x791   :  { %v2654_v31 = vadd.f32 %v2947_v11, %v2653_v50  ;;  %v3305_v23 = vpop.f32.mrb[45].mxu0 }
 0x793   :  { %v2657_v3 = vmax.f32 %v2654_v31, 0.0 }
 0x795   :  { %v2663_v62 = vsel %vm1184_vm4, %v2657_v3, %v2661_v16 }
 0x796   :  { %3327 = vmatmul.mubr.msk.f32.vlgmr.msra.gmra.mrb[46].mxu0 %vm2681_vm5, %v2663_v62 }
 0x797   :  { %4008 = vmatpush3.bf16.msra.mxu0 %v4007_v54  ;;  %3345 = vmatprep.mubr.msk.f32.mxu0 %vm4658_vm2, %v4657_v27 }
 0x798   :  { %4009 = vmatprep.subr.bf16.mxu0 %v4656_v52 }
 0x79b   :  { %4011 = vmatpush3.bf16.msra.mxu0 %v4010_v49 }
 0x79c   :  { %4012 = vmatprep.subr.bf16.mxu0 %v4656_v52 }
 0x79f   :  { %4014 = vmatpush3.bf16.msra.mxu0 %v4013_v36 }
 0x7a0   :  { %4015 = vmatprep.subr.bf16.mxu0 %v4656_v52 }
 0x7a3   :  { %4017 = vmatpush3.bf16.msra.mxu0 %v4016_v61 }
 0x7a4   :  { %4018 = vmatprep.subr.bf16.mxu0 %v4656_v52 }
 0x869   :  { %v2751_v56 = vpop.f32.mrb[46].mxu0 }
 0x86a   :  { %v2752_v58 = vadd.f32 %v2948_v59, %v2751_v56  ;;  %v3328_v19 = vpop.f32.mrb[47].mxu0 }
 0x86c   :  { %v2755_v15 = vmax.f32 %v2752_v58, 0.0 }
 0x86e   :  { %3346 = vmatmul.mubr.msk.f32.vlgmr.msra.gmra.mrb[48].mxu0 %vm257_vm0, %v2755_v15 }
 0x86f   :  { %4020 = vmatpush3.bf16.msra.mxu0 %v4019_v22  ;;  %3364 = vmatprep.mubr.msk.f32.mxu0 %vm4658_vm2, %v4657_v27 }
 0x870   :  { %4021 = vmatprep.subr.bf16.mxu0 %v4656_v52 }
 0x873   :  { %4023 = vmatpush3.bf16.msra.mxu0 %v4022_v32 }
 0x874   :  { %4024 = vmatprep.subr.bf16.mxu0 %v4656_v52 }
 0x877   :  { %4026 = vmatpush3.bf16.msra.mxu0 %v4025_v13 }
 0x878   :  { %4027 = vmatprep.subr.bf16.mxu0 %v4656_v52 }
 0x87b   :  { %4029 = vmatpush3.bf16.msra.mxu0 %v4028_v21 }
 0x941   :  { %v2840_v53 = vpop.f32.mrb[48].mxu0 }
 0x942   :  { %v2841_v42 = vadd.f32 %v2950_v35, %v2840_v53  ;;  %v3347_v34 = vpop.f32.mrb[49].mxu0 }
 0x944   :  { %v2844_v27 = vmax.f32 %v2841_v42, 0.0 }
 0x946   :  { %3365 = vmatmul.mubr.msk.f32.vlgmr.msra.gmra.mrb[50].mxu0 %vm257_vm0, %v2844_v27 }
 0xa19   :  { %v2929_v41 = vpop.f32.mrb[50].mxu0 }
 0xa1a   :  { %v2930_v2 = vadd.f32 %v2952_v44, %v2929_v41  ;;  %v3366_v0 = vpop.f32.mrb[51].mxu0 }
 0xa1c   :  { %2933 = vst.msk [vmem:[%s5748_s15] sm:$0xff] %vm1184_vm4, %v2930_v2 }
 0xa1d   :  { %2938 = vsyncpa [#allocation3], 1 }
 0xa1e   :  { %2939 = vsyncpa [#allocation5], 1 }
 0xa1f   :  { %2940 = vsyncpa [#allocation8], 1 }
 0xa20   :  { %2941 = vsyncpa [#allocation11], 1 }
 0xa21   :  { %2942 = vsyncpa [#allocation14], 1 }
 0xa22   :  { %2943 = vsyncpa [#allocation17], 1 }
 0xa23   :  { %2944 = vsyncpa [#allocation20], 1 }
 0xa24   :  { %2945 = vsyncpa [#allocation23], 1 }

</bundles_post_ra>
